<compile_context>
chip_gen: v6e
topology: v6e:2x2x1
jax: 0.10.0
libtpu: 0.0.40
codegen_flags: <defaults>
</compile_context>

<pallas_src>
import functools
import math

import jax
import jax.numpy as jnp
from jax.experimental import pallas as pl
from jax.experimental.pallas import tpu as pltpu


def _round_up(x, m):
    return ((x + m - 1) // m) * m


def _resblock_kernel(x_ref, wb1_ref, bb1_ref, wb2_ref, bb2_ref, out_ref, xpad_ref,
                     *, TB, C, H, W, PAD):
    """Fused ResBlock for a group of TB images.

    x_ref    : (TB*C, HW)        activations, row = b*C + c (NCHW flattened)
    wb1_ref  : (9*C, C*TB, HW)   conv1 weights, mask-baked & batch-tiled
    bb1_ref  : (C*TB, HW)        conv1 bias, pre-broadcast (row = co*TB + b)
    wb2_ref  : (9*C, C*TB, HW)   conv2 weights (same layout)
    bb2_ref  : (C*TB, HW)
    out_ref  : (TB*C, HW)
    xpad_ref : (C*TB, 2*PAD+HW)  persistent padded scratch (channel-major rows)
    """
    HW = H * W
    R = TB * C

    # Keep the halos of the padded scratch zero every step (cheap aligned
    # stores; no reliance on cross-step scratch state, which is not shared
    # between the two v7x TensorCores when the grid axis is "parallel").
    xpad_ref[:, :PAD] = jnp.zeros((R, PAD), jnp.float32)
    xpad_ref[:, PAD + HW:2 * PAD + HW] = jnp.zeros((R, PAD), jnp.float32)

    x_bm = x_ref[...].astype(jnp.float32)                      # (TB*C, HW), row b*C+c
    # Channel-major rows (row = c*TB + b): each input channel occupies a
    # contiguous (TB, HW) block, so the per-term operand below is a contiguous
    # slice + small replicate, and all FMAs run on full-sublane 2-D tiles.
    x_cm = jnp.concatenate(
        [x_bm[b * C + c:b * C + c + 1, :] for c in range(C) for b in range(TB)],
        axis=0)                                                 # (C*TB, HW)

    def conv3x3(src_cm, wb_ref):
        # src_cm: (C*TB, HW) channel-major. wb_ref: (9*C, C*TB, HW) mask-baked.
        xpad_ref[:, PAD:PAD + HW] = src_cm      # aligned centre store; halos stay 0
        padded = xpad_ref[...]                  # (C*TB, 2*PAD + HW)
        acc = jnp.zeros((R, HW), jnp.float32)   # row = co*TB + b
        for kh in range(3):
            for kw in range(3):
                shift = (kh - 1) * W + (kw - 1)
                # Lane-shifted tap window, shared by all TB images / C channels.
                win = padded[:, PAD + shift:PAD + shift + HW]   # (C*TB, HW)
                t = kh * 3 + kw
                for ci in range(C):
                    blk = win[ci * TB:(ci + 1) * TB, :]          # (TB, HW)
                    op = jnp.concatenate([blk] * C, axis=0)      # (C*TB, HW)
                    # Weight operand is a pure aligned load (mask already baked
                    # in, tiled over the batch) -> VPU FMA on full tiles.
                    acc = acc + wb_ref[t * C + ci] * op
        return acc

    mid = jnp.maximum(conv3x3(x_cm, wb1_ref) + bb1_ref[...], 0.0)   # conv1+bias+ReLU
    res = conv3x3(mid, wb2_ref) + bb2_ref[...]                      # conv2+bias
    out_cm = x_cm + res                                             # residual add

    # Back to batch-major rows for the lane-dense output store.
    out_bm = jnp.concatenate(
        [out_cm[c * TB + b:c * TB + b + 1, :] for b in range(TB) for c in range(C)],
        axis=0)
    out_ref[...] = out_bm.astype(out_ref.dtype)


def _pick_group_size(N, C):
    g = 8 // math.gcd(8, C)                       # (tb*C) % 8 == 0 (sublane tiling)
    cap = max(g, ((16 // max(C, 1)) // g) * g)    # keep the unrolled slab <= ~16 rows
    want = max(1, -(-N // 2))                     # >= 2 grid steps when N >= 2 (v7x)
    return max(g, min(cap, (want // g) * g))


def resblock_pallas(x_nchw, w1, b1, w2, b2, *, tb=None):
    """x_nchw: (N, C, H, W) f32.  w1, w2: (C, C, 3, 3) OIHW (PyTorch).  b: (C,)."""
    N, C, H, W = x_nchw.shape
    Cout, Cin = w1.shape[0], w1.shape[1]
    assert Cin == C and Cout == C, "residual add requires inFe == outFe"
    HW = H * W
    PAD = _round_up(W + 1, 128)       # lane-aligned halo, >= W+1

    if tb is None:
        tb = _pick_group_size(N, C)
    S = -(-N // tb)                   # grid steps
    Npad = S * tb

    # Free reshape: NCHW -> (N*C, HW) rows; pad the batch to a multiple of tb.
    x_rows = x_nchw.reshape(N * C, HW).astype(jnp.float32)
    if Npad != N:
        x_rows = jnp.concatenate(
            [x_rows, jnp.zeros(((Npad - N) * C, HW), jnp.float32)], axis=0)

    # Column-wrap masks (w==0 for dw=-1 taps, w==W-1 for dw=+1 taps), baked
    # into the pre-broadcast weights so no wpos input / jnp.where in-kernel.
    wcoord = jnp.tile(jnp.arange(W, dtype=jnp.int32), H)            # (HW,)
    mask_l = (wcoord > 0).astype(jnp.float32)
    mask_r = (wcoord < W - 1).astype(jnp.float32)
    ones = jnp.ones((HW,), jnp.float32)
    per_tap = jnp.stack(
        [mask_l if (t % 3) == 0 else (mask_r if (t % 3) == 2 else ones)
         for t in range(9)], axis=0)                                # (9, HW)
    tap_mask = jnp.repeat(per_tap, C, axis=0)                       # (9*C, HW)

    def prep_wb(w):
        # (co, ci, kh, kw) -> rows t*C+ci, cols co*TB+b, lanes HW (mask-baked).
        wt = jnp.transpose(w, (2, 3, 1, 0)).reshape(9 * C, C).astype(jnp.float32)
        wt = jnp.repeat(wt, tb, axis=1)                             # (9C, C*TB)
        return wt[:, :, None] * tap_mask[:, None, :]                # (9C, C*TB, HW)

    def prep_b(b):
        return jnp.broadcast_to(
            jnp.repeat(b.astype(jnp.float32), tb)[:, None], (C * tb, HW))

    wb1, wb2 = prep_wb(w1), prep_wb(w2)
    bb1, bb2 = prep_b(b1), prep_b(b2)

    kernel = functools.partial(_resblock_kernel, TB=tb, C=C, H=H, W=W, PAD=PAD)

    out_rows = pl.pallas_call(
        kernel,
        out_shape=jax.ShapeDtypeStruct((Npad * C, HW), jnp.float32),
        grid_spec=pltpu.PrefetchScalarGridSpec(
            num_scalar_prefetch=0,
            grid=(S,),
            in_specs=[
                pl.BlockSpec((tb * C, HW), lambda s: (s, 0)),
                pl.BlockSpec((9 * C, C * tb, HW), lambda s: (0, 0, 0)),
                pl.BlockSpec((C * tb, HW), lambda s: (0, 0)),
                pl.BlockSpec((9 * C, C * tb, HW), lambda s: (0, 0, 0)),
                pl.BlockSpec((C * tb, HW), lambda s: (0, 0)),
            ],
            out_specs=pl.BlockSpec((tb * C, HW), lambda s: (s, 0)),
            scratch_shapes=[pltpu.VMEM((C * tb, 2 * PAD + HW), jnp.float32)],
        ),
        compiler_params=pltpu.CompilerParams(
            dimension_semantics=("parallel",)),
    )(x_rows, wb1, bb1, wb2, bb2)

    return out_rows[:N * C].reshape(N, C, H, W)


def resblock_reference(x, w1, b1, w2, b2):
    """Pure-JAX reference (NCHW activations, OIHW weights, like PyTorch)."""
    dn = jax.lax.conv_dimension_numbers(x.shape, w1.shape, ("NCHW", "OIHW", "NCHW"))
    r = jax.lax.conv_general_dilated(x, w1, (1, 1), "SAME", dimension_numbers=dn)
    r = r + b1[None, :, None, None]
    r = jnp.maximum(r, 0.0)
    r = jax.lax.conv_general_dilated(r, w2, (1, 1), "SAME", dimension_numbers=dn)
    r = r + b2[None, :, None, None]
    return x + r


if __name__ == "__main__":
    key = jax.random.PRNGKey(0)
    kx, k1, kb1, k2, kb2 = jax.random.split(key, 5)

    # N=8 exercises batched grid steps (TB=4 -> 2 parallel steps, 16-row slabs).
    N, C, H, W = 8, 4, 16, 16   # inFe == outFe == C (required by the residual add)

    x = jax.random.normal(kx, (N, C, H, W), dtype=jnp.float32)

    fan_in = C * 3 * 3
    w1 = jax.random.normal(k1, (C, C, 3, 3), dtype=jnp.float32) / jnp.sqrt(fan_in)
    b1 = jax.random.normal(kb1, (C,), dtype=jnp.float32) * 0.01
    w2 = jax.random.normal(k2, (C, C, 3, 3), dtype=jnp.float32) / jnp.sqrt(fan_in)
    b2 = jax.random.normal(kb2, (C,), dtype=jnp.float32) * 0.01

    out = jax.block_until_ready(resblock_pallas(x, w1, b1, w2, b2))
    ref = jax.block_until_ready(resblock_reference(x, w1, b1, w2, b2))

    assert out.shape == (N, C, H, W)
    assert jnp.allclose(out, ref, atol=1e-4, rtol=1e-4), "mismatch vs reference"

    print("KERNEL_OK")
</pallas_src>

<mosaic_0001>
module attributes {stable_mosaic.version = 11 : i64} {
  func.func @_resblock_kernel(%arg0: i32, %arg1: memref<16x256xf32, #tpu.memory_space<vmem>>, %arg2: memref<36x16x256xf32, #tpu.memory_space<vmem>>, %arg3: memref<16x256xf32, #tpu.memory_space<vmem>>, %arg4: memref<36x16x256xf32, #tpu.memory_space<vmem>>, %arg5: memref<16x256xf32, #tpu.memory_space<vmem>>, %arg6: memref<16x256xf32, #tpu.memory_space<vmem>>, %arg7: memref<16x512xf32, #tpu.memory_space<vmem>>) attributes {dimension_semantics = [#tpu.dimension_semantics<parallel>], iteration_bounds = array<i64: 2>, scalar_prefetch = 0 : i64, scratch_operands = 1 : i64, tpu.core_type = #tpu.core_type<tc>, window_params = [{transform_indices = @transform_0, window_bounds = array<i64: 16, 256>}, {pipeline_mode = #tpu.pipeline_mode<synchronous>, transform_indices = @transform_1, window_bounds = array<i64: 36, 16, 256>}, {pipeline_mode = #tpu.pipeline_mode<synchronous>, transform_indices = @transform_2, window_bounds = array<i64: 16, 256>}, {pipeline_mode = #tpu.pipeline_mode<synchronous>, transform_indices = @transform_3, window_bounds = array<i64: 36, 16, 256>}, {pipeline_mode = #tpu.pipeline_mode<synchronous>, transform_indices = @transform_4, window_bounds = array<i64: 16, 256>}, {transform_indices = @transform_5, window_bounds = array<i64: 16, 256>}]} {
    %cst = arith.constant 0.000000e+00 : f32
    %0 = vector.broadcast %cst : f32 to vector<16x128xf32>
    %c0 = arith.constant 0 : index
    %c0_0 = arith.constant 0 : index
    %1 = vector.load %arg7[%c0, %c0_0] : memref<16x512xf32, #tpu.memory_space<vmem>>, vector<16x128xf32>
    tpu.vector_store %arg7[%c0, %c0_0], %0 {strides = array<i32>} : memref<16x512xf32, #tpu.memory_space<vmem>>, vector<16x128xf32>,
    %cst_1 = arith.constant 0.000000e+00 : f32
    %2 = vector.broadcast %cst_1 : f32 to vector<16x128xf32>
    %c0_2 = arith.constant 0 : index
    %c384 = arith.constant 384 : index
    %3 = vector.load %arg7[%c0_2, %c384] : memref<16x512xf32, #tpu.memory_space<vmem>>, vector<16x128xf32>
    tpu.vector_store %arg7[%c0_2, %c384], %2 {strides = array<i32>} : memref<16x512xf32, #tpu.memory_space<vmem>>, vector<16x128xf32>,
    %c0_3 = arith.constant 0 : index
    %c0_4 = arith.constant 0 : index
    %4 = vector.load %arg1[%c0_3, %c0_4] : memref<16x256xf32, #tpu.memory_space<vmem>>, vector<16x256xf32>
    %5 = vector.extract_strided_slice %4 {offsets = [0, 0], sizes = [1, 256], strides = [1, 1]} : vector<16x256xf32> to vector<1x256xf32>
    %6 = vector.extract_strided_slice %4 {offsets = [4, 0], sizes = [1, 256], strides = [1, 1]} : vector<16x256xf32> to vector<1x256xf32>
    %7 = vector.extract_strided_slice %4 {offsets = [8, 0], sizes = [1, 256], strides = [1, 1]} : vector<16x256xf32> to vector<1x256xf32>
    %8 = vector.extract_strided_slice %4 {offsets = [12, 0], sizes = [1, 256], strides = [1, 1]} : vector<16x256xf32> to vector<1x256xf32>
    %9 = vector.extract_strided_slice %4 {offsets = [1, 0], sizes = [1, 256], strides = [1, 1]} : vector<16x256xf32> to vector<1x256xf32>
    %10 = vector.extract_strided_slice %4 {offsets = [5, 0], sizes = [1, 256], strides = [1, 1]} : vector<16x256xf32> to vector<1x256xf32>
    %11 = vector.extract_strided_slice %4 {offsets = [9, 0], sizes = [1, 256], strides = [1, 1]} : vector<16x256xf32> to vector<1x256xf32>
    %12 = vector.extract_strided_slice %4 {offsets = [13, 0], sizes = [1, 256], strides = [1, 1]} : vector<16x256xf32> to vector<1x256xf32>
    %13 = vector.extract_strided_slice %4 {offsets = [2, 0], sizes = [1, 256], strides = [1, 1]} : vector<16x256xf32> to vector<1x256xf32>
    %14 = vector.extract_strided_slice %4 {offsets = [6, 0], sizes = [1, 256], strides = [1, 1]} : vector<16x256xf32> to vector<1x256xf32>
    %15 = vector.extract_strided_slice %4 {offsets = [10, 0], sizes = [1, 256], strides = [1, 1]} : vector<16x256xf32> to vector<1x256xf32>
    %16 = vector.extract_strided_slice %4 {offsets = [14, 0], sizes = [1, 256], strides = [1, 1]} : vector<16x256xf32> to vector<1x256xf32>
    %17 = vector.extract_strided_slice %4 {offsets = [3, 0], sizes = [1, 256], strides = [1, 1]} : vector<16x256xf32> to vector<1x256xf32>
    %18 = vector.extract_strided_slice %4 {offsets = [7, 0], sizes = [1, 256], strides = [1, 1]} : vector<16x256xf32> to vector<1x256xf32>
    %19 = vector.extract_strided_slice %4 {offsets = [11, 0], sizes = [1, 256], strides = [1, 1]} : vector<16x256xf32> to vector<1x256xf32>
    %20 = vector.extract_strided_slice %4 {offsets = [15, 0], sizes = [1, 256], strides = [1, 1]} : vector<16x256xf32> to vector<1x256xf32>
    %21 = tpu.concatenate %5, %6, %7, %8, %9, %10, %11, %12, %13, %14, %15, %16, %17, %18, %19, %20 in 0 : vector<1x256xf32>, vector<1x256xf32>, vector<1x256xf32>, vector<1x256xf32>, vector<1x256xf32>, vector<1x256xf32>, vector<1x256xf32>, vector<1x256xf32>, vector<1x256xf32>, vector<1x256xf32>, vector<1x256xf32>, vector<1x256xf32>, vector<1x256xf32>, vector<1x256xf32>, vector<1x256xf32>, vector<1x256xf32> -> vector<16x256xf32>
    %c0_5 = arith.constant 0 : index
    %c128 = arith.constant 128 : index
    %22 = vector.load %arg7[%c0_5, %c128] : memref<16x512xf32, #tpu.memory_space<vmem>>, vector<16x256xf32>
    tpu.vector_store %arg7[%c0_5, %c128], %21 {strides = array<i32>} : memref<16x512xf32, #tpu.memory_space<vmem>>, vector<16x256xf32>,
    %c0_6 = arith.constant 0 : index
    %c0_7 = arith.constant 0 : index
    %23 = vector.load %arg7[%c0_6, %c0_7] : memref<16x512xf32, #tpu.memory_space<vmem>>, vector<16x512xf32>
    %cst_8 = arith.constant 0.000000e+00 : f32
    %24 = vector.broadcast %cst_8 : f32 to vector<16x256xf32>
    %25 = vector.extract_strided_slice %23 {offsets = [0, 111], sizes = [16, 256], strides = [1, 1]} : vector<16x512xf32> to vector<16x256xf32>
    %26 = vector.extract_strided_slice %25 {offsets = [0, 0], sizes = [4, 256], strides = [1, 1]} : vector<16x256xf32> to vector<4x256xf32>
    %27 = tpu.concatenate %26, %26, %26, %26 in 0 : vector<4x256xf32>, vector<4x256xf32>, vector<4x256xf32>, vector<4x256xf32> -> vector<16x256xf32>
    %c0_9 = arith.constant 0 : index
    %c0_10 = arith.constant 0 : index
    %c0_11 = arith.constant 0 : index
    %28 = vector.load %arg2[%c0_9, %c0_10, %c0_11] : memref<36x16x256xf32, #tpu.memory_space<vmem>>, vector<1x16x256xf32>
    %29 = vector.shape_cast %28 : vector<1x16x256xf32> to vector<16x256xf32>
    %30 = arith.mulf %29, %27 : vector<16x256xf32>
    %31 = arith.addf %24, %30 : vector<16x256xf32>
    %32 = vector.extract_strided_slice %25 {offsets = [4, 0], sizes = [4, 256], strides = [1, 1]} : vector<16x256xf32> to vector<4x256xf32>
    %33 = tpu.concatenate %32, %32, %32, %32 in 0 : vector<4x256xf32>, vector<4x256xf32>, vector<4x256xf32>, vector<4x256xf32> -> vector<16x256xf32>
    %c1 = arith.constant 1 : index
    %c0_12 = arith.constant 0 : index
    %c0_13 = arith.constant 0 : index
    %34 = vector.load %arg2[%c1, %c0_12, %c0_13] : memref<36x16x256xf32, #tpu.memory_space<vmem>>, vector<1x16x256xf32>
    %35 = vector.shape_cast %34 : vector<1x16x256xf32> to vector<16x256xf32>
    %36 = arith.mulf %35, %33 : vector<16x256xf32>
    %37 = arith.addf %31, %36 : vector<16x256xf32>
    %38 = vector.extract_strided_slice %25 {offsets = [8, 0], sizes = [4, 256], strides = [1, 1]} : vector<16x256xf32> to vector<4x256xf32>
    %39 = tpu.concatenate %38, %38, %38, %38 in 0 : vector<4x256xf32>, vector<4x256xf32>, vector<4x256xf32>, vector<4x256xf32> -> vector<16x256xf32>
    %c2 = arith.constant 2 : index
    %c0_14 = arith.constant 0 : index
    %c0_15 = arith.constant 0 : index
    %40 = vector.load %arg2[%c2, %c0_14, %c0_15] : memref<36x16x256xf32, #tpu.memory_space<vmem>>, vector<1x16x256xf32>
    %41 = vector.shape_cast %40 : vector<1x16x256xf32> to vector<16x256xf32>
    %42 = arith.mulf %41, %39 : vector<16x256xf32>
    %43 = arith.addf %37, %42 : vector<16x256xf32>
    %44 = vector.extract_strided_slice %25 {offsets = [12, 0], sizes = [4, 256], strides = [1, 1]} : vector<16x256xf32> to vector<4x256xf32>
    %45 = tpu.concatenate %44, %44, %44, %44 in 0 : vector<4x256xf32>, vector<4x256xf32>, vector<4x256xf32>, vector<4x256xf32> -> vector<16x256xf32>
    %c3 = arith.constant 3 : index
    %c0_16 = arith.constant 0 : index
    %c0_17 = arith.constant 0 : index
    %46 = vector.load %arg2[%c3, %c0_16, %c0_17] : memref<36x16x256xf32, #tpu.memory_space<vmem>>, vector<1x16x256xf32>
    %47 = vector.shape_cast %46 : vector<1x16x256xf32> to vector<16x256xf32>
    %48 = arith.mulf %47, %45 : vector<16x256xf32>
    %49 = arith.addf %43, %48 : vector<16x256xf32>
    %50 = vector.extract_strided_slice %23 {offsets = [0, 112], sizes = [16, 256], strides = [1, 1]} : vector<16x512xf32> to vector<16x256xf32>
    %51 = vector.extract_strided_slice %50 {offsets = [0, 0], sizes = [4, 256], strides = [1, 1]} : vector<16x256xf32> to vector<4x256xf32>
    %52 = tpu.concatenate %51, %51, %51, %51 in 0 : vector<4x256xf32>, vector<4x256xf32>, vector<4x256xf32>, vector<4x256xf32> -> vector<16x256xf32>
    %c4 = arith.constant 4 : index
    %c0_18 = arith.constant 0 : index
    %c0_19 = arith.constant 0 : index
    %53 = vector.load %arg2[%c4, %c0_18, %c0_19] : memref<36x16x256xf32, #tpu.memory_space<vmem>>, vector<1x16x256xf32>
    %54 = vector.shape_cast %53 : vector<1x16x256xf32> to vector<16x256xf32>
    %55 = arith.mulf %54, %52 : vector<16x256xf32>
    %56 = arith.addf %49, %55 : vector<16x256xf32>
    %57 = vector.extract_strided_slice %50 {offsets = [4, 0], sizes = [4, 256], strides = [1, 1]} : vector<16x256xf32> to vector<4x256xf32>
    %58 = tpu.concatenate %57, %57, %57, %57 in 0 : vector<4x256xf32>, vector<4x256xf32>, vector<4x256xf32>, vector<4x256xf32> -> vector<16x256xf32>
    %c5 = arith.constant 5 : index
    %c0_20 = arith.constant 0 : index
    %c0_21 = arith.constant 0 : index
    %59 = vector.load %arg2[%c5, %c0_20, %c0_21] : memref<36x16x256xf32, #tpu.memory_space<vmem>>, vector<1x16x256xf32>
    %60 = vector.shape_cast %59 : vector<1x16x256xf32> to vector<16x256xf32>
    %61 = arith.mulf %60, %58 : vector<16x256xf32>
    %62 = arith.addf %56, %61 : vector<16x256xf32>
    %63 = vector.extract_strided_slice %50 {offsets = [8, 0], sizes = [4, 256], strides = [1, 1]} : vector<16x256xf32> to vector<4x256xf32>
    %64 = tpu.concatenate %63, %63, %63, %63 in 0 : vector<4x256xf32>, vector<4x256xf32>, vector<4x256xf32>, vector<4x256xf32> -> vector<16x256xf32>
    %c6 = arith.constant 6 : index
    %c0_22 = arith.constant 0 : index
    %c0_23 = arith.constant 0 : index
    %65 = vector.load %arg2[%c6, %c0_22, %c0_23] : memref<36x16x256xf32, #tpu.memory_space<vmem>>, vector<1x16x256xf32>
    %66 = vector.shape_cast %65 : vector<1x16x256xf32> to vector<16x256xf32>
    %67 = arith.mulf %66, %64 : vector<16x256xf32>
    %68 = arith.addf %62, %67 : vector<16x256xf32>
    %69 = vector.extract_strided_slice %50 {offsets = [12, 0], sizes = [4, 256], strides = [1, 1]} : vector<16x256xf32> to vector<4x256xf32>
    %70 = tpu.concatenate %69, %69, %69, %69 in 0 : vector<4x256xf32>, vector<4x256xf32>, vector<4x256xf32>, vector<4x256xf32> -> vector<16x256xf32>
    %c7 = arith.constant 7 : index
    %c0_24 = arith.constant 0 : index
    %c0_25 = arith.constant 0 : index
    %71 = vector.load %arg2[%c7, %c0_24, %c0_25] : memref<36x16x256xf32, #tpu.memory_space<vmem>>, vector<1x16x256xf32>
    %72 = vector.shape_cast %71 : vector<1x16x256xf32> to vector<16x256xf32>
    %73 = arith.mulf %72, %70 : vector<16x256xf32>
    %74 = arith.addf %68, %73 : vector<16x256xf32>
    %75 = vector.extract_strided_slice %23 {offsets = [0, 113], sizes = [16, 256], strides = [1, 1]} : vector<16x512xf32> to vector<16x256xf32>
    %76 = vector.extract_strided_slice %75 {offsets = [0, 0], sizes = [4, 256], strides = [1, 1]} : vector<16x256xf32> to vector<4x256xf32>
    %77 = tpu.concatenate %76, %76, %76, %76 in 0 : vector<4x256xf32>, vector<4x256xf32>, vector<4x256xf32>, vector<4x256xf32> -> vector<16x256xf32>
    %c8 = arith.constant 8 : index
    %c0_26 = arith.constant 0 : index
    %c0_27 = arith.constant 0 : index
    %78 = vector.load %arg2[%c8, %c0_26, %c0_27] : memref<36x16x256xf32, #tpu.memory_space<vmem>>, vector<1x16x256xf32>
    %79 = vector.shape_cast %78 : vector<1x16x256xf32> to vector<16x256xf32>
    %80 = arith.mulf %79, %77 : vector<16x256xf32>
    %81 = arith.addf %74, %80 : vector<16x256xf32>
    %82 = vector.extract_strided_slice %75 {offsets = [4, 0], sizes = [4, 256], strides = [1, 1]} : vector<16x256xf32> to vector<4x256xf32>
    %83 = tpu.concatenate %82, %82, %82, %82 in 0 : vector<4x256xf32>, vector<4x256xf32>, vector<4x256xf32>, vector<4x256xf32> -> vector<16x256xf32>
    %c9 = arith.constant 9 : index
    %c0_28 = arith.constant 0 : index
    %c0_29 = arith.constant 0 : index
    %84 = vector.load %arg2[%c9, %c0_28, %c0_29] : memref<36x16x256xf32, #tpu.memory_space<vmem>>, vector<1x16x256xf32>
    %85 = vector.shape_cast %84 : vector<1x16x256xf32> to vector<16x256xf32>
    %86 = arith.mulf %85, %83 : vector<16x256xf32>
    %87 = arith.addf %81, %86 : vector<16x256xf32>
    %88 = vector.extract_strided_slice %75 {offsets = [8, 0], sizes = [4, 256], strides = [1, 1]} : vector<16x256xf32> to vector<4x256xf32>
    %89 = tpu.concatenate %88, %88, %88, %88 in 0 : vector<4x256xf32>, vector<4x256xf32>, vector<4x256xf32>, vector<4x256xf32> -> vector<16x256xf32>
    %c10 = arith.constant 10 : index
    %c0_30 = arith.constant 0 : index
    %c0_31 = arith.constant 0 : index
    %90 = vector.load %arg2[%c10, %c0_30, %c0_31] : memref<36x16x256xf32, #tpu.memory_space<vmem>>, vector<1x16x256xf32>
    %91 = vector.shape_cast %90 : vector<1x16x256xf32> to vector<16x256xf32>
    %92 = arith.mulf %91, %89 : vector<16x256xf32>
    %93 = arith.addf %87, %92 : vector<16x256xf32>
    %94 = vector.extract_strided_slice %75 {offsets = [12, 0], sizes = [4, 256], strides = [1, 1]} : vector<16x256xf32> to vector<4x256xf32>
    %95 = tpu.concatenate %94, %94, %94, %94 in 0 : vector<4x256xf32>, vector<4x256xf32>, vector<4x256xf32>, vector<4x256xf32> -> vector<16x256xf32>
    %c11 = arith.constant 11 : index
    %c0_32 = arith.constant 0 : index
    %c0_33 = arith.constant 0 : index
    %96 = vector.load %arg2[%c11, %c0_32, %c0_33] : memref<36x16x256xf32, #tpu.memory_space<vmem>>, vector<1x16x256xf32>
    %97 = vector.shape_cast %96 : vector<1x16x256xf32> to vector<16x256xf32>
    %98 = arith.mulf %97, %95 : vector<16x256xf32>
    %99 = arith.addf %93, %98 : vector<16x256xf32>
    %100 = vector.extract_strided_slice %23 {offsets = [0, 127], sizes = [16, 256], strides = [1, 1]} : vector<16x512xf32> to vector<16x256xf32>
    %101 = vector.extract_strided_slice %100 {offsets = [0, 0], sizes = [4, 256], strides = [1, 1]} : vector<16x256xf32> to vector<4x256xf32>
    %102 = tpu.concatenate %101, %101, %101, %101 in 0 : vector<4x256xf32>, vector<4x256xf32>, vector<4x256xf32>, vector<4x256xf32> -> vector<16x256xf32>
    %c12 = arith.constant 12 : index
    %c0_34 = arith.constant 0 : index
    %c0_35 = arith.constant 0 : index
    %103 = vector.load %arg2[%c12, %c0_34, %c0_35] : memref<36x16x256xf32, #tpu.memory_space<vmem>>, vector<1x16x256xf32>
    %104 = vector.shape_cast %103 : vector<1x16x256xf32> to vector<16x256xf32>
    %105 = arith.mulf %104, %102 : vector<16x256xf32>
    %106 = arith.addf %99, %105 : vector<16x256xf32>
    %107 = vector.extract_strided_slice %100 {offsets = [4, 0], sizes = [4, 256], strides = [1, 1]} : vector<16x256xf32> to vector<4x256xf32>
    %108 = tpu.concatenate %107, %107, %107, %107 in 0 : vector<4x256xf32>, vector<4x256xf32>, vector<4x256xf32>, vector<4x256xf32> -> vector<16x256xf32>
    %c13 = arith.constant 13 : index
    %c0_36 = arith.constant 0 : index
    %c0_37 = arith.constant 0 : index
    %109 = vector.load %arg2[%c13, %c0_36, %c0_37] : memref<36x16x256xf32, #tpu.memory_space<vmem>>, vector<1x16x256xf32>
    %110 = vector.shape_cast %109 : vector<1x16x256xf32> to vector<16x256xf32>
    %111 = arith.mulf %110, %108 : vector<16x256xf32>
    %112 = arith.addf %106, %111 : vector<16x256xf32>
    %113 = vector.extract_strided_slice %100 {offsets = [8, 0], sizes = [4, 256], strides = [1, 1]} : vector<16x256xf32> to vector<4x256xf32>
    %114 = tpu.concatenate %113, %113, %113, %113 in 0 : vector<4x256xf32>, vector<4x256xf32>, vector<4x256xf32>, vector<4x256xf32> -> vector<16x256xf32>
    %c14 = arith.constant 14 : index
    %c0_38 = arith.constant 0 : index
    %c0_39 = arith.constant 0 : index
    %115 = vector.load %arg2[%c14, %c0_38, %c0_39] : memref<36x16x256xf32, #tpu.memory_space<vmem>>, vector<1x16x256xf32>
    %116 = vector.shape_cast %115 : vector<1x16x256xf32> to vector<16x256xf32>
    %117 = arith.mulf %116, %114 : vector<16x256xf32>
    %118 = arith.addf %112, %117 : vector<16x256xf32>
    %119 = vector.extract_strided_slice %100 {offsets = [12, 0], sizes = [4, 256], strides = [1, 1]} : vector<16x256xf32> to vector<4x256xf32>
    %120 = tpu.concatenate %119, %119, %119, %119 in 0 : vector<4x256xf32>, vector<4x256xf32>, vector<4x256xf32>, vector<4x256xf32> -> vector<16x256xf32>
    %c15 = arith.constant 15 : index
    %c0_40 = arith.constant 0 : index
    %c0_41 = arith.constant 0 : index
    %121 = vector.load %arg2[%c15, %c0_40, %c0_41] : memref<36x16x256xf32, #tpu.memory_space<vmem>>, vector<1x16x256xf32>
    %122 = vector.shape_cast %121 : vector<1x16x256xf32> to vector<16x256xf32>
    %123 = arith.mulf %122, %120 : vector<16x256xf32>
    %124 = arith.addf %118, %123 : vector<16x256xf32>
    %125 = vector.extract_strided_slice %23 {offsets = [0, 128], sizes = [16, 256], strides = [1, 1]} : vector<16x512xf32> to vector<16x256xf32>
    %126 = vector.extract_strided_slice %125 {offsets = [0, 0], sizes = [4, 256], strides = [1, 1]} : vector<16x256xf32> to vector<4x256xf32>
    %127 = tpu.concatenate %126, %126, %126, %126 in 0 : vector<4x256xf32>, vector<4x256xf32>, vector<4x256xf32>, vector<4x256xf32> -> vector<16x256xf32>
    %c16 = arith.constant 16 : index
    %c0_42 = arith.constant 0 : index
    %c0_43 = arith.constant 0 : index
    %128 = vector.load %arg2[%c16, %c0_42, %c0_43] : memref<36x16x256xf32, #tpu.memory_space<vmem>>, vector<1x16x256xf32>
    %129 = vector.shape_cast %128 : vector<1x16x256xf32> to vector<16x256xf32>
    %130 = arith.mulf %129, %127 : vector<16x256xf32>
    %131 = arith.addf %124, %130 : vector<16x256xf32>
    %132 = vector.extract_strided_slice %125 {offsets = [4, 0], sizes = [4, 256], strides = [1, 1]} : vector<16x256xf32> to vector<4x256xf32>
    %133 = tpu.concatenate %132, %132, %132, %132 in 0 : vector<4x256xf32>, vector<4x256xf32>, vector<4x256xf32>, vector<4x256xf32> -> vector<16x256xf32>
    %c17 = arith.constant 17 : index
    %c0_44 = arith.constant 0 : index
    %c0_45 = arith.constant 0 : index
    %134 = vector.load %arg2[%c17, %c0_44, %c0_45] : memref<36x16x256xf32, #tpu.memory_space<vmem>>, vector<1x16x256xf32>
    %135 = vector.shape_cast %134 : vector<1x16x256xf32> to vector<16x256xf32>
    %136 = arith.mulf %135, %133 : vector<16x256xf32>
    %137 = arith.addf %131, %136 : vector<16x256xf32>
    %138 = vector.extract_strided_slice %125 {offsets = [8, 0], sizes = [4, 256], strides = [1, 1]} : vector<16x256xf32> to vector<4x256xf32>
    %139 = tpu.concatenate %138, %138, %138, %138 in 0 : vector<4x256xf32>, vector<4x256xf32>, vector<4x256xf32>, vector<4x256xf32> -> vector<16x256xf32>
    %c18 = arith.constant 18 : index
    %c0_46 = arith.constant 0 : index
    %c0_47 = arith.constant 0 : index
    %140 = vector.load %arg2[%c18, %c0_46, %c0_47] : memref<36x16x256xf32, #tpu.memory_space<vmem>>, vector<1x16x256xf32>
    %141 = vector.shape_cast %140 : vector<1x16x256xf32> to vector<16x256xf32>
    %142 = arith.mulf %141, %139 : vector<16x256xf32>
    %143 = arith.addf %137, %142 : vector<16x256xf32>
    %144 = vector.extract_strided_slice %125 {offsets = [12, 0], sizes = [4, 256], strides = [1, 1]} : vector<16x256xf32> to vector<4x256xf32>
    %145 = tpu.concatenate %144, %144, %144, %144 in 0 : vector<4x256xf32>, vector<4x256xf32>, vector<4x256xf32>, vector<4x256xf32> -> vector<16x256xf32>
    %c19 = arith.constant 19 : index
    %c0_48 = arith.constant 0 : index
    %c0_49 = arith.constant 0 : index
    %146 = vector.load %arg2[%c19, %c0_48, %c0_49] : memref<36x16x256xf32, #tpu.memory_space<vmem>>, vector<1x16x256xf32>
    %147 = vector.shape_cast %146 : vector<1x16x256xf32> to vector<16x256xf32>
    %148 = arith.mulf %147, %145 : vector<16x256xf32>
    %149 = arith.addf %143, %148 : vector<16x256xf32>
    %150 = vector.extract_strided_slice %23 {offsets = [0, 129], sizes = [16, 256], strides = [1, 1]} : vector<16x512xf32> to vector<16x256xf32>
    %151 = vector.extract_strided_slice %150 {offsets = [0, 0], sizes = [4, 256], strides = [1, 1]} : vector<16x256xf32> to vector<4x256xf32>
    %152 = tpu.concatenate %151, %151, %151, %151 in 0 : vector<4x256xf32>, vector<4x256xf32>, vector<4x256xf32>, vector<4x256xf32> -> vector<16x256xf32>
    %c20 = arith.constant 20 : index
    %c0_50 = arith.constant 0 : index
    %c0_51 = arith.constant 0 : index
    %153 = vector.load %arg2[%c20, %c0_50, %c0_51] : memref<36x16x256xf32, #tpu.memory_space<vmem>>, vector<1x16x256xf32>
    %154 = vector.shape_cast %153 : vector<1x16x256xf32> to vector<16x256xf32>
    %155 = arith.mulf %154, %152 : vector<16x256xf32>
    %156 = arith.addf %149, %155 : vector<16x256xf32>
    %157 = vector.extract_strided_slice %150 {offsets = [4, 0], sizes = [4, 256], strides = [1, 1]} : vector<16x256xf32> to vector<4x256xf32>
    %158 = tpu.concatenate %157, %157, %157, %157 in 0 : vector<4x256xf32>, vector<4x256xf32>, vector<4x256xf32>, vector<4x256xf32> -> vector<16x256xf32>
    %c21 = arith.constant 21 : index
    %c0_52 = arith.constant 0 : index
    %c0_53 = arith.constant 0 : index
    %159 = vector.load %arg2[%c21, %c0_52, %c0_53] : memref<36x16x256xf32, #tpu.memory_space<vmem>>, vector<1x16x256xf32>
    %160 = vector.shape_cast %159 : vector<1x16x256xf32> to vector<16x256xf32>
    %161 = arith.mulf %160, %158 : vector<16x256xf32>
    %162 = arith.addf %156, %161 : vector<16x256xf32>
    %163 = vector.extract_strided_slice %150 {offsets = [8, 0], sizes = [4, 256], strides = [1, 1]} : vector<16x256xf32> to vector<4x256xf32>
    %164 = tpu.concatenate %163, %163, %163, %163 in 0 : vector<4x256xf32>, vector<4x256xf32>, vector<4x256xf32>, vector<4x256xf32> -> vector<16x256xf32>
    %c22 = arith.constant 22 : index
    %c0_54 = arith.constant 0 : index
    %c0_55 = arith.constant 0 : index
    %165 = vector.load %arg2[%c22, %c0_54, %c0_55] : memref<36x16x256xf32, #tpu.memory_space<vmem>>, vector<1x16x256xf32>
    %166 = vector.shape_cast %165 : vector<1x16x256xf32> to vector<16x256xf32>
    %167 = arith.mulf %166, %164 : vector<16x256xf32>
    %168 = arith.addf %162, %167 : vector<16x256xf32>
    %169 = vector.extract_strided_slice %150 {offsets = [12, 0], sizes = [4, 256], strides = [1, 1]} : vector<16x256xf32> to vector<4x256xf32>
    %170 = tpu.concatenate %169, %169, %169, %169 in 0 : vector<4x256xf32>, vector<4x256xf32>, vector<4x256xf32>, vector<4x256xf32> -> vector<16x256xf32>
    %c23 = arith.constant 23 : index
    %c0_56 = arith.constant 0 : index
    %c0_57 = arith.constant 0 : index
    %171 = vector.load %arg2[%c23, %c0_56, %c0_57] : memref<36x16x256xf32, #tpu.memory_space<vmem>>, vector<1x16x256xf32>
    %172 = vector.shape_cast %171 : vector<1x16x256xf32> to vector<16x256xf32>
    %173 = arith.mulf %172, %170 : vector<16x256xf32>
    %174 = arith.addf %168, %173 : vector<16x256xf32>
    %175 = vector.extract_strided_slice %23 {offsets = [0, 143], sizes = [16, 256], strides = [1, 1]} : vector<16x512xf32> to vector<16x256xf32>
    %176 = vector.extract_strided_slice %175 {offsets = [0, 0], sizes = [4, 256], strides = [1, 1]} : vector<16x256xf32> to vector<4x256xf32>
    %177 = tpu.concatenate %176, %176, %176, %176 in 0 : vector<4x256xf32>, vector<4x256xf32>, vector<4x256xf32>, vector<4x256xf32> -> vector<16x256xf32>
    %c24 = arith.constant 24 : index
    %c0_58 = arith.constant 0 : index
    %c0_59 = arith.constant 0 : index
    %178 = vector.load %arg2[%c24, %c0_58, %c0_59] : memref<36x16x256xf32, #tpu.memory_space<vmem>>, vector<1x16x256xf32>
    %179 = vector.shape_cast %178 : vector<1x16x256xf32> to vector<16x256xf32>
    %180 = arith.mulf %179, %177 : vector<16x256xf32>
    %181 = arith.addf %174, %180 : vector<16x256xf32>
    %182 = vector.extract_strided_slice %175 {offsets = [4, 0], sizes = [4, 256], strides = [1, 1]} : vector<16x256xf32> to vector<4x256xf32>
    %183 = tpu.concatenate %182, %182, %182, %182 in 0 : vector<4x256xf32>, vector<4x256xf32>, vector<4x256xf32>, vector<4x256xf32> -> vector<16x256xf32>
    %c25 = arith.constant 25 : index
    %c0_60 = arith.constant 0 : index
    %c0_61 = arith.constant 0 : index
    %184 = vector.load %arg2[%c25, %c0_60, %c0_61] : memref<36x16x256xf32, #tpu.memory_space<vmem>>, vector<1x16x256xf32>
    %185 = vector.shape_cast %184 : vector<1x16x256xf32> to vector<16x256xf32>
    %186 = arith.mulf %185, %183 : vector<16x256xf32>
    %187 = arith.addf %181, %186 : vector<16x256xf32>
    %188 = vector.extract_strided_slice %175 {offsets = [8, 0], sizes = [4, 256], strides = [1, 1]} : vector<16x256xf32> to vector<4x256xf32>
    %189 = tpu.concatenate %188, %188, %188, %188 in 0 : vector<4x256xf32>, vector<4x256xf32>, vector<4x256xf32>, vector<4x256xf32> -> vector<16x256xf32>
    %c26 = arith.constant 26 : index
    %c0_62 = arith.constant 0 : index
    %c0_63 = arith.constant 0 : index
    %190 = vector.load %arg2[%c26, %c0_62, %c0_63] : memref<36x16x256xf32, #tpu.memory_space<vmem>>, vector<1x16x256xf32>
    %191 = vector.shape_cast %190 : vector<1x16x256xf32> to vector<16x256xf32>
    %192 = arith.mulf %191, %189 : vector<16x256xf32>
    %193 = arith.addf %187, %192 : vector<16x256xf32>
    %194 = vector.extract_strided_slice %175 {offsets = [12, 0], sizes = [4, 256], strides = [1, 1]} : vector<16x256xf32> to vector<4x256xf32>
    %195 = tpu.concatenate %194, %194, %194, %194 in 0 : vector<4x256xf32>, vector<4x256xf32>, vector<4x256xf32>, vector<4x256xf32> -> vector<16x256xf32>
    %c27 = arith.constant 27 : index
    %c0_64 = arith.constant 0 : index
    %c0_65 = arith.constant 0 : index
    %196 = vector.load %arg2[%c27, %c0_64, %c0_65] : memref<36x16x256xf32, #tpu.memory_space<vmem>>, vector<1x16x256xf32>
    %197 = vector.shape_cast %196 : vector<1x16x256xf32> to vector<16x256xf32>
    %198 = arith.mulf %197, %195 : vector<16x256xf32>
    %199 = arith.addf %193, %198 : vector<16x256xf32>
    %200 = vector.extract_strided_slice %23 {offsets = [0, 144], sizes = [16, 256], strides = [1, 1]} : vector<16x512xf32> to vector<16x256xf32>
    %201 = vector.extract_strided_slice %200 {offsets = [0, 0], sizes = [4, 256], strides = [1, 1]} : vector<16x256xf32> to vector<4x256xf32>
    %202 = tpu.concatenate %201, %201, %201, %201 in 0 : vector<4x256xf32>, vector<4x256xf32>, vector<4x256xf32>, vector<4x256xf32> -> vector<16x256xf32>
    %c28 = arith.constant 28 : index
    %c0_66 = arith.constant 0 : index
    %c0_67 = arith.constant 0 : index
    %203 = vector.load %arg2[%c28, %c0_66, %c0_67] : memref<36x16x256xf32, #tpu.memory_space<vmem>>, vector<1x16x256xf32>
    %204 = vector.shape_cast %203 : vector<1x16x256xf32> to vector<16x256xf32>
    %205 = arith.mulf %204, %202 : vector<16x256xf32>
    %206 = arith.addf %199, %205 : vector<16x256xf32>
    %207 = vector.extract_strided_slice %200 {offsets = [4, 0], sizes = [4, 256], strides = [1, 1]} : vector<16x256xf32> to vector<4x256xf32>
    %208 = tpu.concatenate %207, %207, %207, %207 in 0 : vector<4x256xf32>, vector<4x256xf32>, vector<4x256xf32>, vector<4x256xf32> -> vector<16x256xf32>
    %c29 = arith.constant 29 : index
    %c0_68 = arith.constant 0 : index
    %c0_69 = arith.constant 0 : index
    %209 = vector.load %arg2[%c29, %c0_68, %c0_69] : memref<36x16x256xf32, #tpu.memory_space<vmem>>, vector<1x16x256xf32>
    %210 = vector.shape_cast %209 : vector<1x16x256xf32> to vector<16x256xf32>
    %211 = arith.mulf %210, %208 : vector<16x256xf32>
    %212 = arith.addf %206, %211 : vector<16x256xf32>
    %213 = vector.extract_strided_slice %200 {offsets = [8, 0], sizes = [4, 256], strides = [1, 1]} : vector<16x256xf32> to vector<4x256xf32>
    %214 = tpu.concatenate %213, %213, %213, %213 in 0 : vector<4x256xf32>, vector<4x256xf32>, vector<4x256xf32>, vector<4x256xf32> -> vector<16x256xf32>
    %c30 = arith.constant 30 : index
    %c0_70 = arith.constant 0 : index
    %c0_71 = arith.constant 0 : index
    %215 = vector.load %arg2[%c30, %c0_70, %c0_71] : memref<36x16x256xf32, #tpu.memory_space<vmem>>, vector<1x16x256xf32>
    %216 = vector.shape_cast %215 : vector<1x16x256xf32> to vector<16x256xf32>
    %217 = arith.mulf %216, %214 : vector<16x256xf32>
    %218 = arith.addf %212, %217 : vector<16x256xf32>
    %219 = vector.extract_strided_slice %200 {offsets = [12, 0], sizes = [4, 256], strides = [1, 1]} : vector<16x256xf32> to vector<4x256xf32>
    %220 = tpu.concatenate %219, %219, %219, %219 in 0 : vector<4x256xf32>, vector<4x256xf32>, vector<4x256xf32>, vector<4x256xf32> -> vector<16x256xf32>
    %c31 = arith.constant 31 : index
    %c0_72 = arith.constant 0 : index
    %c0_73 = arith.constant 0 : index
    %221 = vector.load %arg2[%c31, %c0_72, %c0_73] : memref<36x16x256xf32, #tpu.memory_space<vmem>>, vector<1x16x256xf32>
    %222 = vector.shape_cast %221 : vector<1x16x256xf32> to vector<16x256xf32>
    %223 = arith.mulf %222, %220 : vector<16x256xf32>
    %224 = arith.addf %218, %223 : vector<16x256xf32>
    %225 = vector.extract_strided_slice %23 {offsets = [0, 145], sizes = [16, 256], strides = [1, 1]} : vector<16x512xf32> to vector<16x256xf32>
    %226 = vector.extract_strided_slice %225 {offsets = [0, 0], sizes = [4, 256], strides = [1, 1]} : vector<16x256xf32> to vector<4x256xf32>
    %227 = tpu.concatenate %226, %226, %226, %226 in 0 : vector<4x256xf32>, vector<4x256xf32>, vector<4x256xf32>, vector<4x256xf32> -> vector<16x256xf32>
    %c32 = arith.constant 32 : index
    %c0_74 = arith.constant 0 : index
    %c0_75 = arith.constant 0 : index
    %228 = vector.load %arg2[%c32, %c0_74, %c0_75] : memref<36x16x256xf32, #tpu.memory_space<vmem>>, vector<1x16x256xf32>
    %229 = vector.shape_cast %228 : vector<1x16x256xf32> to vector<16x256xf32>
    %230 = arith.mulf %229, %227 : vector<16x256xf32>
    %231 = arith.addf %224, %230 : vector<16x256xf32>
    %232 = vector.extract_strided_slice %225 {offsets = [4, 0], sizes = [4, 256], strides = [1, 1]} : vector<16x256xf32> to vector<4x256xf32>
    %233 = tpu.concatenate %232, %232, %232, %232 in 0 : vector<4x256xf32>, vector<4x256xf32>, vector<4x256xf32>, vector<4x256xf32> -> vector<16x256xf32>
    %c33 = arith.constant 33 : index
    %c0_76 = arith.constant 0 : index
    %c0_77 = arith.constant 0 : index
    %234 = vector.load %arg2[%c33, %c0_76, %c0_77] : memref<36x16x256xf32, #tpu.memory_space<vmem>>, vector<1x16x256xf32>
    %235 = vector.shape_cast %234 : vector<1x16x256xf32> to vector<16x256xf32>
    %236 = arith.mulf %235, %233 : vector<16x256xf32>
    %237 = arith.addf %231, %236 : vector<16x256xf32>
    %238 = vector.extract_strided_slice %225 {offsets = [8, 0], sizes = [4, 256], strides = [1, 1]} : vector<16x256xf32> to vector<4x256xf32>
    %239 = tpu.concatenate %238, %238, %238, %238 in 0 : vector<4x256xf32>, vector<4x256xf32>, vector<4x256xf32>, vector<4x256xf32> -> vector<16x256xf32>
    %c34 = arith.constant 34 : index
    %c0_78 = arith.constant 0 : index
    %c0_79 = arith.constant 0 : index
    %240 = vector.load %arg2[%c34, %c0_78, %c0_79] : memref<36x16x256xf32, #tpu.memory_space<vmem>>, vector<1x16x256xf32>
    %241 = vector.shape_cast %240 : vector<1x16x256xf32> to vector<16x256xf32>
    %242 = arith.mulf %241, %239 : vector<16x256xf32>
    %243 = arith.addf %237, %242 : vector<16x256xf32>
    %244 = vector.extract_strided_slice %225 {offsets = [12, 0], sizes = [4, 256], strides = [1, 1]} : vector<16x256xf32> to vector<4x256xf32>
    %245 = tpu.concatenate %244, %244, %244, %244 in 0 : vector<4x256xf32>, vector<4x256xf32>, vector<4x256xf32>, vector<4x256xf32> -> vector<16x256xf32>
    %c35 = arith.constant 35 : index
    %c0_80 = arith.constant 0 : index
    %c0_81 = arith.constant 0 : index
    %246 = vector.load %arg2[%c35, %c0_80, %c0_81] : memref<36x16x256xf32, #tpu.memory_space<vmem>>, vector<1x16x256xf32>
    %247 = vector.shape_cast %246 : vector<1x16x256xf32> to vector<16x256xf32>
    %248 = arith.mulf %247, %245 : vector<16x256xf32>
    %249 = arith.addf %243, %248 : vector<16x256xf32>
    %c0_82 = arith.constant 0 : index
    %c0_83 = arith.constant 0 : index
    %250 = vector.load %arg3[%c0_82, %c0_83] : memref<16x256xf32, #tpu.memory_space<vmem>>, vector<16x256xf32>
    %251 = arith.addf %249, %250 : vector<16x256xf32>
    %cst_84 = arith.constant 0.000000e+00 : f32
    %252 = vector.broadcast %cst_84 : f32 to vector<16x256xf32>
    %253 = arith.maximumf %251, %252 : vector<16x256xf32>
    %c0_85 = arith.constant 0 : index
    %c128_86 = arith.constant 128 : index
    %254 = vector.load %arg7[%c0_85, %c128_86] : memref<16x512xf32, #tpu.memory_space<vmem>>, vector<16x256xf32>
    tpu.vector_store %arg7[%c0_85, %c128_86], %253 {strides = array<i32>} : memref<16x512xf32, #tpu.memory_space<vmem>>, vector<16x256xf32>,
    %c0_87 = arith.constant 0 : index
    %c0_88 = arith.constant 0 : index
    %255 = vector.load %arg7[%c0_87, %c0_88] : memref<16x512xf32, #tpu.memory_space<vmem>>, vector<16x512xf32>
    %cst_89 = arith.constant 0.000000e+00 : f32
    %256 = vector.broadcast %cst_89 : f32 to vector<16x256xf32>
    %257 = vector.extract_strided_slice %255 {offsets = [0, 111], sizes = [16, 256], strides = [1, 1]} : vector<16x512xf32> to vector<16x256xf32>
    %258 = vector.extract_strided_slice %257 {offsets = [0, 0], sizes = [4, 256], strides = [1, 1]} : vector<16x256xf32> to vector<4x256xf32>
    %259 = tpu.concatenate %258, %258, %258, %258 in 0 : vector<4x256xf32>, vector<4x256xf32>, vector<4x256xf32>, vector<4x256xf32> -> vector<16x256xf32>
    %c0_90 = arith.constant 0 : index
    %c0_91 = arith.constant 0 : index
    %c0_92 = arith.constant 0 : index
    %260 = vector.load %arg4[%c0_90, %c0_91, %c0_92] : memref<36x16x256xf32, #tpu.memory_space<vmem>>, vector<1x16x256xf32>
    %261 = vector.shape_cast %260 : vector<1x16x256xf32> to vector<16x256xf32>
    %262 = arith.mulf %261, %259 : vector<16x256xf32>
    %263 = arith.addf %256, %262 : vector<16x256xf32>
    %264 = vector.extract_strided_slice %257 {offsets = [4, 0], sizes = [4, 256], strides = [1, 1]} : vector<16x256xf32> to vector<4x256xf32>
    %265 = tpu.concatenate %264, %264, %264, %264 in 0 : vector<4x256xf32>, vector<4x256xf32>, vector<4x256xf32>, vector<4x256xf32> -> vector<16x256xf32>
    %c1_93 = arith.constant 1 : index
    %c0_94 = arith.constant 0 : index
    %c0_95 = arith.constant 0 : index
    %266 = vector.load %arg4[%c1_93, %c0_94, %c0_95] : memref<36x16x256xf32, #tpu.memory_space<vmem>>, vector<1x16x256xf32>
    %267 = vector.shape_cast %266 : vector<1x16x256xf32> to vector<16x256xf32>
    %268 = arith.mulf %267, %265 : vector<16x256xf32>
    %269 = arith.addf %263, %268 : vector<16x256xf32>
    %270 = vector.extract_strided_slice %257 {offsets = [8, 0], sizes = [4, 256], strides = [1, 1]} : vector<16x256xf32> to vector<4x256xf32>
    %271 = tpu.concatenate %270, %270, %270, %270 in 0 : vector<4x256xf32>, vector<4x256xf32>, vector<4x256xf32>, vector<4x256xf32> -> vector<16x256xf32>
    %c2_96 = arith.constant 2 : index
    %c0_97 = arith.constant 0 : index
    %c0_98 = arith.constant 0 : index
    %272 = vector.load %arg4[%c2_96, %c0_97, %c0_98] : memref<36x16x256xf32, #tpu.memory_space<vmem>>, vector<1x16x256xf32>
    %273 = vector.shape_cast %272 : vector<1x16x256xf32> to vector<16x256xf32>
    %274 = arith.mulf %273, %271 : vector<16x256xf32>
    %275 = arith.addf %269, %274 : vector<16x256xf32>
    %276 = vector.extract_strided_slice %257 {offsets = [12, 0], sizes = [4, 256], strides = [1, 1]} : vector<16x256xf32> to vector<4x256xf32>
    %277 = tpu.concatenate %276, %276, %276, %276 in 0 : vector<4x256xf32>, vector<4x256xf32>, vector<4x256xf32>, vector<4x256xf32> -> vector<16x256xf32>
    %c3_99 = arith.constant 3 : index
    %c0_100 = arith.constant 0 : index
    %c0_101 = arith.constant 0 : index
    %278 = vector.load %arg4[%c3_99, %c0_100, %c0_101] : memref<36x16x256xf32, #tpu.memory_space<vmem>>, vector<1x16x256xf32>
    %279 = vector.shape_cast %278 : vector<1x16x256xf32> to vector<16x256xf32>
    %280 = arith.mulf %279, %277 : vector<16x256xf32>
    %281 = arith.addf %275, %280 : vector<16x256xf32>
    %282 = vector.extract_strided_slice %255 {offsets = [0, 112], sizes = [16, 256], strides = [1, 1]} : vector<16x512xf32> to vector<16x256xf32>
    %283 = vector.extract_strided_slice %282 {offsets = [0, 0], sizes = [4, 256], strides = [1, 1]} : vector<16x256xf32> to vector<4x256xf32>
    %284 = tpu.concatenate %283, %283, %283, %283 in 0 : vector<4x256xf32>, vector<4x256xf32>, vector<4x256xf32>, vector<4x256xf32> -> vector<16x256xf32>
    %c4_102 = arith.constant 4 : index
    %c0_103 = arith.constant 0 : index
    %c0_104 = arith.constant 0 : index
    %285 = vector.load %arg4[%c4_102, %c0_103, %c0_104] : memref<36x16x256xf32, #tpu.memory_space<vmem>>, vector<1x16x256xf32>
    %286 = vector.shape_cast %285 : vector<1x16x256xf32> to vector<16x256xf32>
    %287 = arith.mulf %286, %284 : vector<16x256xf32>
    %288 = arith.addf %281, %287 : vector<16x256xf32>
    %289 = vector.extract_strided_slice %282 {offsets = [4, 0], sizes = [4, 256], strides = [1, 1]} : vector<16x256xf32> to vector<4x256xf32>
    %290 = tpu.concatenate %289, %289, %289, %289 in 0 : vector<4x256xf32>, vector<4x256xf32>, vector<4x256xf32>, vector<4x256xf32> -> vector<16x256xf32>
    %c5_105 = arith.constant 5 : index
    %c0_106 = arith.constant 0 : index
    %c0_107 = arith.constant 0 : index
    %291 = vector.load %arg4[%c5_105, %c0_106, %c0_107] : memref<36x16x256xf32, #tpu.memory_space<vmem>>, vector<1x16x256xf32>
    %292 = vector.shape_cast %291 : vector<1x16x256xf32> to vector<16x256xf32>
    %293 = arith.mulf %292, %290 : vector<16x256xf32>
    %294 = arith.addf %288, %293 : vector<16x256xf32>
    %295 = vector.extract_strided_slice %282 {offsets = [8, 0], sizes = [4, 256], strides = [1, 1]} : vector<16x256xf32> to vector<4x256xf32>
    %296 = tpu.concatenate %295, %295, %295, %295 in 0 : vector<4x256xf32>, vector<4x256xf32>, vector<4x256xf32>, vector<4x256xf32> -> vector<16x256xf32>
    %c6_108 = arith.constant 6 : index
    %c0_109 = arith.constant 0 : index
    %c0_110 = arith.constant 0 : index
    %297 = vector.load %arg4[%c6_108, %c0_109, %c0_110] : memref<36x16x256xf32, #tpu.memory_space<vmem>>, vector<1x16x256xf32>
    %298 = vector.shape_cast %297 : vector<1x16x256xf32> to vector<16x256xf32>
    %299 = arith.mulf %298, %296 : vector<16x256xf32>
    %300 = arith.addf %294, %299 : vector<16x256xf32>
    %301 = vector.extract_strided_slice %282 {offsets = [12, 0], sizes = [4, 256], strides = [1, 1]} : vector<16x256xf32> to vector<4x256xf32>
    %302 = tpu.concatenate %301, %301, %301, %301 in 0 : vector<4x256xf32>, vector<4x256xf32>, vector<4x256xf32>, vector<4x256xf32> -> vector<16x256xf32>
    %c7_111 = arith.constant 7 : index
    %c0_112 = arith.constant 0 : index
    %c0_113 = arith.constant 0 : index
    %303 = vector.load %arg4[%c7_111, %c0_112, %c0_113] : memref<36x16x256xf32, #tpu.memory_space<vmem>>, vector<1x16x256xf32>
    %304 = vector.shape_cast %303 : vector<1x16x256xf32> to vector<16x256xf32>
    %305 = arith.mulf %304, %302 : vector<16x256xf32>
    %306 = arith.addf %300, %305 : vector<16x256xf32>
    %307 = vector.extract_strided_slice %255 {offsets = [0, 113], sizes = [16, 256], strides = [1, 1]} : vector<16x512xf32> to vector<16x256xf32>
    %308 = vector.extract_strided_slice %307 {offsets = [0, 0], sizes = [4, 256], strides = [1, 1]} : vector<16x256xf32> to vector<4x256xf32>
    %309 = tpu.concatenate %308, %308, %308, %308 in 0 : vector<4x256xf32>, vector<4x256xf32>, vector<4x256xf32>, vector<4x256xf32> -> vector<16x256xf32>
    %c8_114 = arith.constant 8 : index
    %c0_115 = arith.constant 0 : index
    %c0_116 = arith.constant 0 : index
    %310 = vector.load %arg4[%c8_114, %c0_115, %c0_116] : memref<36x16x256xf32, #tpu.memory_space<vmem>>, vector<1x16x256xf32>
    %311 = vector.shape_cast %310 : vector<1x16x256xf32> to vector<16x256xf32>
    %312 = arith.mulf %311, %309 : vector<16x256xf32>
    %313 = arith.addf %306, %312 : vector<16x256xf32>
    %314 = vector.extract_strided_slice %307 {offsets = [4, 0], sizes = [4, 256], strides = [1, 1]} : vector<16x256xf32> to vector<4x256xf32>
    %315 = tpu.concatenate %314, %314, %314, %314 in 0 : vector<4x256xf32>, vector<4x256xf32>, vector<4x256xf32>, vector<4x256xf32> -> vector<16x256xf32>
    %c9_117 = arith.constant 9 : index
    %c0_118 = arith.constant 0 : index
    %c0_119 = arith.constant 0 : index
    %316 = vector.load %arg4[%c9_117, %c0_118, %c0_119] : memref<36x16x256xf32, #tpu.memory_space<vmem>>, vector<1x16x256xf32>
    %317 = vector.shape_cast %316 : vector<1x16x256xf32> to vector<16x256xf32>
    %318 = arith.mulf %317, %315 : vector<16x256xf32>
    %319 = arith.addf %313, %318 : vector<16x256xf32>
    %320 = vector.extract_strided_slice %307 {offsets = [8, 0], sizes = [4, 256], strides = [1, 1]} : vector<16x256xf32> to vector<4x256xf32>
    %321 = tpu.concatenate %320, %320, %320, %320 in 0 : vector<4x256xf32>, vector<4x256xf32>, vector<4x256xf32>, vector<4x256xf32> -> vector<16x256xf32>
    %c10_120 = arith.constant 10 : index
    %c0_121 = arith.constant 0 : index
    %c0_122 = arith.constant 0 : index
    %322 = vector.load %arg4[%c10_120, %c0_121, %c0_122] : memref<36x16x256xf32, #tpu.memory_space<vmem>>, vector<1x16x256xf32>
    %323 = vector.shape_cast %322 : vector<1x16x256xf32> to vector<16x256xf32>
    %324 = arith.mulf %323, %321 : vector<16x256xf32>
    %325 = arith.addf %319, %324 : vector<16x256xf32>
    %326 = vector.extract_strided_slice %307 {offsets = [12, 0], sizes = [4, 256], strides = [1, 1]} : vector<16x256xf32> to vector<4x256xf32>
    %327 = tpu.concatenate %326, %326, %326, %326 in 0 : vector<4x256xf32>, vector<4x256xf32>, vector<4x256xf32>, vector<4x256xf32> -> vector<16x256xf32>
    %c11_123 = arith.constant 11 : index
    %c0_124 = arith.constant 0 : index
    %c0_125 = arith.constant 0 : index
    %328 = vector.load %arg4[%c11_123, %c0_124, %c0_125] : memref<36x16x256xf32, #tpu.memory_space<vmem>>, vector<1x16x256xf32>
    %329 = vector.shape_cast %328 : vector<1x16x256xf32> to vector<16x256xf32>
    %330 = arith.mulf %329, %327 : vector<16x256xf32>
    %331 = arith.addf %325, %330 : vector<16x256xf32>
    %332 = vector.extract_strided_slice %255 {offsets = [0, 127], sizes = [16, 256], strides = [1, 1]} : vector<16x512xf32> to vector<16x256xf32>
    %333 = vector.extract_strided_slice %332 {offsets = [0, 0], sizes = [4, 256], strides = [1, 1]} : vector<16x256xf32> to vector<4x256xf32>
    %334 = tpu.concatenate %333, %333, %333, %333 in 0 : vector<4x256xf32>, vector<4x256xf32>, vector<4x256xf32>, vector<4x256xf32> -> vector<16x256xf32>
    %c12_126 = arith.constant 12 : index
    %c0_127 = arith.constant 0 : index
    %c0_128 = arith.constant 0 : index
    %335 = vector.load %arg4[%c12_126, %c0_127, %c0_128] : memref<36x16x256xf32, #tpu.memory_space<vmem>>, vector<1x16x256xf32>
    %336 = vector.shape_cast %335 : vector<1x16x256xf32> to vector<16x256xf32>
    %337 = arith.mulf %336, %334 : vector<16x256xf32>
    %338 = arith.addf %331, %337 : vector<16x256xf32>
    %339 = vector.extract_strided_slice %332 {offsets = [4, 0], sizes = [4, 256], strides = [1, 1]} : vector<16x256xf32> to vector<4x256xf32>
    %340 = tpu.concatenate %339, %339, %339, %339 in 0 : vector<4x256xf32>, vector<4x256xf32>, vector<4x256xf32>, vector<4x256xf32> -> vector<16x256xf32>
    %c13_129 = arith.constant 13 : index
    %c0_130 = arith.constant 0 : index
    %c0_131 = arith.constant 0 : index
    %341 = vector.load %arg4[%c13_129, %c0_130, %c0_131] : memref<36x16x256xf32, #tpu.memory_space<vmem>>, vector<1x16x256xf32>
    %342 = vector.shape_cast %341 : vector<1x16x256xf32> to vector<16x256xf32>
    %343 = arith.mulf %342, %340 : vector<16x256xf32>
    %344 = arith.addf %338, %343 : vector<16x256xf32>
    %345 = vector.extract_strided_slice %332 {offsets = [8, 0], sizes = [4, 256], strides = [1, 1]} : vector<16x256xf32> to vector<4x256xf32>
    %346 = tpu.concatenate %345, %345, %345, %345 in 0 : vector<4x256xf32>, vector<4x256xf32>, vector<4x256xf32>, vector<4x256xf32> -> vector<16x256xf32>
    %c14_132 = arith.constant 14 : index
    %c0_133 = arith.constant 0 : index
    %c0_134 = arith.constant 0 : index
    %347 = vector.load %arg4[%c14_132, %c0_133, %c0_134] : memref<36x16x256xf32, #tpu.memory_space<vmem>>, vector<1x16x256xf32>
    %348 = vector.shape_cast %347 : vector<1x16x256xf32> to vector<16x256xf32>
    %349 = arith.mulf %348, %346 : vector<16x256xf32>
    %350 = arith.addf %344, %349 : vector<16x256xf32>
    %351 = vector.extract_strided_slice %332 {offsets = [12, 0], sizes = [4, 256], strides = [1, 1]} : vector<16x256xf32> to vector<4x256xf32>
    %352 = tpu.concatenate %351, %351, %351, %351 in 0 : vector<4x256xf32>, vector<4x256xf32>, vector<4x256xf32>, vector<4x256xf32> -> vector<16x256xf32>
    %c15_135 = arith.constant 15 : index
    %c0_136 = arith.constant 0 : index
    %c0_137 = arith.constant 0 : index
    %353 = vector.load %arg4[%c15_135, %c0_136, %c0_137] : memref<36x16x256xf32, #tpu.memory_space<vmem>>, vector<1x16x256xf32>
    %354 = vector.shape_cast %353 : vector<1x16x256xf32> to vector<16x256xf32>
    %355 = arith.mulf %354, %352 : vector<16x256xf32>
    %356 = arith.addf %350, %355 : vector<16x256xf32>
    %357 = vector.extract_strided_slice %255 {offsets = [0, 128], sizes = [16, 256], strides = [1, 1]} : vector<16x512xf32> to vector<16x256xf32>
    %358 = vector.extract_strided_slice %357 {offsets = [0, 0], sizes = [4, 256], strides = [1, 1]} : vector<16x256xf32> to vector<4x256xf32>
    %359 = tpu.concatenate %358, %358, %358, %358 in 0 : vector<4x256xf32>, vector<4x256xf32>, vector<4x256xf32>, vector<4x256xf32> -> vector<16x256xf32>
    %c16_138 = arith.constant 16 : index
    %c0_139 = arith.constant 0 : index
    %c0_140 = arith.constant 0 : index
    %360 = vector.load %arg4[%c16_138, %c0_139, %c0_140] : memref<36x16x256xf32, #tpu.memory_space<vmem>>, vector<1x16x256xf32>
    %361 = vector.shape_cast %360 : vector<1x16x256xf32> to vector<16x256xf32>
    %362 = arith.mulf %361, %359 : vector<16x256xf32>
    %363 = arith.addf %356, %362 : vector<16x256xf32>
    %364 = vector.extract_strided_slice %357 {offsets = [4, 0], sizes = [4, 256], strides = [1, 1]} : vector<16x256xf32> to vector<4x256xf32>
    %365 = tpu.concatenate %364, %364, %364, %364 in 0 : vector<4x256xf32>, vector<4x256xf32>, vector<4x256xf32>, vector<4x256xf32> -> vector<16x256xf32>
    %c17_141 = arith.constant 17 : index
    %c0_142 = arith.constant 0 : index
    %c0_143 = arith.constant 0 : index
    %366 = vector.load %arg4[%c17_141, %c0_142, %c0_143] : memref<36x16x256xf32, #tpu.memory_space<vmem>>, vector<1x16x256xf32>
    %367 = vector.shape_cast %366 : vector<1x16x256xf32> to vector<16x256xf32>
    %368 = arith.mulf %367, %365 : vector<16x256xf32>
    %369 = arith.addf %363, %368 : vector<16x256xf32>
    %370 = vector.extract_strided_slice %357 {offsets = [8, 0], sizes = [4, 256], strides = [1, 1]} : vector<16x256xf32> to vector<4x256xf32>
    %371 = tpu.concatenate %370, %370, %370, %370 in 0 : vector<4x256xf32>, vector<4x256xf32>, vector<4x256xf32>, vector<4x256xf32> -> vector<16x256xf32>
    %c18_144 = arith.constant 18 : index
    %c0_145 = arith.constant 0 : index
    %c0_146 = arith.constant 0 : index
    %372 = vector.load %arg4[%c18_144, %c0_145, %c0_146] : memref<36x16x256xf32, #tpu.memory_space<vmem>>, vector<1x16x256xf32>
    %373 = vector.shape_cast %372 : vector<1x16x256xf32> to vector<16x256xf32>
    %374 = arith.mulf %373, %371 : vector<16x256xf32>
    %375 = arith.addf %369, %374 : vector<16x256xf32>
    %376 = vector.extract_strided_slice %357 {offsets = [12, 0], sizes = [4, 256], strides = [1, 1]} : vector<16x256xf32> to vector<4x256xf32>
    %377 = tpu.concatenate %376, %376, %376, %376 in 0 : vector<4x256xf32>, vector<4x256xf32>, vector<4x256xf32>, vector<4x256xf32> -> vector<16x256xf32>
    %c19_147 = arith.constant 19 : index
    %c0_148 = arith.constant 0 : index
    %c0_149 = arith.constant 0 : index
    %378 = vector.load %arg4[%c19_147, %c0_148, %c0_149] : memref<36x16x256xf32, #tpu.memory_space<vmem>>, vector<1x16x256xf32>
    %379 = vector.shape_cast %378 : vector<1x16x256xf32> to vector<16x256xf32>
    %380 = arith.mulf %379, %377 : vector<16x256xf32>
    %381 = arith.addf %375, %380 : vector<16x256xf32>
    %382 = vector.extract_strided_slice %255 {offsets = [0, 129], sizes = [16, 256], strides = [1, 1]} : vector<16x512xf32> to vector<16x256xf32>
    %383 = vector.extract_strided_slice %382 {offsets = [0, 0], sizes = [4, 256], strides = [1, 1]} : vector<16x256xf32> to vector<4x256xf32>
    %384 = tpu.concatenate %383, %383, %383, %383 in 0 : vector<4x256xf32>, vector<4x256xf32>, vector<4x256xf32>, vector<4x256xf32> -> vector<16x256xf32>
    %c20_150 = arith.constant 20 : index
    %c0_151 = arith.constant 0 : index
    %c0_152 = arith.constant 0 : index
    %385 = vector.load %arg4[%c20_150, %c0_151, %c0_152] : memref<36x16x256xf32, #tpu.memory_space<vmem>>, vector<1x16x256xf32>
    %386 = vector.shape_cast %385 : vector<1x16x256xf32> to vector<16x256xf32>
    %387 = arith.mulf %386, %384 : vector<16x256xf32>
    %388 = arith.addf %381, %387 : vector<16x256xf32>
    %389 = vector.extract_strided_slice %382 {offsets = [4, 0], sizes = [4, 256], strides = [1, 1]} : vector<16x256xf32> to vector<4x256xf32>
    %390 = tpu.concatenate %389, %389, %389, %389 in 0 : vector<4x256xf32>, vector<4x256xf32>, vector<4x256xf32>, vector<4x256xf32> -> vector<16x256xf32>
    %c21_153 = arith.constant 21 : index
    %c0_154 = arith.constant 0 : index
    %c0_155 = arith.constant 0 : index
    %391 = vector.load %arg4[%c21_153, %c0_154, %c0_155] : memref<36x16x256xf32, #tpu.memory_space<vmem>>, vector<1x16x256xf32>
    %392 = vector.shape_cast %391 : vector<1x16x256xf32> to vector<16x256xf32>
    %393 = arith.mulf %392, %390 : vector<16x256xf32>
    %394 = arith.addf %388, %393 : vector<16x256xf32>
    %395 = vector.extract_strided_slice %382 {offsets = [8, 0], sizes = [4, 256], strides = [1, 1]} : vector<16x256xf32> to vector<4x256xf32>
    %396 = tpu.concatenate %395, %395, %395, %395 in 0 : vector<4x256xf32>, vector<4x256xf32>, vector<4x256xf32>, vector<4x256xf32> -> vector<16x256xf32>
    %c22_156 = arith.constant 22 : index
    %c0_157 = arith.constant 0 : index
    %c0_158 = arith.constant 0 : index
    %397 = vector.load %arg4[%c22_156, %c0_157, %c0_158] : memref<36x16x256xf32, #tpu.memory_space<vmem>>, vector<1x16x256xf32>
    %398 = vector.shape_cast %397 : vector<1x16x256xf32> to vector<16x256xf32>
    %399 = arith.mulf %398, %396 : vector<16x256xf32>
    %400 = arith.addf %394, %399 : vector<16x256xf32>
    %401 = vector.extract_strided_slice %382 {offsets = [12, 0], sizes = [4, 256], strides = [1, 1]} : vector<16x256xf32> to vector<4x256xf32>
    %402 = tpu.concatenate %401, %401, %401, %401 in 0 : vector<4x256xf32>, vector<4x256xf32>, vector<4x256xf32>, vector<4x256xf32> -> vector<16x256xf32>
    %c23_159 = arith.constant 23 : index
    %c0_160 = arith.constant 0 : index
    %c0_161 = arith.constant 0 : index
    %403 = vector.load %arg4[%c23_159, %c0_160, %c0_161] : memref<36x16x256xf32, #tpu.memory_space<vmem>>, vector<1x16x256xf32>
    %404 = vector.shape_cast %403 : vector<1x16x256xf32> to vector<16x256xf32>
    %405 = arith.mulf %404, %402 : vector<16x256xf32>
    %406 = arith.addf %400, %405 : vector<16x256xf32>
    %407 = vector.extract_strided_slice %255 {offsets = [0, 143], sizes = [16, 256], strides = [1, 1]} : vector<16x512xf32> to vector<16x256xf32>
    %408 = vector.extract_strided_slice %407 {offsets = [0, 0], sizes = [4, 256], strides = [1, 1]} : vector<16x256xf32> to vector<4x256xf32>
    %409 = tpu.concatenate %408, %408, %408, %408 in 0 : vector<4x256xf32>, vector<4x256xf32>, vector<4x256xf32>, vector<4x256xf32> -> vector<16x256xf32>
    %c24_162 = arith.constant 24 : index
    %c0_163 = arith.constant 0 : index
    %c0_164 = arith.constant 0 : index
    %410 = vector.load %arg4[%c24_162, %c0_163, %c0_164] : memref<36x16x256xf32, #tpu.memory_space<vmem>>, vector<1x16x256xf32>
    %411 = vector.shape_cast %410 : vector<1x16x256xf32> to vector<16x256xf32>
    %412 = arith.mulf %411, %409 : vector<16x256xf32>
    %413 = arith.addf %406, %412 : vector<16x256xf32>
    %414 = vector.extract_strided_slice %407 {offsets = [4, 0], sizes = [4, 256], strides = [1, 1]} : vector<16x256xf32> to vector<4x256xf32>
    %415 = tpu.concatenate %414, %414, %414, %414 in 0 : vector<4x256xf32>, vector<4x256xf32>, vector<4x256xf32>, vector<4x256xf32> -> vector<16x256xf32>
    %c25_165 = arith.constant 25 : index
    %c0_166 = arith.constant 0 : index
    %c0_167 = arith.constant 0 : index
    %416 = vector.load %arg4[%c25_165, %c0_166, %c0_167] : memref<36x16x256xf32, #tpu.memory_space<vmem>>, vector<1x16x256xf32>
    %417 = vector.shape_cast %416 : vector<1x16x256xf32> to vector<16x256xf32>
    %418 = arith.mulf %417, %415 : vector<16x256xf32>
    %419 = arith.addf %413, %418 : vector<16x256xf32>
    %420 = vector.extract_strided_slice %407 {offsets = [8, 0], sizes = [4, 256], strides = [1, 1]} : vector<16x256xf32> to vector<4x256xf32>
    %421 = tpu.concatenate %420, %420, %420, %420 in 0 : vector<4x256xf32>, vector<4x256xf32>, vector<4x256xf32>, vector<4x256xf32> -> vector<16x256xf32>
    %c26_168 = arith.constant 26 : index
    %c0_169 = arith.constant 0 : index
    %c0_170 = arith.constant 0 : index
    %422 = vector.load %arg4[%c26_168, %c0_169, %c0_170] : memref<36x16x256xf32, #tpu.memory_space<vmem>>, vector<1x16x256xf32>
    %423 = vector.shape_cast %422 : vector<1x16x256xf32> to vector<16x256xf32>
    %424 = arith.mulf %423, %421 : vector<16x256xf32>
    %425 = arith.addf %419, %424 : vector<16x256xf32>
    %426 = vector.extract_strided_slice %407 {offsets = [12, 0], sizes = [4, 256], strides = [1, 1]} : vector<16x256xf32> to vector<4x256xf32>
    %427 = tpu.concatenate %426, %426, %426, %426 in 0 : vector<4x256xf32>, vector<4x256xf32>, vector<4x256xf32>, vector<4x256xf32> -> vector<16x256xf32>
    %c27_171 = arith.constant 27 : index
    %c0_172 = arith.constant 0 : index
    %c0_173 = arith.constant 0 : index
    %428 = vector.load %arg4[%c27_171, %c0_172, %c0_173] : memref<36x16x256xf32, #tpu.memory_space<vmem>>, vector<1x16x256xf32>
    %429 = vector.shape_cast %428 : vector<1x16x256xf32> to vector<16x256xf32>
    %430 = arith.mulf %429, %427 : vector<16x256xf32>
    %431 = arith.addf %425, %430 : vector<16x256xf32>
    %432 = vector.extract_strided_slice %255 {offsets = [0, 144], sizes = [16, 256], strides = [1, 1]} : vector<16x512xf32> to vector<16x256xf32>
    %433 = vector.extract_strided_slice %432 {offsets = [0, 0], sizes = [4, 256], strides = [1, 1]} : vector<16x256xf32> to vector<4x256xf32>
    %434 = tpu.concatenate %433, %433, %433, %433 in 0 : vector<4x256xf32>, vector<4x256xf32>, vector<4x256xf32>, vector<4x256xf32> -> vector<16x256xf32>
    %c28_174 = arith.constant 28 : index
    %c0_175 = arith.constant 0 : index
    %c0_176 = arith.constant 0 : index
    %435 = vector.load %arg4[%c28_174, %c0_175, %c0_176] : memref<36x16x256xf32, #tpu.memory_space<vmem>>, vector<1x16x256xf32>
    %436 = vector.shape_cast %435 : vector<1x16x256xf32> to vector<16x256xf32>
    %437 = arith.mulf %436, %434 : vector<16x256xf32>
    %438 = arith.addf %431, %437 : vector<16x256xf32>
    %439 = vector.extract_strided_slice %432 {offsets = [4, 0], sizes = [4, 256], strides = [1, 1]} : vector<16x256xf32> to vector<4x256xf32>
    %440 = tpu.concatenate %439, %439, %439, %439 in 0 : vector<4x256xf32>, vector<4x256xf32>, vector<4x256xf32>, vector<4x256xf32> -> vector<16x256xf32>
    %c29_177 = arith.constant 29 : index
    %c0_178 = arith.constant 0 : index
    %c0_179 = arith.constant 0 : index
    %441 = vector.load %arg4[%c29_177, %c0_178, %c0_179] : memref<36x16x256xf32, #tpu.memory_space<vmem>>, vector<1x16x256xf32>
    %442 = vector.shape_cast %441 : vector<1x16x256xf32> to vector<16x256xf32>
    %443 = arith.mulf %442, %440 : vector<16x256xf32>
    %444 = arith.addf %438, %443 : vector<16x256xf32>
    %445 = vector.extract_strided_slice %432 {offsets = [8, 0], sizes = [4, 256], strides = [1, 1]} : vector<16x256xf32> to vector<4x256xf32>
    %446 = tpu.concatenate %445, %445, %445, %445 in 0 : vector<4x256xf32>, vector<4x256xf32>, vector<4x256xf32>, vector<4x256xf32> -> vector<16x256xf32>
    %c30_180 = arith.constant 30 : index
    %c0_181 = arith.constant 0 : index
    %c0_182 = arith.constant 0 : index
    %447 = vector.load %arg4[%c30_180, %c0_181, %c0_182] : memref<36x16x256xf32, #tpu.memory_space<vmem>>, vector<1x16x256xf32>
    %448 = vector.shape_cast %447 : vector<1x16x256xf32> to vector<16x256xf32>
    %449 = arith.mulf %448, %446 : vector<16x256xf32>
    %450 = arith.addf %444, %449 : vector<16x256xf32>
    %451 = vector.extract_strided_slice %432 {offsets = [12, 0], sizes = [4, 256], strides = [1, 1]} : vector<16x256xf32> to vector<4x256xf32>
    %452 = tpu.concatenate %451, %451, %451, %451 in 0 : vector<4x256xf32>, vector<4x256xf32>, vector<4x256xf32>, vector<4x256xf32> -> vector<16x256xf32>
    %c31_183 = arith.constant 31 : index
    %c0_184 = arith.constant 0 : index
    %c0_185 = arith.constant 0 : index
    %453 = vector.load %arg4[%c31_183, %c0_184, %c0_185] : memref<36x16x256xf32, #tpu.memory_space<vmem>>, vector<1x16x256xf32>
    %454 = vector.shape_cast %453 : vector<1x16x256xf32> to vector<16x256xf32>
    %455 = arith.mulf %454, %452 : vector<16x256xf32>
    %456 = arith.addf %450, %455 : vector<16x256xf32>
    %457 = vector.extract_strided_slice %255 {offsets = [0, 145], sizes = [16, 256], strides = [1, 1]} : vector<16x512xf32> to vector<16x256xf32>
    %458 = vector.extract_strided_slice %457 {offsets = [0, 0], sizes = [4, 256], strides = [1, 1]} : vector<16x256xf32> to vector<4x256xf32>
    %459 = tpu.concatenate %458, %458, %458, %458 in 0 : vector<4x256xf32>, vector<4x256xf32>, vector<4x256xf32>, vector<4x256xf32> -> vector<16x256xf32>
    %c32_186 = arith.constant 32 : index
    %c0_187 = arith.constant 0 : index
    %c0_188 = arith.constant 0 : index
    %460 = vector.load %arg4[%c32_186, %c0_187, %c0_188] : memref<36x16x256xf32, #tpu.memory_space<vmem>>, vector<1x16x256xf32>
    %461 = vector.shape_cast %460 : vector<1x16x256xf32> to vector<16x256xf32>
    %462 = arith.mulf %461, %459 : vector<16x256xf32>
    %463 = arith.addf %456, %462 : vector<16x256xf32>
    %464 = vector.extract_strided_slice %457 {offsets = [4, 0], sizes = [4, 256], strides = [1, 1]} : vector<16x256xf32> to vector<4x256xf32>
    %465 = tpu.concatenate %464, %464, %464, %464 in 0 : vector<4x256xf32>, vector<4x256xf32>, vector<4x256xf32>, vector<4x256xf32> -> vector<16x256xf32>
    %c33_189 = arith.constant 33 : index
    %c0_190 = arith.constant 0 : index
    %c0_191 = arith.constant 0 : index
    %466 = vector.load %arg4[%c33_189, %c0_190, %c0_191] : memref<36x16x256xf32, #tpu.memory_space<vmem>>, vector<1x16x256xf32>
    %467 = vector.shape_cast %466 : vector<1x16x256xf32> to vector<16x256xf32>
    %468 = arith.mulf %467, %465 : vector<16x256xf32>
    %469 = arith.addf %463, %468 : vector<16x256xf32>
    %470 = vector.extract_strided_slice %457 {offsets = [8, 0], sizes = [4, 256], strides = [1, 1]} : vector<16x256xf32> to vector<4x256xf32>
    %471 = tpu.concatenate %470, %470, %470, %470 in 0 : vector<4x256xf32>, vector<4x256xf32>, vector<4x256xf32>, vector<4x256xf32> -> vector<16x256xf32>
    %c34_192 = arith.constant 34 : index
    %c0_193 = arith.constant 0 : index
    %c0_194 = arith.constant 0 : index
    %472 = vector.load %arg4[%c34_192, %c0_193, %c0_194] : memref<36x16x256xf32, #tpu.memory_space<vmem>>, vector<1x16x256xf32>
    %473 = vector.shape_cast %472 : vector<1x16x256xf32> to vector<16x256xf32>
    %474 = arith.mulf %473, %471 : vector<16x256xf32>
    %475 = arith.addf %469, %474 : vector<16x256xf32>
    %476 = vector.extract_strided_slice %457 {offsets = [12, 0], sizes = [4, 256], strides = [1, 1]} : vector<16x256xf32> to vector<4x256xf32>
    %477 = tpu.concatenate %476, %476, %476, %476 in 0 : vector<4x256xf32>, vector<4x256xf32>, vector<4x256xf32>, vector<4x256xf32> -> vector<16x256xf32>
    %c35_195 = arith.constant 35 : index
    %c0_196 = arith.constant 0 : index
    %c0_197 = arith.constant 0 : index
    %478 = vector.load %arg4[%c35_195, %c0_196, %c0_197] : memref<36x16x256xf32, #tpu.memory_space<vmem>>, vector<1x16x256xf32>
    %479 = vector.shape_cast %478 : vector<1x16x256xf32> to vector<16x256xf32>
    %480 = arith.mulf %479, %477 : vector<16x256xf32>
    %481 = arith.addf %475, %480 : vector<16x256xf32>
    %c0_198 = arith.constant 0 : index
    %c0_199 = arith.constant 0 : index
    %482 = vector.load %arg5[%c0_198, %c0_199] : memref<16x256xf32, #tpu.memory_space<vmem>>, vector<16x256xf32>
    %483 = arith.addf %481, %482 : vector<16x256xf32>
    %484 = arith.addf %21, %483 : vector<16x256xf32>
    %485 = vector.extract_strided_slice %484 {offsets = [0, 0], sizes = [1, 256], strides = [1, 1]} : vector<16x256xf32> to vector<1x256xf32>
    %486 = vector.extract_strided_slice %484 {offsets = [4, 0], sizes = [1, 256], strides = [1, 1]} : vector<16x256xf32> to vector<1x256xf32>
    %487 = vector.extract_strided_slice %484 {offsets = [8, 0], sizes = [1, 256], strides = [1, 1]} : vector<16x256xf32> to vector<1x256xf32>
    %488 = vector.extract_strided_slice %484 {offsets = [12, 0], sizes = [1, 256], strides = [1, 1]} : vector<16x256xf32> to vector<1x256xf32>
    %489 = vector.extract_strided_slice %484 {offsets = [1, 0], sizes = [1, 256], strides = [1, 1]} : vector<16x256xf32> to vector<1x256xf32>
    %490 = vector.extract_strided_slice %484 {offsets = [5, 0], sizes = [1, 256], strides = [1, 1]} : vector<16x256xf32> to vector<1x256xf32>
    %491 = vector.extract_strided_slice %484 {offsets = [9, 0], sizes = [1, 256], strides = [1, 1]} : vector<16x256xf32> to vector<1x256xf32>
    %492 = vector.extract_strided_slice %484 {offsets = [13, 0], sizes = [1, 256], strides = [1, 1]} : vector<16x256xf32> to vector<1x256xf32>
    %493 = vector.extract_strided_slice %484 {offsets = [2, 0], sizes = [1, 256], strides = [1, 1]} : vector<16x256xf32> to vector<1x256xf32>
    %494 = vector.extract_strided_slice %484 {offsets = [6, 0], sizes = [1, 256], strides = [1, 1]} : vector<16x256xf32> to vector<1x256xf32>
    %495 = vector.extract_strided_slice %484 {offsets = [10, 0], sizes = [1, 256], strides = [1, 1]} : vector<16x256xf32> to vector<1x256xf32>
    %496 = vector.extract_strided_slice %484 {offsets = [14, 0], sizes = [1, 256], strides = [1, 1]} : vector<16x256xf32> to vector<1x256xf32>
    %497 = vector.extract_strided_slice %484 {offsets = [3, 0], sizes = [1, 256], strides = [1, 1]} : vector<16x256xf32> to vector<1x256xf32>
    %498 = vector.extract_strided_slice %484 {offsets = [7, 0], sizes = [1, 256], strides = [1, 1]} : vector<16x256xf32> to vector<1x256xf32>
    %499 = vector.extract_strided_slice %484 {offsets = [11, 0], sizes = [1, 256], strides = [1, 1]} : vector<16x256xf32> to vector<1x256xf32>
    %500 = vector.extract_strided_slice %484 {offsets = [15, 0], sizes = [1, 256], strides = [1, 1]} : vector<16x256xf32> to vector<1x256xf32>
    %501 = tpu.concatenate %485, %486, %487, %488, %489, %490, %491, %492, %493, %494, %495, %496, %497, %498, %499, %500 in 0 : vector<1x256xf32>, vector<1x256xf32>, vector<1x256xf32>, vector<1x256xf32>, vector<1x256xf32>, vector<1x256xf32>, vector<1x256xf32>, vector<1x256xf32>, vector<1x256xf32>, vector<1x256xf32>, vector<1x256xf32>, vector<1x256xf32>, vector<1x256xf32>, vector<1x256xf32>, vector<1x256xf32>, vector<1x256xf32> -> vector<16x256xf32>
    %c0_200 = arith.constant 0 : index
    %c0_201 = arith.constant 0 : index
    %502 = vector.load %arg6[%c0_200, %c0_201] : memref<16x256xf32, #tpu.memory_space<vmem>>, vector<16x256xf32>
    tpu.vector_store %arg6[%c0_200, %c0_201], %501 {strides = array<i32>} : memref<16x256xf32, #tpu.memory_space<vmem>>, vector<16x256xf32>,
    return
  }
  func.func @transform_0(%arg0: i32) -> (i32, i32) {
    %c0_i32 = arith.constant 0 : i32
    %c0_i32_0 = arith.constant 0 : i32
    return %arg0, %c0_i32 : i32, i32
  }
  func.func @transform_1(%arg0: i32) -> (i32, i32, i32) {
    %c0_i32 = arith.constant 0 : i32
    %c0_i32_0 = arith.constant 0 : i32
    %c0_i32_1 = arith.constant 0 : i32
    %c0_i32_2 = arith.constant 0 : i32
    return %c0_i32, %c0_i32_0, %c0_i32_1 : i32, i32, i32
  }
  func.func @transform_2(%arg0: i32) -> (i32, i32) {
    %c0_i32 = arith.constant 0 : i32
    %c0_i32_0 = arith.constant 0 : i32
    %c0_i32_1 = arith.constant 0 : i32
    return %c0_i32, %c0_i32_0 : i32, i32
  }
  func.func @transform_3(%arg0: i32) -> (i32, i32, i32) {
    %c0_i32 = arith.constant 0 : i32
    %c0_i32_0 = arith.constant 0 : i32
    %c0_i32_1 = arith.constant 0 : i32
    %c0_i32_2 = arith.constant 0 : i32
    return %c0_i32, %c0_i32_0, %c0_i32_1 : i32, i32, i32
  }
  func.func @transform_4(%arg0: i32) -> (i32, i32) {
    %c0_i32 = arith.constant 0 : i32
    %c0_i32_0 = arith.constant 0 : i32
    %c0_i32_1 = arith.constant 0 : i32
    return %c0_i32, %c0_i32_0 : i32, i32
  }
  func.func @transform_5(%arg0: i32) -> (i32, i32) {
    %c0_i32 = arith.constant 0 : i32
    %c0_i32_0 = arith.constant 0 : i32
    return %arg0, %c0_i32 : i32, i32
  }
}

</mosaic_0001>

<bundles_post_ra>
// kernel: tpu_custom_call.1
= control target key start
LH: loop header
LB: loop body
LE: loop exit
PB: predicated region body
PF: predicated region fallthrough
CT: control target
= control target key end

     0   :  { %10 = vsyncpa [#allocation4], 0  ;;  %s4093_s0 = inlined_call_operand.hbm [shape: f32[32,256], index: 0, kind: input, shape index: {}]   ;;  %s4094_s1 = inlined_call_operand.hbm [shape: f32[36,16,256], index: 1, kind: input, shape index: {}]   ;;  %s4095_s2 = inlined_call_operand.hbm [shape: f32[16,256], index: 2, kind: input, shape index: {}]   ;;  %s4096_s3 = inlined_call_operand.hbm [shape: f32[36,16,256], index: 3, kind: input, shape index: {}]   ;;  %s4097_s4 = inlined_call_operand.hbm [shape: f32[16,256], index: 4, kind: input, shape index: {}]   ;;  %s4098_s5 = inlined_call_operand.hbm [shape: f32[32,256], index: 5, kind: output, shape index: {}]  }
   0x1   :  { %12 = vsyncpa [#allocation4 + $0x1], 0 }
   0x2   :  { %13 = vsyncpa [#allocation7], 0 }
   0x3   :  { %14 = vsyncpa [#allocation10], 0 }
   0x4   :  { %15 = vsyncpa [#allocation5], 0 }
   0x5   :  { %17 = vsyncpa [#allocation5 + $0x1], 0  ;;  %s2855_s18 = smov 0   ;;  %s2857_s19 = smov 0  }
   0x6   :  { %s2859_s20 = smov 0   ;;  %s2861_s21 = smov 0  }
   0x7 LB: > { %s2876_s22 = sadd.s32 4294967295, %s2805_s21   ;;  %s2319_s23 = sadd.s32 4294967294, %s2805_s21   ;;  %s2805_s21 = sphi %s2861_s21, %s4149_s21   ;;  %s2801_s20 = sphi %s2859_s20, %s4148_s20   ;;  %s2797_s19 = sphi %s2857_s19, %s4147_s19   ;;  %s2793_s18 = sphi %s2855_s18, %s4146_s18  }
   0x8   : > { %p43_p0 = scmp.ne.s32.totalorder %s2797_s19, %s2793_s18  ;;  %p4099_p1 = scmp.eq.s32.totalorder %s2876_s22, 0 }
   0x9   : > { %p151_p2 = scmp.eq.s32.totalorder %s2876_s22, 1  ;;  %p157_p3 = scmp.eq.s32.totalorder %s2319_s23, 1 }
   0xa   : > { %p2885_p4 = por %p4099_p1, %p43_p0  ;;  %p2320_p5 = scmp.ge.s32.totalorder %s2805_s21, 1 }
   0xb   : > { %p2890_p6 = por %p157_p3, %p43_p0  ;;  %p164_p7 = scmp.lt.s32.totalorder %s2805_s21, 3 }
   0xc   : > { %s4114_s24 = scalar_select %p2885_p4, 1, 0 }
   0xd   : > { %s4115_s25 = scalar_select %p2890_p6, 1, 0 }
   0xe   : > { %p2895_p8 = pnand %p2320_p5, %p164_p7  ;;  %s2807_s27 = smov [#allocation6]  }
   0xf   : > { %s176_s28 = sshll.u32 %s2807_s27, 4  ;;  %s2808_s30 = smov [#allocation9]   ;;  %s177_s28 = int_to_ptr.vmem [resolvable:$true] %s176_s28 }
  0x10   : > { %s4116_s26 = scalar_select %p2895_p8, 1, 0 }
  0x11   : > { %p2367_p9 = pneg %p2895_p8  ;;  %s202_s6 = sshll.u32 %s2808_s30, 4  ;;  %s203_s6 = int_to_ptr.vmem [resolvable:$true] %s202_s6 }
  0x12   : > { %s2809_s7 = smov [#allocation8]   ;;  %s2612_s9 = scalar_lea.vmem %s177_s28, 18432 }
  0x13   : > { %p2904_p11 = pnand %p2367_p9, %p4099_p1  ;;  %s189_s8 = sshll.u32 %s2809_s7, 4  ;;  %s190_s8 = int_to_ptr.vmem [resolvable:$true] %s189_s8 }
  0x14   : > { %p2613_p13 = scmp.ne.s32.totalorder %s177_s28, %s2612_s9  ;;  %p2620_p5 = scmp.lt.s32.totalorder %s177_s28, %s177_s28 }
  0x15   : > { %p2603_p12 = pneg %p2904_p11  ;;  %p2621_p7 = scmp.lt.s32.totalorder %s2612_s9, %s2612_s9 }
  0x17   : > { %p2615_p0 = pnand %p2613_p13, %p2603_p12  ;;  %p2622_p9 = por %p2621_p7, %p2620_p5 }
  0x19   : > { %p2616_p3 = pneg %p2615_p0 }
  0x1b   : > { %p2623_p10 = pnand %p2622_p9, %p2616_p3 }
  0x1d   : > { %2626 = shalt.err (!%p2623_p10)
}
  0x1e   : > { %s4100_s10 = smov 256   ;;  %s2811_s11 = smov 16  }
  0x1f   : > { %2370 = dma.hbm_to_vmem [thread:$0]  (!%p2904_p11), %s4094_s1, 18432, %s177_s28, [#allocation7], %s4100_s10, %s4100_s10, %s2811_s11  }
  0x20   : > { %s2638_s14 = scalar_lea.vmem %s203_s6, 18432  ;;  %p2646_p3 = scmp.lt.s32.totalorder %s203_s6, %s203_s6 }
  0x21   : > { %p2639_p13 = scmp.ne.s32.totalorder %s203_s6, %s2638_s14  ;;  %p2647_p10 = scmp.lt.s32.totalorder %s2638_s14, %s2638_s14 }
  0x23   : > { %p2641_p0 = pnand %p2639_p13, %p2603_p12  ;;  %p2648_p7 = por %p2647_p10, %p2646_p3 }
  0x25   : > { %p2642_p5 = pneg %p2641_p0 }
  0x27   : > { %p2649_p9 = pnand %p2648_p7, %p2642_p5 }
  0x29   : > { %2652 = shalt.err (!%p2649_p9)
}
  0x2a   : > { %2376 = dma.hbm_to_vmem [thread:$0]  (!%p2904_p11), %s4096_s3, 18432, %s203_s6, [#allocation10], %s4100_s10, %s4100_s10, %s2811_s11  }
  0x2b   : > { %s2664_s17 = scalar_lea.vmem %s190_s8, 512  ;;  %p2672_p3 = scmp.lt.s32.totalorder %s190_s8, %s190_s8 }
  0x2c   : > { %p2665_p1 = scmp.ne.s32.totalorder %s190_s8, %s2664_s17  ;;  %p2673_p5 = scmp.lt.s32.totalorder %s2664_s17, %s2664_s17 }
  0x2e   : > { %p2667_p13 = pnand %p2665_p1, %p2603_p12  ;;  %p2674_p10 = por %p2673_p5, %p2672_p3 }
  0x30   : > { %p2668_p0 = pneg %p2667_p13 }
  0x32   : > { %p2675_p7 = pnand %p2674_p10, %p2668_p0 }
  0x34   : > { %2678 = shalt.err (!%p2675_p7)
}
  0x35   : > { %2373 = dma.hbm_to_vmem [thread:$0]  (!%p2904_p11), %s4095_s2, 512, %s190_s8, [#allocation7], %s4100_s10, %s4100_s10, %s2811_s11  }
  0x36   : > { %s2812_s28 = smov [#allocation11]  }
  0x37   : > { %s215_s30 = sshll.u32 %s2812_s28, 4  ;;  %s216_s30 = int_to_ptr.vmem [resolvable:$true] %s215_s30 }
  0x38   : > { %s2690_s6 = scalar_lea.vmem %s216_s30, 512  ;;  %p2698_p0 = scmp.lt.s32.totalorder %s216_s30, %s216_s30 }
  0x39   : > { %p2691_p1 = scmp.ne.s32.totalorder %s216_s30, %s2690_s6  ;;  %p2699_p3 = scmp.lt.s32.totalorder %s2690_s6, %s2690_s6 }
  0x3b   : > { %p2693_p9 = pnand %p2691_p1, %p2603_p12  ;;  %p2700_p5 = por %p2699_p3, %p2698_p0 }
  0x3d   : > { %p2694_p13 = pneg %p2693_p9 }
  0x3f   : > { %p2701_p10 = pnand %p2700_p5, %p2694_p13 }
  0x41   : > { %2704 = shalt.err (!%p2701_p10)
}
  0x42   : > { %2379 = dma.hbm_to_vmem [thread:$0]  (!%p2904_p11), %s4097_s4, 512, %s216_s30, [#allocation10], %s4100_s10, %s4100_s10, %s2811_s11  }
  0x43   : > { %s2955_s9 = sadd.s32 1, %s2805_s21   ;;  %s30_s29 = sadd.s32 1, %s2801_s20 }
  0x44   : > { %s27_s12 = ssub.s32 %s2805_s21, %s2955_s9  ;;  %p37_p12 = scmp.ne.s32.totalorder %s2801_s20, %s2797_s19 }
  0x45   : > { %p28_p7 = scmp.eq.s32.totalorder %s27_s12, 0  ;;  %p38_p1 = scmp.eq.s32.totalorder %s2805_s21, 0 }
  0x46   : > { %p2965_p9 = por %p151_p2, %p37_p12  ;;  %p2392_p13 = scmp.lt.s32.totalorder %s2805_s21, 2 }
  0x47   : > { %s2971_s14 = scalar_select %p28_p7, %s2801_s20, %s30_s29  }
  0x48   : > { %s4118_s13 = scalar_select %p2965_p9, 1, 0 }
  0x49   : > { %p39_p0 = por %p38_p1, %p37_p12  ;;  %s229_s15 = sand.u32 1, %s2801_s20  }
  0x4a   : > { %s2326_s16 = sshll.u32 %s229_s15, 5  ;;  %s2344_s17 = sshll.u32 %s2805_s21, 9 }
  0x4b   : > { %s2978_s28 = scalar_lea.hbm %s4093_s0, %s2344_s17  ;;  %s233_s30 = scalar_lea.vmem [#allocation3], %s2326_s16 }
  0x4c   : > { %s241_s6 = sshll.u32 %s233_s30, 4  ;;  %p2982_p2 = pnand %p2392_p13, %p39_p0  ;;  %s2980_s6 = int_to_ptr.vmem [resolvable:$true] %s241_s6 }
  0x4d   : > { %s2986_s8 = scalar_lea.sflag [#allocation4], %s229_s15  ;;  %s2705_s29 = scalar_lea.hbm %s2978_s28, 512 }
  0x4e   : > { %p2706_p11 = scmp.ne.s32.totalorder %s2978_s28, %s2705_s29  ;;  %p2707_p3 = pneg %p2982_p2 }
  0x4f   : > { %s2710_s16 = scalar_lea.hbm %s4093_s0, 1024  ;;  %p2711_p12 = scmp.lt.s32.totalorder %s2978_s28, %s4093_s0 }
  0x50   : > { %p2708_p5 = pnand %p2707_p3, %p2706_p11  ;;  %p2712_p7 = scmp.lt.s32.totalorder %s2710_s16, %s2705_s29 }
  0x52   : > { %p2709_p10 = pneg %p2708_p5  ;;  %p2713_p1 = por %p2712_p7, %p2711_p12 }
  0x54   : > { %p2714_p13 = pnand %p2713_p1, %p2709_p10 }
  0x56   : > { %2717 = shalt.err (!%p2714_p13)
}
  0x57   : > { %s2718_s15 = scalar_lea.vmem %s2980_s6, 512  ;;  %s2813_s30 = smov [#allocation3]  }
  0x58   : > { %p2719_p0 = scmp.ne.s32.totalorder %s2980_s6, %s2718_s15  ;;  %s2723_s10 = sshll.u32 %s2813_s30, 4  ;;  %s2724_s10 = int_to_ptr.vmem [resolvable:$false] %s2723_s10 }
  0x59   : > { %s2725_s12 = scalar_lea.vmem %s2724_s10, 1024  ;;  %p2726_p5 = scmp.lt.s32.totalorder %s2980_s6, %s2724_s10 }
  0x5a   : > { %p2721_p6 = pnand %p2719_p0, %p2707_p3  ;;  %p2727_p9 = scmp.lt.s32.totalorder %s2725_s12, %s2718_s15 }
  0x5c   : > { %p2722_p11 = pneg %p2721_p6  ;;  %p2728_p4 = por %p2727_p9, %p2726_p5 }
  0x5e   : > { %p2729_p8 = pnand %p2728_p4, %p2722_p11 }
  0x60   : > { %2732 = shalt.err (!%p2729_p8)
}
  0x61   : > { %s4120_s29 = smov 256   ;;  %p4121_p6 = scmp.ne.s32.totalorder %s4116_s26, 0 }
  0x62   : > { %2383 = dma.hbm_to_vmem [thread:$0]  (!%p2982_p2), %s2978_s28, 512, %s2980_s6, %s2986_s8, %s4120_s29, %s4120_s29, %s2811_s11  }
  0x63   : > { %253 = sbr.rel (%p4121_p6) target bundleno = 704 (0x2c0), region = 40 }
  0x68   : > { %s3013_s17 = sand.u32 1, %s2797_s19   ;;  %p4122_p4 = scmp.ne.s32.totalorder %s4114_s24, 0 }
  0x69   : > { %s2331_s10 = sshll.u32 %s3013_s17, 5  ;;  %s256_s16 = scalar_lea.sflag [#allocation4], %s3013_s17 }
  0x6a   : > { %s259_s7 = scalar_lea.vmem [#allocation3], %s2331_s10 }
  0x6b   : > { %2776 = dma.done.wait (%p4122_p4), %s256_s16, 512  }
  0x6c   : > { %2778 = vsyncadd (%p4122_p4), %s256_s16, 4294966784  ;;  %p4123_p8 = scmp.eq.s32.totalorder %s2876_s22, 0 }
  0x6e   : > { %2780 = dma.done.wait (%p4123_p8), [#allocation7], 18944   ;;  %p4124_p9 = pmov %p4123_p8 }
  0x6f   : > { %p4125_p2 = pmov %p4123_p8 }
  0x70   : > { %2782 = vsyncadd (%p4124_p9), [#allocation7], 4294948352 }
  0x71   : > { %2784 = dma.done.wait (%p4125_p2), [#allocation10], 18944   ;;  %p4126_p3 = pmov %p4125_p2 }
  0x72   : > { %vm357_vm0 = vcmask 1043456   ;;  %v2814_v0 = vmov 0.0   ;;  %s2815_s24 = smov 17   ;;  %vm348_vm1 = vcmask 1040384   ;;  %vm351_vm2 = vcmask 1041408   ;;  %v309_v5 = vld [vmem:[%s259_s7 + $0x8] sm:$0xff] }
  0x73   : > { %2786 = vsyncadd (%p4126_p3), [#allocation10], 4294948352  ;;  %v398_v1 = vrot.slane %v2814_v0, 4  ;;  %vm354_vm3 = vcmask 1042432   ;;  %v311_v6 = vld [vmem:[%s259_s7 + $0x18] sm:$0xff]  ;;  %vm360_vm4 = vcmask 1044480  }
  0x74   : > { %vm363_vm5 = vcmask 1045504   ;;  %vm366_vm6 = vcmask 1046528   ;;  %v308_v7 = vld [vmem:[%s259_s7] sm:$0xff]  ;;  %v315_v8 = vrot.slane %v309_v5, 3  ;;  %v321_v9 = vrot.slane %v311_v6, 6  ;;  %v310_v12 = vld [vmem:[%s259_s7 + $0x10] sm:$0xff] }
  0x75   : > { %v3032_v2 = vsel %vm357_vm0, 0.0, %v398_v1  ;;  %v3035_v3 = vsel %vm357_vm0, %v398_v1, 0.0  ;;  %v325_v10 = vrot.slane %v311_v6, 1  ;;  %v329_v11 = vrot.slane %v309_v5, 5  ;;  %s2816_s26 = smov 16   ;;  %s2817_s11 = smov 15  }
  0x76   : > { %4127 = vst [vmem:[#allocation17_spill] sm:$0xff] %v3032_v2  ;;  %4128 = vst [vmem:[#allocation18_spill] sm:$0xff] %v3035_v3  ;;  %v3039_v4 = vpack.i.bf16 %v3035_v3, %v3032_v2  ;;  %v333_v13 = vrot.slane %v311_v6, 3  ;;  %v314_v14 = vrot.slane %v308_v7, 3  ;;  %v320_v15 = vrot.slane %v310_v12, 6  ;;  %s2818_s28 = smov 1  }
  0x77   : > { %v324_v16 = vrot.slane %v310_v12, 1  ;;  %v350_v17 = vsel %vm348_vm1, %v309_v5, %v315_v8  ;;  %v328_v18 = vrot.slane %v308_v7, 5  ;;  %v332_v19 = vrot.slane %v310_v12, 3  ;;  %s2819_s6 = smov 127   ;;  %s2820_s8 = smov 113  }
  0x78   : > { %4129 = vst [vmem:[#allocation19_spill] sm:$0xff] %v3039_v4  ;;  %2447 = vrot.lane.b32.xlu0 %v3039_v4, %s2815_s24  ;;  %2452 = vrot.lane.b32.xlu1 %v3039_v4, %s2815_s24  ;;  %v337_v20 = vrot.slane %v309_v5, 2  ;;  %v353_v21 = vsel %vm351_vm2, %v350_v17, %v321_v9  ;;  %v349_v22 = vsel %vm348_vm1, %v308_v7, %v314_v14  ;;  %v341_v23 = vrot.slane %v309_v5, 7  ;;  %s2821_s23 = smov 112   ;;  %s2822_s27 = smov 111  }
  0x79   : > { %v345_v24 = vrot.slane %v311_v6, 5  ;;  %v356_v25 = vsel %vm354_vm3, %v353_v21, %v325_v10  ;;  %v352_v26 = vsel %vm351_vm2, %v349_v22, %v320_v15  ;;  %v336_v28 = vrot.slane %v308_v7, 2  ;;  %s301_s15 = scalar_lea.vmem [#allocation12], %s2331_s10  ;;  %s2346_s30 = sshll.u32 %s2876_s22, 9 }
  0x7a   : > { %v370_v27 = vsel %vm348_vm1, %v337_v20, %v329_v11  ;;  %v359_v29 = vsel %vm357_vm0, %v356_v25, %v329_v11  ;;  %v355_v30 = vsel %vm354_vm3, %v352_v26, %v324_v16  ;;  %v340_v32 = vrot.slane %v308_v7, 7  ;;  %s2208_s12 = sshll.u32 %s301_s15, 4  ;;  %s4044_s10 = scalar_lea.hbm %s4098_s5, %s2346_s30  ;;  %s4048_s12 = int_to_ptr.vmem [resolvable:$true] %s2208_s12 }
  0x7b   : > { %v372_v31 = vsel %vm351_vm2, %v370_v27, %v311_v6  ;;  %v362_v33 = vsel %vm360_vm4, %v359_v29, %v309_v5  ;;  %v358_v34 = vsel %vm357_vm0, %v355_v30, %v328_v18  ;;  %v344_v36 = vrot.slane %v310_v12, 5  ;;  %s2194_s16 = scalar_lea.sflag [#allocation5], %s3013_s17  ;;  %s2733_s7 = scalar_lea.vmem %s4048_s12, 512 }
  0x7c   : > { %2457 = vrot.lane.b32.xlu0 %v3039_v4, %s2816_s26  ;;  %v374_v35 = vsel %vm354_vm3, %v372_v31, %v333_v13  ;;  %v365_v37 = vsel %vm363_vm5, %v362_v33, %v333_v13  ;;  %v361_v38 = vsel %vm360_vm4, %v358_v34, %v308_v7  ;;  %v369_v40 = vsel %vm348_vm1, %v336_v28, %v328_v18  ;;  %v437_v33 = vld [vmem:[#allocation6 + $0x20] sm:$0xff]  ;;  %v439_v34 = vld [vmem:[#allocation6 + $0x30] sm:$0xff]  ;;  %p2734_p10 = scmp.ne.s32.totalorder %s4048_s12, %s2733_s7  ;;  %p4143_p12 = scmp.ne.s32.totalorder %s4118_s13, 0 }
  0x7d   : > { %v376_v39 = vsel %vm357_vm0, %v374_v35, %v341_v23  ;;  %v3064_v41 = vsel %vm366_vm6, %v365_v37, %v321_v9  ;;  %v364_v42 = vsel %vm363_vm5, %v361_v38, %v332_v19  ;;  %v371_v44 = vsel %vm351_vm2, %v369_v40, %v310_v12  ;;  %v438_v37 = vld [vmem:[#allocation6 + $0x28] sm:$0xff]  ;;  %v407_v40 = vld [vmem:[#allocation6] sm:$0xff] }
  0x7e   : > { %4130 = vst [vmem:[#allocation20_spill] sm:$0xff] %v3064_v41  ;;  %v378_v43 = vsel %vm360_vm4, %v376_v39, %v337_v20  ;;  %v400_v45 = vrot.slane %v3064_v41, 4  ;;  %v3071_v46 = vsel %vm366_vm6, %v364_v42, %v320_v15  ;;  %v373_v48 = vsel %vm354_vm3, %v371_v44, %v332_v19  ;;  %v408_v42 = vld [vmem:[#allocation6 + $0x8] sm:$0xff]  ;;  %p2735_p7 = pnand %p2734_p10, %p4143_p12 }
  0x7f   : > { %4131 = vst [vmem:[#allocation21_spill] sm:$0xff] %v3071_v46  ;;  %v380_v47 = vsel %vm363_vm5, %v378_v43, %v345_v24  ;;  %v399_v49 = vrot.slane %v3071_v46, 4  ;;  %v375_v51 = vsel %vm357_vm0, %v373_v48, %v340_v32  ;;  %vm420_vm7 = vcmask 138240   ;;  %v409_v43 = vld [vmem:[#allocation6 + $0x10] sm:$0xff] }
  0x80   : > { %v3077_v50 = vsel %vm366_vm6, %v380_v47, %v311_v6  ;;  %v3082_v52 = vsel %vm357_vm0, %v3064_v41, %v400_v45  ;;  %v377_v53 = vsel %vm360_vm4, %v375_v51, %v336_v28  ;;  %v3104_v59 = vsel %vm357_vm0, %v400_v45, %v3064_v41  ;;  %v440_v51 = vld [vmem:[#allocation6 + $0x38] sm:$0xff]  ;;  %v505_v41 = vld [vmem:[#allocation6 + $0x68] sm:$0xff]  ;;  %p2736_p1 = pneg %p2735_p7 }
  0x81   : > { %4132 = vst [vmem:[#allocation22_spill] sm:$0xff] %v3077_v50  ;;  %418 = vrot.lane.b32.xlu1 %v3082_v52, %s2815_s24  ;;  %v3089_v54 = vsel %vm357_vm0, %v3071_v46, %v399_v49  ;;  %v379_v55 = vsel %vm363_vm5, %v377_v53, %v344_v36  ;;  %v3096_v56 = vsel %vm357_vm0, %v399_v49, %v3071_v46  ;;  %v467_v57 = vrot.slane %v3077_v50, 4  ;;  %v475_v53 = vld [vmem:[#allocation6 + $0x40] sm:$0xff] }
  0x82   : > { %416 = vrot.lane.b32.xlu0 %v3089_v54, %s2815_s24  ;;  %v3100_v58 = vsel %vm366_vm6, %v379_v55, %v310_v12  ;;  %v476_v55 = vld [vmem:[#allocation6 + $0x48] sm:$0xff]  ;;  %vm540_vm8 = vcmask 130048   ;;  %vm633_vm9 = vcmask 121856   ;;  %vm726_vm10 = vcmask 7168  }
  0x83   : > { %4133 = vst [vmem:[#allocation23_spill] sm:$0xff] %v3100_v58  ;;  %v466_v60 = vrot.slane %v3100_v58, 4  ;;  %v3113_v61 = vsel %vm357_vm0, %v3077_v50, %v467_v57  ;;  %v3125_v63 = vsel %vm357_vm0, %v467_v57, %v3077_v50  ;;  %vm876_vm11 = vcmask 1039360  }
  0x84   : > { %vm978_vm12 = vcmask 924672   ;;  %vm1071_vm13 = vcmask 916480   ;;  %vm1164_vm14 = vcmask 908288  }
  0x85   : > { %446 = vrot.lane.b32.xlu1 %v3096_v56, %s2815_s24  ;;  %v3117_v62 = vsel %vm357_vm0, %v3100_v58, %v466_v60  ;;  %v3129_v0 = vsel %vm357_vm0, %v466_v60, %v3100_v58 }
  0x86   : > { %448 = vrot.lane.b32.xlu0 %v3104_v59, %s2815_s24  ;;  %4134 = vst [vmem:[#allocation24_spill] sm:$0xff] %v3129_v0 }
  0x89   : > { %486 = vrot.lane.b32.xlu1 %v3113_v61, %s2815_s24 }
  0x8a   : > { %484 = vrot.lane.b32.xlu0 %v3117_v62, %s2815_s24 }
  0x8d   : > { %515 = vrot.lane.b32.xlu1 %v3125_v63, %s2815_s24 }
  0x8e   : > { %513 = vrot.lane.b32.xlu0 %v3129_v0, %s2815_s24 }
  0x91   : > { %536 = vrot.lane.b32.xlu1 %v3089_v54, %s2816_s26 }
  0x92   : > { %538 = vrot.lane.b32.xlu0 %v3082_v52, %s2816_s26 }
  0x95   : > { %560 = vrot.lane.b32.xlu1 %v3096_v56, %s2816_s26 }
  0x96   : > { %562 = vrot.lane.b32.xlu0 %v3104_v59, %s2816_s26 }
  0x99   : > { %2462 = vrot.lane.b32.xlu1 %v3039_v4, %s2816_s26 }
  0x9a   : > { %583 = vrot.lane.b32.xlu0 %v3117_v62, %s2816_s26 }
  0x9d   : > { %585 = vrot.lane.b32.xlu1 %v3113_v61, %s2816_s26 }
  0x9e   : > { %606 = vrot.lane.b32.xlu0 %v3129_v0, %s2816_s26 }
  0xa1   : > { %608 = vrot.lane.b32.xlu1 %v3125_v63, %s2816_s26 }
  0xa2   : > { %2467 = vrot.lane.b32.xlu0 %v3039_v4, %s2817_s11 }
  0xa5   : > { %629 = vrot.lane.b32.xlu1 %v3089_v54, %s2817_s11 }
  0xa6   : > { %631 = vrot.lane.b32.xlu0 %v3082_v52, %s2817_s11 }
  0xa9   : > { %653 = vrot.lane.b32.xlu1 %v3096_v56, %s2817_s11 }
  0xaa   : > { %655 = vrot.lane.b32.xlu0 %v3104_v59, %s2817_s11 }
  0xad   : > { %2472 = vrot.lane.b32.xlu1 %v3039_v4, %s2817_s11 }
  0xae   : > { %676 = vrot.lane.b32.xlu0 %v3117_v62, %s2817_s11 }
  0xb1   : > { %678 = vrot.lane.b32.xlu1 %v3113_v61, %s2817_s11 }
  0xb2   : > { %699 = vrot.lane.b32.xlu0 %v3129_v0, %s2817_s11 }
  0xb5   : > { %701 = vrot.lane.b32.xlu1 %v3125_v63, %s2817_s11 }
  0xb6   : > { %2477 = vrot.lane.b32.xlu0 %v3039_v4, %s2818_s28 }
  0xb9   : > { %722 = vrot.lane.b32.xlu1 %v3089_v54, %s2818_s28 }
  0xba   : > { %724 = vrot.lane.b32.xlu0 %v3082_v52, %s2818_s28 }
  0xbd   : > { %746 = vrot.lane.b32.xlu1 %v3096_v56, %s2818_s28 }
  0xbe   : > { %748 = vrot.lane.b32.xlu0 %v3104_v59, %s2818_s28 }
  0xc1   : > { %2482 = vrot.lane.b32.xlu1 %v3039_v4, %s2818_s28 }
  0xc2   : > { %769 = vrot.lane.b32.xlu0 %v3117_v62, %s2818_s28 }
  0xc5   : > { %771 = vrot.lane.b32.xlu1 %v3113_v61, %s2818_s28 }
  0xc6   : > { %792 = vrot.lane.b32.xlu0 %v3129_v0, %s2818_s28 }
  0xc9   : > { %794 = vrot.lane.b32.xlu1 %v3125_v63, %s2818_s28 }
  0xca   : > { %870 = vrot.lane.b32.xlu0 %v3089_v54, %s2819_s6 }
  0xcd   : > { %872 = vrot.lane.b32.xlu1 %v3082_v52, %s2819_s6 }
  0xce   : > { %2487 = vrot.lane.b32.xlu0 %v3039_v4, %s2819_s6 }
  0xd1   : > { %896 = vrot.lane.b32.xlu1 %v3096_v56, %s2819_s6 }
  0xd2   : > { %898 = vrot.lane.b32.xlu0 %v3104_v59, %s2819_s6 }
  0xd5   : > { %924 = vrot.lane.b32.xlu1 %v3117_v62, %s2819_s6 }
  0xd6   : > { %926 = vrot.lane.b32.xlu0 %v3113_v61, %s2819_s6 }
  0xd9   : > { %2492 = vrot.lane.b32.xlu1 %v3039_v4, %s2819_s6 }
  0xda   : > { %949 = vrot.lane.b32.xlu0 %v3129_v0, %s2819_s6 }
  0xdd   : > { %951 = vrot.lane.b32.xlu1 %v3125_v63, %s2819_s6 }
  0xde   : > { %972 = vrot.lane.b32.xlu0 %v3089_v54, %s2820_s8 }
  0xe1   : > { %974 = vrot.lane.b32.xlu1 %v3082_v52, %s2820_s8 }
  0xe2   : > { %2497 = vrot.lane.b32.xlu0 %v3039_v4, %s2820_s8 }
  0xe5   : > { %996 = vrot.lane.b32.xlu1 %v3096_v56, %s2820_s8 }
  0xe6   : > { %998 = vrot.lane.b32.xlu0 %v3104_v59, %s2820_s8 }
  0xe9   : > { %1019 = vrot.lane.b32.xlu1 %v3117_v62, %s2820_s8 }
  0xea   : > { %v3223_v1 = vpop.permute.xlu0 %2447  ;;  %1021 = vrot.lane.b32.xlu0 %v3113_v61, %s2820_s8  ;;  %v3231_v5 = vpop.permute.xlu1 %2452 }
  0xeb   : > { %v2450_v29 = vunpack.i.h.bf16 %v3223_v1  ;;  %v2449_v30 = vunpack.i.l.bf16 %v3223_v1  ;;  %v2454_v36 = vunpack.i.l.bf16 %v3231_v5  ;;  %v2455_v39 = vunpack.i.h.bf16 %v3231_v5 }
  0xed   : > { %2502 = vrot.lane.b32.xlu1 %v3039_v4, %s2820_s8 }
  0xee   : > { %1042 = vrot.lane.b32.xlu0 %v3129_v0, %s2820_s8  ;;  %v3235_v6 = vpop.permute.xlu0 %2457 }
  0xef   : > { %v2460_v5 = vunpack.i.h.bf16 %v3235_v6 }
  0xf1   : > { %1044 = vrot.lane.b32.xlu1 %v3125_v63, %s2820_s8 }
  0xf2   : > { %1065 = vrot.lane.b32.xlu0 %v3089_v54, %s2821_s23 }
  0xf3   : > { %v3241_v7 = vpop.permute.xlu1 %418 }
  0xf4   : > { %v3243_v8 = vpop.permute.xlu0 %416 }
  0xf5   : > { %1067 = vrot.lane.b32.xlu1 %v3082_v52, %s2821_s23  ;;  %v421_v44 = vsel %vm420_vm7, %v2449_v30, %v3243_v8  ;;  %v422_v45 = vsel %vm420_vm7, %v3243_v8, %v3241_v7  ;;  %v2459_v7 = vunpack.i.l.bf16 %v3235_v6  ;;  %v410_v8 = vld [vmem:[#allocation6 + $0x18] sm:$0xff]  ;;  %v506_v6 = vld [vmem:[#allocation6 + $0x70] sm:$0xff] }
  0xf6   : > { %2507 = vrot.lane.b32.xlu0 %v3039_v4, %s2821_s23  ;;  %v426_v30 = vmul.f32 %v422_v45, %v408_v42  ;;  %v428_v46 = vmul.f32 %v422_v45, %v410_v8 }
  0xf7   : > { %v447_v9 = vpop.permute.xlu1 %446 }
  0xf8   : > { %v449_v10 = vpop.permute.xlu0 %448  ;;  %v450_v35 = vsel %vm420_vm7, %v2450_v29, %v447_v9  ;;  %v425_v29 = vmul.f32 %v421_v44, %v407_v40 }
  0xf9   : > { %1089 = vrot.lane.b32.xlu1 %v3096_v56, %s2821_s23  ;;  %v451_v38 = vsel %vm420_vm7, %v447_v9, %v449_v10  ;;  %v454_v48 = vmul.f32 %v450_v35, %v437_v33  ;;  %v456_v49 = vmul.f32 %v450_v35, %v439_v34  ;;  %v477_v10 = vld [vmem:[#allocation6 + $0x50] sm:$0xff]  ;;  %v427_v33 = vmul.f32 %v421_v44, %v409_v43  ;;  %v478_v34 = vld [vmem:[#allocation6 + $0x58] sm:$0xff]  ;;  %v504_v35 = vld [vmem:[#allocation6 + $0x60] sm:$0xff] }
  0xfa   : > { %1091 = vrot.lane.b32.xlu0 %v3104_v59, %s2821_s23  ;;  %v455_v9 = vmul.f32 %v451_v38, %v438_v37  ;;  %v507_v44 = vld [vmem:[#allocation6 + $0x78] sm:$0xff] }
  0xfb   : > { %v3253_v11 = vpop.permute.xlu1 %486  ;;  %v458_v40 = vadd.f32 %v454_v48, %v425_v29  ;;  %v460_v42 = vadd.f32 %v456_v49, %v427_v33 }
  0xfc   : > { %v3255_v12 = vpop.permute.xlu0 %484  ;;  %v459_v2 = vadd.f32 %v455_v9, %v426_v30 }
  0xfd   : > { %1112 = vrot.lane.b32.xlu1 %v3117_v62, %s2821_s23  ;;  %v488_v57 = vsel %vm420_vm7, %v2454_v36, %v3255_v12  ;;  %v489_v60 = vsel %vm420_vm7, %v3255_v12, %v3253_v11  ;;  %v457_v12 = vmul.f32 %v451_v38, %v440_v51  ;;  %v530_v51 = vld [vmem:[#allocation6 + $0x80] sm:$0xff] }
  0xfe   : > { %1114 = vrot.lane.b32.xlu0 %v3113_v61, %s2821_s23  ;;  %v492_v36 = vmul.f32 %v488_v57, %v475_v53  ;;  %v493_v50 = vmul.f32 %v489_v60, %v476_v55  ;;  %v494_v43 = vmul.f32 %v488_v57, %v477_v10  ;;  %v532_v53 = vld [vmem:[#allocation6 + $0x90] sm:$0xff] }
  0xff   : > { %v3261_v13 = vpop.permute.xlu1 %515  ;;  %v461_v48 = vadd.f32 %v457_v12, %v428_v46  ;;  %v579_v12 = vld [vmem:[#allocation6 + $0xd0] sm:$0xff] }
 0x100   : > { %v3263_v14 = vpop.permute.xlu0 %513  ;;  %v496_v49 = vadd.f32 %v492_v36, %v458_v40  ;;  %v497_v57 = vadd.f32 %v493_v50, %v459_v2  ;;  %v498_v10 = vadd.f32 %v494_v43, %v460_v42  ;;  %v555_v42 = vld [vmem:[#allocation6 + $0xa8] sm:$0xff] }
 0x101   : > { %2512 = vrot.lane.b32.xlu1 %v3039_v4, %s2821_s23  ;;  %v517_v11 = vsel %vm420_vm7, %v2455_v39, %v3263_v14  ;;  %v518_v37 = vsel %vm420_vm7, %v3263_v14, %v3261_v13  ;;  %v495_v39 = vmul.f32 %v489_v60, %v478_v34  ;;  %v531_v13 = vld [vmem:[#allocation6 + $0x88] sm:$0xff]  ;;  %v533_v60 = vld [vmem:[#allocation6 + $0x98] sm:$0xff] }
 0x102   : > { %1135 = vrot.lane.b32.xlu0 %v3129_v0, %s2821_s23  ;;  %v521_v38 = vmul.f32 %v517_v11, %v504_v35  ;;  %v524_v8 = vmul.f32 %v518_v37, %v507_v44 }
 0x103   : > { %v3269_v15 = vpop.permute.xlu1 %536 }
 0x104   : > { %v3271_v16 = vpop.permute.xlu0 %538  ;;  %v541_v55 = vsel %vm540_vm8, %v2459_v7, %v3269_v15  ;;  %v554_v7 = vld [vmem:[#allocation6 + $0xa0] sm:$0xff] }
 0x105   : > { %1137 = vrot.lane.b32.xlu1 %v3125_v63, %s2821_s23  ;;  %v542_v14 = vsel %vm540_vm8, %v3269_v15, %v3271_v16  ;;  %v545_v29 = vmul.f32 %v541_v55, %v530_v51  ;;  %v547_v30 = vmul.f32 %v541_v55, %v532_v53  ;;  %v499_v15 = vadd.f32 %v495_v39, %v461_v48 }
 0x106   : > { %1158 = vrot.lane.b32.xlu0 %v3089_v54, %s2822_s27  ;;  %v525_v16 = vadd.f32 %v521_v38, %v496_v49  ;;  %v546_v35 = vmul.f32 %v542_v14, %v531_v13  ;;  %v548_v50 = vmul.f32 %v542_v14, %v533_v60  ;;  %v578_v14 = vld [vmem:[#allocation6 + $0xc8] sm:$0xff]  ;;  %v600_v49 = vld [vmem:[#allocation6 + $0xe0] sm:$0xff] }
 0x107   : > { %v3277_v17 = vpop.permute.xlu1 %560 }
 0x108   : > { %v3279_v18 = vpop.permute.xlu0 %562  ;;  %v564_v33 = vsel %vm540_vm8, %v2460_v5, %v3277_v17  ;;  %v549_v44 = vadd.f32 %v545_v29, %v525_v16 }
 0x109   : > { %1160 = vrot.lane.b32.xlu1 %v3082_v52, %s2822_s27  ;;  %v565_v5 = vsel %vm540_vm8, %v3277_v17, %v3279_v18 }
 0x10a   : > { %2517 = vrot.lane.b32.xlu0 %v3039_v4, %s2822_s27  ;;  %v569_v48 = vmul.f32 %v565_v5, %v555_v42  ;;  %v624_v42 = vld [vmem:[#allocation6 + $0x108] sm:$0xff] }
 0x10b   : > { %v3285_v19 = vpop.permute.xlu1 %2462 }
 0x10c   : > { %v3287_v20 = vpop.permute.xlu0 %583  ;;  %v2464_v45 = vunpack.i.l.bf16 %v3285_v19 }
 0x10d   : > { %1182 = vrot.lane.b32.xlu1 %v3096_v56, %s2822_s27 }
 0x10e   : > { %1184 = vrot.lane.b32.xlu0 %v3104_v59, %s2822_s27  ;;  %v587_v36 = vsel %vm540_vm8, %v2464_v45, %v3287_v20  ;;  %v580_v45 = vld [vmem:[#allocation6 + $0xd8] sm:$0xff] }
 0x10f   : > { %v3293_v21 = vpop.permute.xlu1 %585  ;;  %v593_v13 = vmul.f32 %v587_v36, %v579_v12  ;;  %v625_v12 = vld [vmem:[#allocation6 + $0x110] sm:$0xff] }
 0x110   : > { %v3295_v22 = vpop.permute.xlu0 %606  ;;  %v588_v17 = vsel %vm540_vm8, %v3287_v20, %v3293_v21 }
 0x111   : > { %1205 = vrot.lane.b32.xlu1 %v3117_v62, %s2822_s27  ;;  %v592_v20 = vmul.f32 %v588_v17, %v578_v14  ;;  %v594_v21 = vmul.f32 %v588_v17, %v580_v45 }
 0x112   : > { %1207 = vrot.lane.b32.xlu0 %v3113_v61, %s2822_s27 }
 0x113   : > { %v3301_v23 = vpop.permute.xlu1 %608 }
 0x114   : > { %v3303_v24 = vpop.permute.xlu0 %2467 }
 0x115   : > { %2522 = vrot.lane.b32.xlu1 %v3039_v4, %s2822_s27  ;;  %v2469_v38 = vunpack.i.l.bf16 %v3303_v24 }
 0x116   : > { %1228 = vrot.lane.b32.xlu0 %v3129_v0, %s2822_s27  ;;  %v523_v0 = vmul.f32 %v517_v11, %v506_v6  ;;  %v577_v11 = vld [vmem:[#allocation6 + $0xc0] sm:$0xff]  ;;  %v528_v6 = vadd.f32 %v524_v8, %v499_v15  ;;  %v2470_v8 = vunpack.i.h.bf16 %v3303_v24 }
 0x117   : > { %v3309_v25 = vpop.permute.xlu1 %629  ;;  %v591_v55 = vmul.f32 %v587_v36, %v577_v11  ;;  %v603_v11 = vld [vmem:[#allocation6 + $0xf8] sm:$0xff] }
 0x118   : > { %v3311_v26 = vpop.permute.xlu0 %631  ;;  %v527_v2 = vadd.f32 %v523_v0, %v498_v10  ;;  %v2465_v0 = vunpack.i.h.bf16 %v3285_v19  ;;  %v552_v18 = vadd.f32 %v548_v50, %v528_v6  ;;  %v634_v15 = vsel %vm633_vm9, %v2469_v38, %v3309_v25 }
 0x119   : > { %1230 = vrot.lane.b32.xlu1 %v3125_v63, %s2822_s27  ;;  %v640_v38 = vmul.f32 %v634_v15, %v625_v12 }
 0x11a   : > { %2527 = vrot.lane.b32.xlu0 %v3039_v4, %s2815_s24  ;;  %v551_v39 = vadd.f32 %v547_v30, %v527_v2  ;;  %v610_v19 = vsel %vm540_vm8, %v2465_v0, %v3295_v22  ;;  %v601_v30 = vld [vmem:[#allocation6 + $0xe8] sm:$0xff] }
 0x11b   : > { %v3317_v27 = vpop.permute.xlu1 %653  ;;  %v614_v2 = vmul.f32 %v610_v19, %v600_v49 }
 0x11c   : > { %v3319_v28 = vpop.permute.xlu0 %655  ;;  %v657_v6 = vsel %vm633_vm9, %v2470_v8, %v3317_v27  ;;  %v672_v8 = vld [vmem:[#allocation6 + $0x150] sm:$0xff] }
 0x11d   : > { %2532 = vrot.lane.b32.xlu1 %v3039_v4, %s2815_s24 }
 0x11e   : > { %2537 = vrot.lane.b32.xlu0 %v3039_v4, %s2816_s26 }
 0x11f   : > { %v3327_v31 = vpop.permute.xlu1 %2472 }
 0x120   : > { %v3329_v32 = vpop.permute.xlu0 %676  ;;  %v2474_v16 = vunpack.i.l.bf16 %v3327_v31 }
 0x121   : > { %2542 = vrot.lane.b32.xlu1 %v3039_v4, %s2816_s26 }
 0x122   : > { %2547 = vrot.lane.b32.xlu0 %v3039_v4, %s2817_s11 }
 0x123   : > { %v3344_v47 = vpop.permute.xlu1 %678 }
 0x124   : > { %v3351_v1 = vpop.permute.xlu0 %699 }
 0x125   : > { %2552 = vrot.lane.b32.xlu1 %v3039_v4, %s2817_s11  ;;  %v522_v4 = vmul.f32 %v518_v37, %v505_v41  ;;  %v556_v41 = vld [vmem:[#allocation6 + $0xb0] sm:$0xff]  ;;  %v568_v37 = vmul.f32 %v564_v33, %v554_v7  ;;  %v611_v7 = vsel %vm540_vm8, %v3295_v22, %v3301_v23  ;;  %v647_v23 = vld [vmem:[#allocation6 + $0x120] sm:$0xff] }
 0x126   : > { %v570_v40 = vmul.f32 %v564_v33, %v556_v41  ;;  %v623_v33 = vld [vmem:[#allocation6 + $0x100] sm:$0xff]  ;;  %v615_v22 = vmul.f32 %v611_v7, %v601_v30  ;;  %v617_v0 = vmul.f32 %v611_v7, %v603_v11  ;;  %v2475_v30 = vunpack.i.h.bf16 %v3327_v31 }
 0x127   : > { %v3362_v58 = vpop.permute.xlu1 %701  ;;  %v526_v46 = vadd.f32 %v522_v4, %v497_v57  ;;  %v557_v4 = vld [vmem:[#allocation6 + $0xb8] sm:$0xff]  ;;  %v602_v57 = vld [vmem:[#allocation6 + $0xf0] sm:$0xff]  ;;  %v572_v60 = vadd.f32 %v568_v37, %v549_v44  ;;  %v635_v44 = vsel %vm633_vm9, %v3309_v25, %v3311_v26  ;;  %v648_v26 = vld [vmem:[#allocation6 + $0x128] sm:$0xff] }
 0x128   : > { %v3364_v3 = vpop.permute.xlu0 %2477  ;;  %v574_v10 = vadd.f32 %v570_v40, %v551_v39  ;;  %v571_v29 = vmul.f32 %v565_v5, %v557_v4  ;;  %v616_v50 = vmul.f32 %v610_v19, %v602_v57  ;;  %v638_v40 = vmul.f32 %v634_v15, %v623_v33  ;;  %v626_v5 = vld [vmem:[#allocation6 + $0x118] sm:$0xff]  ;;  %v671_v15 = vld [vmem:[#allocation6 + $0x148] sm:$0xff]  ;;  %v693_v11 = vld [vmem:[#allocation6 + $0x160] sm:$0xff] }
 0x129   : > { %v550_v53 = vadd.f32 %v546_v35, %v526_v46  ;;  %v595_v24 = vadd.f32 %v591_v55, %v572_v60  ;;  %v670_v55 = vld [vmem:[#allocation6 + $0x140] sm:$0xff]  ;;  %v639_v57 = vmul.f32 %v635_v44, %v624_v42  ;;  %v641_v25 = vmul.f32 %v635_v44, %v626_v5 }
 0x12a   : > { %v597_v46 = vadd.f32 %v593_v13, %v574_v10  ;;  %v575_v37 = vadd.f32 %v571_v29, %v552_v18  ;;  %v680_v13 = vsel %vm633_vm9, %v2474_v16, %v3329_v32  ;;  %v658_v19 = vsel %vm633_vm9, %v3317_v27, %v3319_v28  ;;  %v650_v29 = vld [vmem:[#allocation6 + $0x138] sm:$0xff] }
 0x12b   : > { %v3372_v9 = vpop.permute.xlu1 %722  ;;  %v573_v36 = vadd.f32 %v569_v48, %v550_v53  ;;  %v649_v53 = vld [vmem:[#allocation6 + $0x130] sm:$0xff]  ;;  %v618_v17 = vadd.f32 %v614_v2, %v595_v24  ;;  %v661_v48 = vmul.f32 %v657_v6, %v647_v23  ;;  %v684_v7 = vmul.f32 %v680_v13, %v670_v55 }
 0x12c   : > { %v3376_v34 = vpop.permute.xlu0 %724  ;;  %v598_v45 = vadd.f32 %v594_v21, %v575_v37  ;;  %v620_v18 = vadd.f32 %v616_v50, %v597_v46  ;;  %v663_v10 = vmul.f32 %v657_v6, %v649_v53  ;;  %v681_v16 = vsel %vm633_vm9, %v3329_v32, %v3344_v47  ;;  %v673_v50 = vld [vmem:[#allocation6 + $0x158] sm:$0xff]  ;;  %v695_v23 = vld [vmem:[#allocation6 + $0x170] sm:$0xff]  ;;  %v694_v32 = vld [vmem:[#allocation6 + $0x168] sm:$0xff] }
 0x12d   : > { %v596_v4 = vadd.f32 %v592_v20, %v573_v36  ;;  %v642_v60 = vadd.f32 %v638_v40, %v618_v17  ;;  %v2479_v24 = vunpack.i.l.bf16 %v3364_v3  ;;  %v662_v28 = vmul.f32 %v658_v19, %v648_v26  ;;  %v696_v47 = vld [vmem:[#allocation6 + $0x178] sm:$0xff] }
 0x12e   : > { %v621_v21 = vadd.f32 %v617_v0, %v598_v45  ;;  %v644_v33 = vadd.f32 %v640_v38, %v620_v18  ;;  %v686_v2 = vmul.f32 %v680_v13, %v672_v8  ;;  %v703_v31 = vsel %vm633_vm9, %v2475_v30, %v3351_v1  ;;  %v716_v38 = vld [vmem:[#allocation6 + $0x180] sm:$0xff]  ;;  %v717_v18 = vld [vmem:[#allocation6 + $0x188] sm:$0xff] }
 0x12f   : > { %v3383_v43 = vpop.permute.xlu1 %746  ;;  %v619_v49 = vadd.f32 %v615_v22, %v596_v4  ;;  %v665_v27 = vadd.f32 %v661_v48, %v642_v60  ;;  %v664_v22 = vmul.f32 %v658_v19, %v650_v29  ;;  %v685_v40 = vmul.f32 %v681_v16, %v671_v15  ;;  %v741_v8 = vld [vmem:[#allocation6 + $0x1a8] sm:$0xff] }
 0x130   : > { %v3387_v51 = vpop.permute.xlu0 %748  ;;  %v645_v36 = vadd.f32 %v641_v25, %v621_v21  ;;  %v667_v6 = vadd.f32 %v663_v10, %v644_v33  ;;  %v704_v42 = vsel %vm633_vm9, %v3351_v1, %v3362_v58  ;;  %v687_v44 = vmul.f32 %v681_v16, %v673_v50  ;;  %v719_v25 = vld [vmem:[#allocation6 + $0x198] sm:$0xff] }
 0x131   : > { %v643_v12 = vadd.f32 %v639_v57, %v619_v49  ;;  %v688_v37 = vadd.f32 %v684_v7, %v665_v27  ;;  %v707_v4 = vmul.f32 %v703_v31, %v693_v11  ;;  %v2480_v0 = vunpack.i.h.bf16 %v3364_v3  ;;  %v718_v57 = vld [vmem:[#allocation6 + $0x190] sm:$0xff]  ;;  %v743_v21 = vld [vmem:[#allocation6 + $0x1b8] sm:$0xff] }
 0x132   : > { %v727_v53 = vsel %vm726_vm10, %v2479_v24, %v3372_v9  ;;  %v690_v45 = vadd.f32 %v686_v2, %v667_v6  ;;  %v709_v17 = vmul.f32 %v703_v31, %v695_v23  ;;  %v728_v58 = vsel %vm726_vm10, %v3372_v9, %v3376_v34  ;;  %v740_v9 = vld [vmem:[#allocation6 + $0x1a0] sm:$0xff]  ;;  %v742_v27 = vld [vmem:[#allocation6 + $0x1b0] sm:$0xff] }
 0x133   : > { %v3398_v41 = vpop.permute.xlu1 %2482  ;;  %v666_v13 = vadd.f32 %v662_v28, %v643_v12  ;;  %v668_v1 = vadd.f32 %v664_v22, %v645_v36  ;;  %v708_v48 = vmul.f32 %v704_v42, %v694_v32  ;;  %v710_v49 = vmul.f32 %v704_v42, %v696_v47  ;;  %v764_v28 = vld [vmem:[#allocation6 + $0x1c8] sm:$0xff]  ;;  %v763_v31 = vld [vmem:[#allocation6 + $0x1c0] sm:$0xff]  ;;  %v765_v6 = vld [vmem:[#allocation6 + $0x1d0] sm:$0xff] }
 0x134   : > { %v3403_v35 = vpop.permute.xlu0 %769  ;;  %v2484_v3 = vunpack.i.l.bf16 %v3398_v41  ;;  %v731_v19 = vmul.f32 %v727_v53, %v716_v38  ;;  %v751_v60 = vsel %vm726_vm10, %v3383_v43, %v3387_v51  ;;  %v711_v30 = vadd.f32 %v707_v4, %v688_v37  ;;  %v787_v37 = vld [vmem:[#allocation6 + $0x1e8] sm:$0xff]  ;;  %v789_v4 = vld [vmem:[#allocation6 + $0x1f8] sm:$0xff] }
 0x135   : > { %v689_v26 = vadd.f32 %v685_v40, %v666_v13  ;;  %v691_v29 = vadd.f32 %v687_v44, %v668_v1  ;;  %v732_v7 = vmul.f32 %v728_v58, %v717_v18  ;;  %v750_v34 = vsel %vm726_vm10, %v2480_v0, %v3383_v43  ;;  %v766_v43 = vld [vmem:[#allocation6 + $0x1d8] sm:$0xff]  ;;  %v786_v18 = vld [vmem:[#allocation6 + $0x1e0] sm:$0xff] }
 0x136   : > { %v713_v15 = vadd.f32 %v709_v17, %v690_v45  ;;  %v733_v16 = vmul.f32 %v727_v53, %v718_v57  ;;  %v734_v24 = vmul.f32 %v728_v58, %v719_v25  ;;  %v755_v11 = vmul.f32 %v751_v60, %v741_v8  ;;  %v810_v57 = vld [vmem:[#allocation6 + $0x208] sm:$0xff] }
 0x137   : > { %v3410_v39 = vpop.permute.xlu1 %771  ;;  %v712_v2 = vadd.f32 %v708_v48, %v689_v26  ;;  %v714_v50 = vadd.f32 %v710_v49, %v691_v29  ;;  %v773_v12 = vsel %vm726_vm10, %v2484_v3, %v3403_v35  ;;  %v735_v36 = vadd.f32 %v731_v19, %v711_v30  ;;  %v788_v49 = vld [vmem:[#allocation6 + $0x1f0] sm:$0xff]  ;;  %v812_v19 = vld [vmem:[#allocation6 + $0x218] sm:$0xff] }
 0x138   : > { %v3414_v14 = vpop.permute.xlu0 %792  ;;  %v774_v51 = vsel %vm726_vm10, %v3403_v35, %v3410_v39  ;;  %v754_v22 = vmul.f32 %v750_v34, %v740_v9  ;;  %v757_v23 = vmul.f32 %v751_v60, %v743_v21  ;;  %v756_v47 = vmul.f32 %v750_v34, %v742_v27  ;;  %v809_v9 = vld [vmem:[#allocation6 + $0x200] sm:$0xff] }
 0x139   : > { %v736_v39 = vadd.f32 %v732_v7, %v712_v2  ;;  %v2485_v42 = vunpack.i.h.bf16 %v3398_v41  ;;  %v778_v44 = vmul.f32 %v774_v51, %v764_v28  ;;  %v737_v35 = vadd.f32 %v733_v16, %v713_v15  ;;  %v811_v15 = vld [vmem:[#allocation6 + $0x210] sm:$0xff] }
 0x13a   : > { %v738_v38 = vadd.f32 %v734_v24, %v714_v50  ;;  %v777_v53 = vmul.f32 %v773_v12, %v763_v31  ;;  %v780_v13 = vmul.f32 %v774_v51, %v766_v43  ;;  %v779_v17 = vmul.f32 %v773_v12, %v765_v6  ;;  %v823_v24 = vld [vmem:[#allocation6 + $0x228] sm:$0xff]  ;;  %v825_v51 = vld [vmem:[#allocation6 + $0x238] sm:$0xff]  ;;  %v822_v31 = vld [vmem:[#allocation6 + $0x220] sm:$0xff] }
 0x13b   : > { %v3420_v20 = vpop.permute.xlu1 %794  ;;  %v759_v45 = vadd.f32 %v755_v11, %v736_v39  ;;  %v758_v1 = vadd.f32 %v754_v22, %v735_v36  ;;  %v760_v3 = vadd.f32 %v756_v47, %v737_v35  ;;  %v816_v16 = vmul.f32 %v812_v19, %v3082_v52  ;;  %v836_v6 = vld [vmem:[#allocation6 + $0x248] sm:$0xff]  ;;  %v838_v39 = vld [vmem:[#allocation6 + $0x258] sm:$0xff]  ;;  %v850_v19 = vld [vmem:[#allocation6 + $0x270] sm:$0xff] }
 0x13c   : > { %v3426_v46 = vpop.permute.xlu0 %870  ;;  %v797_v40 = vsel %vm726_vm10, %v3414_v14, %v3420_v20  ;;  %v796_v20 = vsel %vm726_vm10, %v2485_v42, %v3414_v14  ;;  %v761_v48 = vadd.f32 %v757_v23, %v738_v38  ;;  %v814_v14 = vmul.f32 %v810_v57, %v3082_v52  ;;  %v824_v23 = vld [vmem:[#allocation6 + $0x230] sm:$0xff] }
 0x13d   : > { %v801_v58 = vmul.f32 %v797_v40, %v787_v37  ;;  %v803_v41 = vmul.f32 %v797_v40, %v789_v4  ;;  %v782_v26 = vadd.f32 %v778_v44, %v759_v45  ;;  %v781_v60 = vadd.f32 %v777_v53, %v758_v1  ;;  %v835_v53 = vld [vmem:[#allocation6 + $0x240] sm:$0xff]  ;;  %v837_v45 = vld [vmem:[#allocation6 + $0x250] sm:$0xff] }
 0x13e   : > { %v784_v29 = vadd.f32 %v780_v13, %v761_v48  ;;  %v800_v30 = vmul.f32 %v796_v20, %v786_v18  ;;  %v783_v7 = vadd.f32 %v779_v17, %v760_v3  ;;  %v802_v34 = vmul.f32 %v796_v20, %v788_v49  ;;  %v849_v17 = vld [vmem:[#allocation6 + $0x268] sm:$0xff]  ;;  %v851_v20 = vld [vmem:[#allocation6 + $0x278] sm:$0xff]  ;;  %v848_v3 = vld [vmem:[#allocation6 + $0x260] sm:$0xff] }
 0x13f   : > { %v3433_v5 = vpop.permute.xlu1 %872  ;;  %v805_v21 = vadd.f32 %v801_v58, %v782_v26  ;;  %v813_v11 = vmul.f32 %v809_v9, %v3089_v54  ;;  %v815_v43 = vmul.f32 %v811_v15, %v3089_v54  ;;  %v827_v36 = vmul.f32 %v823_v24, %v3104_v59  ;;  %v4135_v9 = vld [vmem:[#allocation24_spill] sm:$0xff]  ;;  %v865_v24 = vld [vmem:[#allocation6 + $0x280] sm:$0xff] }
 0x140   : > { %v3438_v55 = vpop.permute.xlu0 %2487  ;;  %v807_v27 = vadd.f32 %v803_v41, %v784_v29  ;;  %v804_v50 = vadd.f32 %v800_v30, %v781_v60  ;;  %v806_v12 = vadd.f32 %v802_v34, %v783_v7  ;;  %v829_v52 = vmul.f32 %v825_v51, %v3104_v59 }
 0x141   : > { %v818_v22 = vadd.f32 %v814_v14, %v805_v21  ;;  %v826_v42 = vmul.f32 %v822_v31, %v3096_v56  ;;  %v828_v4 = vmul.f32 %v824_v23, %v3096_v56  ;;  %v840_v54 = vmul.f32 %v836_v6, %v3113_v61  ;;  %v866_v21 = vld [vmem:[#allocation6 + $0x288] sm:$0xff]  ;;  %v867_v23 = vld [vmem:[#allocation6 + $0x290] sm:$0xff] }
 0x142   : > { %v820_v37 = vadd.f32 %v816_v16, %v807_v27  ;;  %v817_v44 = vadd.f32 %v813_v11, %v804_v50  ;;  %v819_v35 = vadd.f32 %v815_v43, %v806_v12  ;;  %v842_v13 = vmul.f32 %v838_v39, %v3113_v61  ;;  %v892_v11 = vld [vmem:[#allocation6 + $0x2a8] sm:$0xff] }
 0x143   : > { %v3447_v10 = vpop.permute.xlu1 %896  ;;  %v831_v38 = vadd.f32 %v827_v36, %v818_v22  ;;  %v839_v48 = vmul.f32 %v835_v53, %v3117_v62  ;;  %v2489_v56 = vunpack.i.l.bf16 %v3438_v55  ;;  %v841_v41 = vmul.f32 %v837_v45, %v3117_v62  ;;  %v894_v36 = vld [vmem:[#allocation6 + $0x2b8] sm:$0xff]  ;;  %v920_v39 = vld [vmem:[#allocation6 + $0x2c8] sm:$0xff] }
 0x144   : > { %v3451_v33 = vpop.permute.xlu0 %898  ;;  %v833_v59 = vadd.f32 %v829_v52, %v820_v37  ;;  %v830_v1 = vadd.f32 %v826_v42, %v817_v44  ;;  %v832_v49 = vadd.f32 %v828_v4, %v819_v35  ;;  %v853_v61 = vmul.f32 %v849_v17, %v3125_v63  ;;  %v922_v35 = vld [vmem:[#allocation6 + $0x2d8] sm:$0xff] }
 0x145   : > { %v844_v57 = vadd.f32 %v840_v54, %v831_v38  ;;  %v2490_v60 = vunpack.i.h.bf16 %v3438_v55  ;;  %v855_v29 = vmul.f32 %v851_v20, %v3125_v63  ;;  %v852_v34 = vmul.f32 %v848_v3, %v4135_v9  ;;  %v868_v55 = vld [vmem:[#allocation6 + $0x298] sm:$0xff]  ;;  %v891_v54 = vld [vmem:[#allocation6 + $0x2a0] sm:$0xff]  ;;  %v893_v38 = vld [vmem:[#allocation6 + $0x2b0] sm:$0xff] }
 0x146   : > { %v846_v26 = vadd.f32 %v842_v13, %v833_v59  ;;  %v843_v14 = vadd.f32 %v839_v48, %v830_v1  ;;  %v878_v62 = vsel %vm876_vm11, %v3433_v5, %v2489_v56  ;;  %v854_v16 = vmul.f32 %v850_v19, %v4135_v9  ;;  %v969_v9 = vld [vmem:[#allocation6 + $0x308] sm:$0xff] }
 0x147   : > { %v3461_v32 = vpop.permute.xlu1 %924  ;;  %v845_v27 = vadd.f32 %v841_v41, %v832_v49  ;;  %v877_v63 = vsel %vm876_vm11, %v3426_v46, %v3433_v5  ;;  %v857_v51 = vadd.f32 %v853_v61, %v844_v57  ;;  %v903_v31 = vsel %vm876_vm11, %v3451_v33, %v2490_v60  ;;  %v919_v49 = vld [vmem:[#allocation6 + $0x2c0] sm:$0xff]  ;;  %v945_v41 = vld [vmem:[#allocation6 + $0x2e8] sm:$0xff]  ;;  %v947_v60 = vld [vmem:[#allocation6 + $0x2f8] sm:$0xff] }
 0x148   : > { %v3464_v0 = vpop.permute.xlu0 %926  ;;  %v859_v50 = vadd.f32 %v855_v29, %v846_v26  ;;  %v882_v43 = vmul.f32 %v878_v62, %v866_v21  ;;  %v856_v52 = vadd.f32 %v852_v34, %v843_v14  ;;  %v881_v6 = vmul.f32 %v877_v63, %v865_v24 }
 0x149   : > { %v884_v37 = vmul.f32 %v878_v62, %v868_v55  ;;  %v858_v5 = vadd.f32 %v854_v16, %v845_v27  ;;  %v902_v44 = vsel %vm876_vm11, %v3447_v10, %v3451_v33  ;;  %v907_v4 = vmul.f32 %v903_v31, %v892_v11  ;;  %v921_v10 = vld [vmem:[#allocation6 + $0x2d0] sm:$0xff]  ;;  %v971_v16 = vld [vmem:[#allocation6 + $0x318] sm:$0xff]  ;;  %v944_v27 = vld [vmem:[#allocation6 + $0x2e0] sm:$0xff] }
 0x14a   : > { %v886_v42 = vadd.f32 %v882_v43, %v857_v51  ;;  %v909_v13 = vmul.f32 %v903_v31, %v894_v36  ;;  %v883_v20 = vmul.f32 %v877_v63, %v867_v23  ;;  %v885_v56 = vadd.f32 %v881_v6, %v856_v52  ;;  %v946_v31 = vld [vmem:[#allocation6 + $0x2f0] sm:$0xff]  ;;  %v968_v43 = vld [vmem:[#allocation6 + $0x300] sm:$0xff] }
 0x14b   : > { %v3468_v25 = vpop.permute.xlu1 %2492  ;;  %v888_v53 = vadd.f32 %v884_v37, %v859_v50  ;;  %v930_v33 = vsel %vm876_vm11, %v3461_v32, %v3464_v0  ;;  %v906_v61 = vmul.f32 %v902_v44, %v891_v54  ;;  %v908_v26 = vmul.f32 %v902_v44, %v893_v38  ;;  %v970_v52 = vld [vmem:[#allocation6 + $0x310] sm:$0xff]  ;;  %v993_v37 = vld [vmem:[#allocation6 + $0x328] sm:$0xff]  ;;  %v995_v44 = vld [vmem:[#allocation6 + $0x338] sm:$0xff] }
 0x14c   : > { %v3470_v8 = vpop.permute.xlu0 %949  ;;  %v2494_v15 = vunpack.i.l.bf16 %v3468_v25  ;;  %v2495_v59 = vunpack.i.h.bf16 %v3468_v25  ;;  %v887_v3 = vadd.f32 %v883_v20, %v858_v5  ;;  %v911_v19 = vadd.f32 %v907_v4, %v886_v42  ;;  %v1018_v20 = vld [vmem:[#allocation6 + $0x358] sm:$0xff] }
 0x14d   : > { %v913_v29 = vadd.f32 %v909_v13, %v888_v53  ;;  %v934_v32 = vmul.f32 %v930_v33, %v919_v49  ;;  %v910_v50 = vadd.f32 %v906_v61, %v885_v56  ;;  %v994_v56 = vld [vmem:[#allocation6 + $0x330] sm:$0xff] }
 0x14e   : > { %v931_v46 = vsel %vm876_vm11, %v3464_v0, %v2494_v15  ;;  %v936_v0 = vmul.f32 %v930_v33, %v921_v10  ;;  %v912_v11 = vadd.f32 %v908_v26, %v887_v3 }
 0x14f   : > { %v3474_v28 = vpop.permute.xlu1 %951  ;;  %v935_v1 = vmul.f32 %v931_v46, %v920_v39  ;;  %v937_v57 = vmul.f32 %v931_v46, %v922_v35 }
 0x150   : > { %v3476_v2 = vpop.permute.xlu0 %972  ;;  %v956_v25 = vsel %vm876_vm11, %v3474_v28, %v2495_v59  ;;  %v955_v55 = vsel %vm876_vm11, %v3470_v8, %v3474_v28  ;;  %v938_v8 = vadd.f32 %v934_v32, %v910_v50  ;;  %v940_v28 = vadd.f32 %v936_v0, %v912_v11  ;;  %v1017_v32 = vld [vmem:[#allocation6 + $0x350] sm:$0xff]  ;;  %v1041_v0 = vld [vmem:[#allocation6 + $0x378] sm:$0xff] }
 0x151   : > { %v939_v62 = vadd.f32 %v935_v1, %v911_v19  ;;  %v960_v15 = vmul.f32 %v956_v25, %v945_v41  ;;  %v941_v63 = vadd.f32 %v937_v57, %v913_v29  ;;  %v962_v51 = vmul.f32 %v956_v25, %v947_v60  ;;  %v992_v1 = vld [vmem:[#allocation6 + $0x320] sm:$0xff]  ;;  %v1039_v60 = vld [vmem:[#allocation6 + $0x368] sm:$0xff]  ;;  %v1064_v11 = vld [vmem:[#allocation6 + $0x398] sm:$0xff] }
 0x152   : > { %v959_v5 = vmul.f32 %v955_v55, %v944_v27  ;;  %v961_v35 = vmul.f32 %v955_v55, %v946_v31  ;;  %v1015_v19 = vld [vmem:[#allocation6 + $0x340] sm:$0xff] }
 0x153   : > { %v3482_v40 = vpop.permute.xlu1 %974  ;;  %v964_v42 = vadd.f32 %v960_v15, %v939_v62  ;;  %v966_v54 = vadd.f32 %v962_v51, %v941_v63  ;;  %v1062_v63 = vld [vmem:[#allocation6 + $0x388] sm:$0xff]  ;;  %v1038_v55 = vld [vmem:[#allocation6 + $0x360] sm:$0xff] }
 0x154   : > { %v3484_v47 = vpop.permute.xlu0 %2497  ;;  %v979_v36 = vsel %vm978_vm12, %v3476_v2, %v3482_v40  ;;  %v1016_v2 = vld [vmem:[#allocation6 + $0x348] sm:$0xff]  ;;  %v963_v25 = vadd.f32 %v959_v5, %v938_v8  ;;  %v965_v26 = vadd.f32 %v961_v35, %v940_v28  ;;  %v1061_v28 = vld [vmem:[#allocation6 + $0x380] sm:$0xff]  ;;  %v1063_v5 = vld [vmem:[#allocation6 + $0x390] sm:$0xff] }
 0x155   : > { %v2499_v45 = vunpack.i.l.bf16 %v3484_v47  ;;  %v2500_v34 = vunpack.i.h.bf16 %v3484_v47  ;;  %v983_v38 = vmul.f32 %v979_v36, %v968_v43  ;;  %v985_v53 = vmul.f32 %v979_v36, %v970_v52  ;;  %v1040_v36 = vld [vmem:[#allocation6 + $0x370] sm:$0xff] }
 0x157   : > { %v3490_v18 = vpop.permute.xlu1 %996  ;;  %v980_v14 = vsel %vm978_vm12, %v3482_v40, %v2499_v45  ;;  %v987_v29 = vadd.f32 %v983_v38, %v963_v25  ;;  %v989_v62 = vadd.f32 %v985_v53, %v965_v26 }
 0x158   : > { %v3492_v58 = vpop.permute.xlu0 %998  ;;  %v984_v23 = vmul.f32 %v980_v14, %v969_v9  ;;  %v986_v6 = vmul.f32 %v980_v14, %v971_v16 }
 0x159   : > { %v1003_v39 = vsel %vm978_vm12, %v3492_v58, %v2500_v34  ;;  %v1002_v59 = vsel %vm978_vm12, %v3490_v18, %v3492_v58 }
 0x15a   : > { %v988_v13 = vadd.f32 %v984_v23, %v964_v42  ;;  %v1007_v45 = vmul.f32 %v1003_v39, %v993_v37  ;;  %v990_v49 = vadd.f32 %v986_v6, %v966_v54  ;;  %v1009_v10 = vmul.f32 %v1003_v39, %v995_v44  ;;  %v1086_v44 = vld [vmem:[#allocation6 + $0x3a8] sm:$0xff] }
 0x15b   : > { %v3500_v30 = vpop.permute.xlu1 %1019  ;;  %v1006_v9 = vmul.f32 %v1002_v59, %v992_v1  ;;  %v1008_v34 = vmul.f32 %v1002_v59, %v994_v56  ;;  %v1109_v1 = vld [vmem:[#allocation6 + $0x3c8] sm:$0xff] }
 0x15c   : > { %v3502_v7 = vpop.permute.xlu0 %1021  ;;  %v1011_v14 = vadd.f32 %v1007_v45, %v988_v13  ;;  %v1013_v15 = vadd.f32 %v1009_v10, %v990_v49  ;;  %v1085_v45 = vld [vmem:[#allocation6 + $0x3a0] sm:$0xff]  ;;  %v1087_v49 = vld [vmem:[#allocation6 + $0x3b0] sm:$0xff] }
 0x15d   : > { %v1025_v18 = vsel %vm978_vm12, %v3500_v30, %v3502_v7  ;;  %v1010_v6 = vadd.f32 %v1006_v9, %v987_v29  ;;  %v1012_v37 = vadd.f32 %v1008_v34, %v989_v62  ;;  %v1110_v34 = vld [vmem:[#allocation6 + $0x3d0] sm:$0xff] }
 0x15e   : > { %v1031_v43 = vmul.f32 %v1025_v18, %v1017_v32  ;;  %v1132_v32 = vld [vmem:[#allocation6 + $0x3e8] sm:$0xff] }
 0x15f   : > { %v3514_v12 = vpop.permute.xlu1 %2502 }
 0x160   : > { %v3516_v22 = vpop.permute.xlu0 %1042  ;;  %v2504_v47 = vunpack.i.l.bf16 %v3514_v12  ;;  %v2505_v33 = vunpack.i.h.bf16 %v3514_v12  ;;  %v1035_v13 = vadd.f32 %v1031_v43, %v1012_v37 }
 0x162   : > { %v1026_v40 = vsel %vm978_vm12, %v3502_v7, %v2504_v47  ;;  %v1029_v7 = vmul.f32 %v1025_v18, %v1015_v19 }
 0x163   : > { %v3525_v17 = vpop.permute.xlu1 %1044  ;;  %v1030_v3 = vmul.f32 %v1026_v40, %v1016_v2  ;;  %v1032_v58 = vmul.f32 %v1026_v40, %v1018_v20  ;;  %v1088_v40 = vld [vmem:[#allocation6 + $0x3b8] sm:$0xff] }
 0x164   : > { %v3527_v48 = vpop.permute.xlu0 %1065  ;;  %v1049_v12 = vsel %vm978_vm12, %v3525_v17, %v2505_v33  ;;  %v1048_v47 = vsel %vm978_vm12, %v3516_v22, %v3525_v17  ;;  %v1033_v54 = vadd.f32 %v1029_v7, %v1010_v6 }
 0x165   : > { %v1034_v51 = vadd.f32 %v1030_v3, %v1011_v14  ;;  %v1053_v50 = vmul.f32 %v1049_v12, %v1039_v60  ;;  %v1036_v23 = vadd.f32 %v1032_v58, %v1013_v15  ;;  %v1055_v52 = vmul.f32 %v1049_v12, %v1041_v0  ;;  %v1108_v12 = vld [vmem:[#allocation6 + $0x3c0] sm:$0xff] }
 0x166   : > { %v1052_v8 = vmul.f32 %v1048_v47, %v1038_v55  ;;  %v1054_v38 = vmul.f32 %v1048_v47, %v1040_v36  ;;  %v1131_v55 = vld [vmem:[#allocation6 + $0x3e0] sm:$0xff] }
 0x167   : > { %v3537_v21 = vpop.permute.xlu1 %1067  ;;  %v1057_v2 = vadd.f32 %v1053_v50, %v1034_v51  ;;  %v1059_v59 = vadd.f32 %v1055_v52, %v1036_v23  ;;  %v1133_v51 = vld [vmem:[#allocation6 + $0x3f0] sm:$0xff]  ;;  %v1157_v23 = vld [vmem:[#allocation6 + $0x418] sm:$0xff] }
 0x168   : > { %v3539_v24 = vpop.permute.xlu0 %2507  ;;  %v1072_v42 = vsel %vm1071_vm13, %v3527_v48, %v3537_v21  ;;  %v1056_v25 = vadd.f32 %v1052_v8, %v1033_v54  ;;  %v1058_v58 = vadd.f32 %v1054_v38, %v1035_v13  ;;  %v1181_v13 = vld [vmem:[#allocation6 + $0x438] sm:$0xff] }
 0x169   : > { %v2509_v57 = vunpack.i.l.bf16 %v3539_v24  ;;  %v2510_v16 = vunpack.i.h.bf16 %v3539_v24  ;;  %v1078_v56 = vmul.f32 %v1072_v42, %v1063_v5 }
 0x16b   : > { %v3550_v46 = vpop.permute.xlu1 %1089  ;;  %v1073_v27 = vsel %vm1071_vm13, %v3537_v21, %v2509_v57  ;;  %v1076_v21 = vmul.f32 %v1072_v42, %v1061_v28  ;;  %v1111_v57 = vld [vmem:[#allocation6 + $0x3d8] sm:$0xff]  ;;  %v1154_v42 = vld [vmem:[#allocation6 + $0x400] sm:$0xff] }
 0x16c   : > { %v3552_v4 = vpop.permute.xlu0 %1091  ;;  %v1077_v39 = vmul.f32 %v1073_v27, %v1062_v63  ;;  %v1079_v22 = vmul.f32 %v1073_v27, %v1064_v11  ;;  %v1134_v63 = vld [vmem:[#allocation6 + $0x3f8] sm:$0xff] }
 0x16d   : > { %v1096_v17 = vsel %vm1071_vm13, %v3552_v4, %v2510_v16  ;;  %v1095_v20 = vsel %vm1071_vm13, %v3550_v46, %v3552_v4  ;;  %v1080_v15 = vadd.f32 %v1076_v21, %v1056_v25  ;;  %v1082_v16 = vadd.f32 %v1078_v56, %v1058_v58  ;;  %v1178_v21 = vld [vmem:[#allocation6 + $0x420] sm:$0xff]  ;;  %v1180_v56 = vld [vmem:[#allocation6 + $0x430] sm:$0xff] }
 0x16e   : > { %v1081_v10 = vadd.f32 %v1077_v39, %v1057_v2  ;;  %v1100_v33 = vmul.f32 %v1096_v17, %v1086_v44  ;;  %v1083_v3 = vadd.f32 %v1079_v22, %v1059_v59  ;;  %v1102_v26 = vmul.f32 %v1096_v17, %v1088_v40  ;;  %v1156_v44 = vld [vmem:[#allocation6 + $0x410] sm:$0xff]  ;;  %v1179_v40 = vld [vmem:[#allocation6 + $0x428] sm:$0xff] }
 0x16f   : > { %v3561_v41 = vpop.permute.xlu1 %1112  ;;  %v1099_v60 = vmul.f32 %v1095_v20, %v1085_v45  ;;  %v1101_v9 = vmul.f32 %v1095_v20, %v1087_v49 }
 0x170   : > { %v3563_v61 = vpop.permute.xlu0 %1114  ;;  %v1104_v27 = vadd.f32 %v1100_v33, %v1081_v10 }
 0x171   : > { %v1118_v46 = vsel %vm1071_vm13, %v3561_v41, %v3563_v61  ;;  %v1103_v6 = vadd.f32 %v1099_v60, %v1080_v15  ;;  %v1105_v37 = vadd.f32 %v1101_v9, %v1082_v16  ;;  %v1225_v16 = vld [vmem:[#allocation6 + $0x468] sm:$0xff] }
 0x172   : > { %v1122_v7 = vmul.f32 %v1118_v46, %v1108_v12  ;;  %v1124_v11 = vmul.f32 %v1118_v46, %v1110_v34  ;;  %v1202_v46 = vld [vmem:[#allocation6 + $0x448] sm:$0xff] }
 0x173   : > { %v2513_v30 = vpop.permute.xlu1 %2512 }
 0x174   : > { %v1136_v31 = vpop.permute.xlu0 %1135  ;;  %v2514_v24 = vunpack.i.l.bf16 %v2513_v30  ;;  %v2515_v19 = vunpack.i.h.bf16 %v2513_v30  ;;  %v1106_v30 = vadd.f32 %v1102_v26, %v1083_v3  ;;  %v1126_v54 = vadd.f32 %v1122_v7, %v1103_v6  ;;  %v1201_v26 = vld [vmem:[#allocation6 + $0x440] sm:$0xff] }
 0x175   : > { %v1128_v38 = vadd.f32 %v1124_v11, %v1105_v37 }
 0x176   : > { %v1119_v48 = vsel %vm1071_vm13, %v3563_v61, %v2514_v24  ;;  %v1155_v61 = vld [vmem:[#allocation6 + $0x408] sm:$0xff] }
 0x177   : > { %v1138_v35 = vpop.permute.xlu1 %1137  ;;  %v1123_v4 = vmul.f32 %v1119_v48, %v1109_v1  ;;  %v1125_v14 = vmul.f32 %v1119_v48, %v1111_v57 }
 0x178   : > { %v1159_v53 = vpop.permute.xlu0 %1158  ;;  %v1142_v0 = vsel %vm1071_vm13, %v1138_v35, %v2515_v19  ;;  %v1141_v41 = vsel %vm1071_vm13, %v1136_v31, %v1138_v35  ;;  %v1203_v19 = vld [vmem:[#allocation6 + $0x450] sm:$0xff] }
 0x179   : > { %v1127_v43 = vadd.f32 %v1123_v4, %v1104_v27  ;;  %v1146_v36 = vmul.f32 %v1142_v0, %v1132_v32  ;;  %v1129_v39 = vadd.f32 %v1125_v14, %v1106_v30  ;;  %v1148_v8 = vmul.f32 %v1142_v0, %v1134_v63  ;;  %v1204_v4 = vld [vmem:[#allocation6 + $0x458] sm:$0xff] }
 0x17a   : > { %v1145_v28 = vmul.f32 %v1141_v41, %v1131_v55  ;;  %v1147_v5 = vmul.f32 %v1141_v41, %v1133_v51  ;;  %v1227_v27 = vld [vmem:[#allocation6 + $0x478] sm:$0xff]  ;;  %v1224_v41 = vld [vmem:[#allocation6 + $0x460] sm:$0xff] }
 0x17b   : > { %v1161_v18 = vpop.permute.xlu1 %1160  ;;  %v1150_v2 = vadd.f32 %v1146_v36, %v1127_v43  ;;  %v1152_v20 = vadd.f32 %v1148_v8, %v1129_v39  ;;  %v1247_v39 = vld [vmem:[#allocation8 + $0x8] sm:$0xff] }
 0x17c   : > { %v2518_v29 = vpop.permute.xlu0 %2517  ;;  %v1165_v31 = vsel %vm1164_vm14, %v1159_v53, %v1161_v18  ;;  %v1149_v10 = vadd.f32 %v1145_v28, %v1126_v54  ;;  %v1151_v53 = vadd.f32 %v1147_v5, %v1128_v38 }
 0x17d   : > { %v2519_v62 = vunpack.i.l.bf16 %v2518_v29  ;;  %v2520_v52 = vunpack.i.h.bf16 %v2518_v29  ;;  %v1169_v1 = vmul.f32 %v1165_v31, %v1154_v42  ;;  %v1171_v48 = vmul.f32 %v1165_v31, %v1156_v44  ;;  %v1246_v42 = vld [vmem:[#allocation8] sm:$0xff]  ;;  %v1248_v31 = vld [vmem:[#allocation8 + $0x10] sm:$0xff] }
 0x17f   : > { %v1166_v47 = vsel %vm1164_vm14, %v1161_v18, %v2519_v62  ;;  %v1183_v50 = vpop.permute.xlu1 %1182  ;;  %v1173_v9 = vadd.f32 %v1169_v1, %v1149_v10  ;;  %v1175_v34 = vadd.f32 %v1171_v48, %v1151_v53 }
 0x180   : > { %v1185_v24 = vpop.permute.xlu0 %1184  ;;  %v1170_v22 = vmul.f32 %v1166_v47, %v1155_v61  ;;  %v1172_v17 = vmul.f32 %v1166_v47, %v1157_v23  ;;  %v1226_v61 = vld [vmem:[#allocation6 + $0x470] sm:$0xff] }
 0x181   : > { %v1189_v59 = vsel %vm1164_vm14, %v1185_v24, %v2520_v52  ;;  %v1188_v49 = vsel %vm1164_vm14, %v1183_v50, %v1185_v24 }
 0x182   : > { %v1174_v33 = vadd.f32 %v1170_v22, %v1150_v2  ;;  %v1176_v57 = vadd.f32 %v1172_v17, %v1152_v20  ;;  %v1193_v25 = vmul.f32 %v1189_v59, %v1179_v40  ;;  %v1195_v3 = vmul.f32 %v1189_v59, %v1181_v13 }
 0x183   : > { %v1206_v35 = vpop.permute.xlu1 %1205  ;;  %v1192_v60 = vmul.f32 %v1188_v49, %v1178_v21  ;;  %v1194_v12 = vmul.f32 %v1188_v49, %v1180_v56 }
 0x184   : > { %v1208_v45 = vpop.permute.xlu0 %1207  ;;  %v1197_v63 = vadd.f32 %v1193_v25, %v1174_v33  ;;  %v1199_v30 = vadd.f32 %v1195_v3, %v1176_v57 }
 0x185   : > { %v1211_v18 = vsel %vm1164_vm14, %v1206_v35, %v1208_v45  ;;  %v1196_v47 = vadd.f32 %v1192_v60, %v1173_v9  ;;  %v1198_v50 = vadd.f32 %v1194_v12, %v1175_v34  ;;  %v1249_v35 = vld [vmem:[#allocation8 + $0x18] sm:$0xff] }
 0x186   : > { %v1215_v32 = vmul.f32 %v1211_v18, %v1201_v26  ;;  %v1217_v0 = vmul.f32 %v1211_v18, %v1203_v19  ;;  %v4136_v19 = vld [vmem:[#allocation19_spill] sm:$0xff] }
 0x187   : > { %v2523_v58 = vpop.permute.xlu1 %2522 }
 0x188   : > { %v2524_v29 = vunpack.i.l.bf16 %v2523_v58  ;;  %v1229_v14 = vpop.permute.xlu0 %1228  ;;  %v2525_v62 = vunpack.i.h.bf16 %v2523_v58  ;;  %v1219_v6 = vadd.f32 %v1215_v32, %v1196_v47  ;;  %v1221_v37 = vadd.f32 %v1217_v0, %v1198_v50  ;;  %v1283_v32 = vld [vmem:[#allocation9 + $0x8] sm:$0xff] }
 0x18a   : > { %v1212_v15 = vsel %vm1164_vm14, %v1208_v45, %v2524_v29 }
 0x18b   : > { %v1216_v7 = vmul.f32 %v1212_v15, %v1202_v46  ;;  %v1218_v55 = vmul.f32 %v1212_v15, %v1204_v4  ;;  %v1231_v51 = vpop.permute.xlu1 %1230  ;;  %v1284_v15 = vld [vmem:[#allocation9 + $0x10] sm:$0xff] }
 0x18c   : > { %v1235_v11 = vsel %vm1164_vm14, %v1231_v51, %v2525_v62  ;;  %v1234_v43 = vsel %vm1164_vm14, %v1229_v14, %v1231_v51  ;;  %v2528_v18 = vpop.permute.xlu0 %2527  ;;  %v1282_v14 = vld [vmem:[#allocation9] sm:$0xff]  ;;  %v1314_v51 = vld [vmem:[#allocation9 + $0x38] sm:$0xff] }
 0x18d   : > { %v1220_v36 = vadd.f32 %v1216_v7, %v1197_v63  ;;  %v1222_v23 = vadd.f32 %v1218_v55, %v1199_v30  ;;  %v1239_v52 = vmul.f32 %v1235_v11, %v1225_v16  ;;  %v1241_v24 = vmul.f32 %v1235_v11, %v1227_v27  ;;  %v1285_v16 = vld [vmem:[#allocation9 + $0x18] sm:$0xff]  ;;  %v1311_v27 = vld [vmem:[#allocation9 + $0x20] sm:$0xff]  ;;  %v1312_v7 = vld [vmem:[#allocation9 + $0x28] sm:$0xff] }
 0x18e   : > { %v1238_v8 = vmul.f32 %v1234_v43, %v1224_v41  ;;  %v1240_v28 = vmul.f32 %v1234_v43, %v1226_v61  ;;  %v2529_v29 = vunpack.i.l.bf16 %v2528_v18  ;;  %v2530_v63 = vunpack.i.h.bf16 %v2528_v18  ;;  %v1313_v55 = vld [vmem:[#allocation9 + $0x30] sm:$0xff] }
 0x18f   : > { %v1243_v5 = vadd.f32 %v1239_v52, %v1220_v36  ;;  %v1245_v44 = vadd.f32 %v1241_v24, %v1222_v23  ;;  %v3723_v58 = vpop.permute.xlu1 %2532 }
 0x190   : > { %v1242_v22 = vadd.f32 %v1238_v8, %v1219_v6  ;;  %v1244_v17 = vadd.f32 %v1240_v28, %v1221_v37  ;;  %v3729_v60 = vpop.permute.xlu0 %2537  ;;  %v1349_v37 = vld [vmem:[#allocation9 + $0x40] sm:$0xff]  ;;  %v1351_v8 = vld [vmem:[#allocation9 + $0x50] sm:$0xff] }
 0x191   : > { %v1251_v54 = vadd.f32 %v1247_v39, %v1243_v5  ;;  %v1253_v13 = vadd.f32 %v1249_v35, %v1245_v44  ;;  %v2534_v39 = vunpack.i.l.bf16 %v3723_v58  ;;  %v1350_v5 = vld [vmem:[#allocation9 + $0x48] sm:$0xff] }
 0x192   : > { %v1250_v38 = vadd.f32 %v1246_v42, %v1242_v22  ;;  %v1252_v40 = vadd.f32 %v1248_v31, %v1244_v17  ;;  %v1352_v42 = vld [vmem:[#allocation9 + $0x58] sm:$0xff] }
 0x193   : > { %v1255_v2 = vmax.f32 %v1251_v54, 0.0  ;;  %v1257_v21 = vmax.f32 %v1253_v13, 0.0  ;;  %v3731_v12 = vpop.permute.xlu1 %2542 }
 0x194   : > { %v1254_v59 = vmax.f32 %v1250_v38, 0.0  ;;  %v1256_v48 = vmax.f32 %v1252_v40, 0.0  ;;  %v3739_v46 = vpop.permute.xlu0 %2547 }
 0x195   : > { %v1275_v45 = vrot.slane %v1255_v2, 4  ;;  %v1341_v53 = vrot.slane %v1257_v21, 4 }
 0x196   : > { %v1274_v20 = vrot.slane %v1254_v59, 4  ;;  %v1340_v10 = vrot.slane %v1256_v48, 4 }
 0x197   : > { %v3600_v1 = vsel %vm357_vm0, %v1255_v2, %v1275_v45  ;;  %v3610_v49 = vsel %vm357_vm0, %v1275_v45, %v1255_v2  ;;  %v3623_v25 = vsel %vm357_vm0, %v1257_v21, %v1341_v53  ;;  %v3633_v26 = vsel %vm357_vm0, %v1341_v53, %v1257_v21  ;;  %v3743_v4 = vpop.permute.xlu1 %2552  ;;  %v1378_v45 = vld [vmem:[#allocation9 + $0x60] sm:$0xff]  ;;  %v1381_v53 = vld [vmem:[#allocation9 + $0x78] sm:$0xff] }
 0x198   : > { %v3603_v56 = vsel %vm357_vm0, %v1254_v59, %v1274_v20  ;;  %1293 = vrot.lane.b32.xlu0 %v3600_v1, %s2815_s24  ;;  %v3613_v33 = vsel %vm357_vm0, %v1274_v20, %v1254_v59  ;;  %v3620_v57 = vsel %vm357_vm0, %v1256_v48, %v1340_v10  ;;  %v3630_v3 = vsel %vm357_vm0, %v1340_v10, %v1256_v48  ;;  %v1380_v48 = vld [vmem:[#allocation9 + $0x70] sm:$0xff]  ;;  %v1379_v10 = vld [vmem:[#allocation9 + $0x68] sm:$0xff] }
 0x199   : > { %1291 = vrot.lane.b32.xlu1 %v3603_v56, %s2815_s24  ;;  %v2535_v20 = vunpack.i.h.bf16 %v3723_v58 }
 0x19c   : > { %1322 = vrot.lane.b32.xlu0 %v3610_v49, %s2815_s24 }
 0x19d   : > { %1320 = vrot.lane.b32.xlu1 %v3613_v33, %s2815_s24 }
 0x1a0   : > { %1358 = vrot.lane.b32.xlu0 %v3620_v57, %s2815_s24 }
 0x1a1   : > { %1360 = vrot.lane.b32.xlu1 %v3623_v25, %s2815_s24 }
 0x1a4   : > { %1387 = vrot.lane.b32.xlu0 %v3630_v3, %s2815_s24 }
 0x1a5   : > { %1389 = vrot.lane.b32.xlu1 %v3633_v26, %s2815_s24  ;;  %s2823_s24 = smov [#allocation12]  }
 0x1a8   : > { %1412 = vrot.lane.b32.xlu0 %v3600_v1, %s2816_s26 }
 0x1a9   : > { %1410 = vrot.lane.b32.xlu1 %v3603_v56, %s2816_s26 }
 0x1ac   : > { %1435 = vrot.lane.b32.xlu0 %v3610_v49, %s2816_s26 }
 0x1ad   : > { %1433 = vrot.lane.b32.xlu1 %v3613_v33, %s2816_s26 }
 0x1b0   : > { %1456 = vrot.lane.b32.xlu0 %v3620_v57, %s2816_s26 }
 0x1b1   : > { %1458 = vrot.lane.b32.xlu1 %v3623_v25, %s2816_s26 }
 0x1b4   : > { %1479 = vrot.lane.b32.xlu0 %v3630_v3, %s2816_s26 }
 0x1b5   : > { %1481 = vrot.lane.b32.xlu1 %v3633_v26, %s2816_s26 }
 0x1b8   : > { %1504 = vrot.lane.b32.xlu0 %v3600_v1, %s2817_s11 }
 0x1b9   : > { %1502 = vrot.lane.b32.xlu1 %v3603_v56, %s2817_s11 }
 0x1bc   : > { %1527 = vrot.lane.b32.xlu0 %v3610_v49, %s2817_s11 }
 0x1bd   : > { %1525 = vrot.lane.b32.xlu1 %v3613_v33, %s2817_s11 }
 0x1c0   : > { %1548 = vrot.lane.b32.xlu0 %v3620_v57, %s2817_s11 }
 0x1c1   : > { %1550 = vrot.lane.b32.xlu1 %v3623_v25, %s2817_s11 }
 0x1c4   : > { %1571 = vrot.lane.b32.xlu0 %v3630_v3, %s2817_s11 }
 0x1c5   : > { %1573 = vrot.lane.b32.xlu1 %v3633_v26, %s2817_s11  ;;  %s2737_s11 = sshll.u32 %s2823_s24, 4  ;;  %s2738_s11 = int_to_ptr.vmem [resolvable:$false] %s2737_s11 }
 0x1c6   : > { %p2740_p13 = scmp.lt.s32.totalorder %s4048_s12, %s2738_s11 }
 0x1c8   : > { %2557 = vrot.lane.b32.xlu0 %v4136_v19, %s2818_s28 }
 0x1c9   : > { %1594 = vrot.lane.b32.xlu1 %v3603_v56, %s2818_s28 }
 0x1cc   : > { %1596 = vrot.lane.b32.xlu0 %v3600_v1, %s2818_s28 }
 0x1cd   : > { %1617 = vrot.lane.b32.xlu1 %v3613_v33, %s2818_s28 }
 0x1d0   : > { %1619 = vrot.lane.b32.xlu0 %v3610_v49, %s2818_s28 }
 0x1d1   : > { %2562 = vrot.lane.b32.xlu1 %v4136_v19, %s2818_s28 }
 0x1d4   : > { %1640 = vrot.lane.b32.xlu0 %v3620_v57, %s2818_s28 }
 0x1d5   : > { %1642 = vrot.lane.b32.xlu1 %v3623_v25, %s2818_s28 }
 0x1d8   : > { %1663 = vrot.lane.b32.xlu0 %v3630_v3, %s2818_s28 }
 0x1d9   : > { %1665 = vrot.lane.b32.xlu1 %v3633_v26, %s2818_s28  ;;  %s2739_s28 = scalar_lea.vmem %s2738_s11, 1024 }
 0x1da   : > { %p2741_p0 = scmp.lt.s32.totalorder %s2739_s28, %s2733_s7 }
 0x1dc   : > { %1741 = vrot.lane.b32.xlu0 %v3603_v56, %s2819_s6  ;;  %p2742_p11 = por %p2741_p0, %p2740_p13 }
 0x1dd   : > { %1743 = vrot.lane.b32.xlu1 %v3600_v1, %s2819_s6 }
 0x1de   : > { %p2743_p5 = pnand %p2742_p11, %p2736_p1 }
 0x1e0   : > { %2567 = vrot.lane.b32.xlu0 %v4136_v19, %s2819_s6 }
 0x1e1   : > { %1766 = vrot.lane.b32.xlu1 %v3613_v33, %s2819_s6 }
 0x1e4   : > { %1768 = vrot.lane.b32.xlu0 %v3610_v49, %s2819_s6 }
 0x1e5   : > { %1794 = vrot.lane.b32.xlu1 %v3620_v57, %s2819_s6 }
 0x1e8   : > { %1796 = vrot.lane.b32.xlu0 %v3623_v25, %s2819_s6 }
 0x1e9   : > { %2572 = vrot.lane.b32.xlu1 %v4136_v19, %s2819_s6 }
 0x1ec   : > { %1819 = vrot.lane.b32.xlu0 %v3630_v3, %s2819_s6 }
 0x1ed   : > { %1821 = vrot.lane.b32.xlu1 %v3633_v26, %s2819_s6 }
 0x1f0   : > { %1842 = vrot.lane.b32.xlu0 %v3603_v56, %s2820_s8 }
 0x1f1   : > { %1844 = vrot.lane.b32.xlu1 %v3600_v1, %s2820_s8 }
 0x1f4   : > { %2577 = vrot.lane.b32.xlu0 %v4136_v19, %s2820_s8 }
 0x1f5   : > { %1865 = vrot.lane.b32.xlu1 %v3613_v33, %s2820_s8 }
 0x1f8   : > { %1867 = vrot.lane.b32.xlu0 %v3610_v49, %s2820_s8 }
 0x1f9   : > { %1888 = vrot.lane.b32.xlu1 %v3620_v57, %s2820_s8 }
 0x1fc   : > { %1890 = vrot.lane.b32.xlu0 %v3623_v25, %s2820_s8 }
 0x1fd   : > { %2582 = vrot.lane.b32.xlu1 %v4136_v19, %s2820_s8 }
 0x200   : > { %1911 = vrot.lane.b32.xlu0 %v3630_v3, %s2820_s8 }
 0x201   : > { %1913 = vrot.lane.b32.xlu1 %v3633_v26, %s2820_s8 }
 0x204   : > { %1934 = vrot.lane.b32.xlu0 %v3603_v56, %s2821_s23 }
 0x205   : > { %1936 = vrot.lane.b32.xlu1 %v3600_v1, %s2821_s23 }
 0x208   : > { %2587 = vrot.lane.b32.xlu0 %v4136_v19, %s2821_s23 }
 0x209   : > { %1957 = vrot.lane.b32.xlu1 %v3613_v33, %s2821_s23 }
 0x20a   : > { %v1294_v9 = vpop.permute.xlu0 %1293 }
 0x20b   : > { %v1292_v34 = vpop.permute.xlu1 %1291 }
 0x20c   : > { %v1295_v0 = vsel %vm420_vm7, %v2529_v29, %v1292_v34  ;;  %v1296_v62 = vsel %vm420_vm7, %v1292_v34, %v1294_v9  ;;  %1959 = vrot.lane.b32.xlu0 %v3610_v49, %s2821_s23 }
 0x20d   : > { %1980 = vrot.lane.b32.xlu1 %v3620_v57, %s2821_s23  ;;  %v1299_v41 = vmul.f32 %v1295_v0, %v1282_v14  ;;  %v1300_v61 = vmul.f32 %v1296_v62, %v1283_v32  ;;  %v1301_v50 = vmul.f32 %v1295_v0, %v1284_v15  ;;  %v1302_v11 = vmul.f32 %v1296_v62, %v1285_v16 }
 0x20e   : > { %v1323_v30 = vpop.permute.xlu0 %1322 }
 0x20f   : > { %v1321_v47 = vpop.permute.xlu1 %1320 }
 0x210   : > { %v1324_v43 = vsel %vm420_vm7, %v2530_v63, %v1321_v47  ;;  %v1325_v36 = vsel %vm420_vm7, %v1321_v47, %v1323_v30  ;;  %1982 = vrot.lane.b32.xlu0 %v3623_v25, %s2821_s23  ;;  %v2539_v63 = vunpack.i.l.bf16 %v3729_v60 }
 0x211   : > { %v1328_v23 = vmul.f32 %v1324_v43, %v1311_v27  ;;  %v1329_v52 = vmul.f32 %v1325_v36, %v1312_v7  ;;  %v1330_v24 = vmul.f32 %v1324_v43, %v1313_v55  ;;  %v1331_v6 = vmul.f32 %v1325_v36, %v1314_v51  ;;  %2592 = vrot.lane.b32.xlu1 %v4136_v19, %s2821_s23  ;;  %v1404_v27 = vld [vmem:[#allocation9 + $0x80] sm:$0xff]  ;;  %v1405_v7 = vld [vmem:[#allocation9 + $0x88] sm:$0xff]  ;;  %v1406_v55 = vld [vmem:[#allocation9 + $0x90] sm:$0xff] }
 0x212   : > { %v1359_v28 = vpop.permute.xlu0 %1358  ;;  %v1407_v51 = vld [vmem:[#allocation9 + $0x98] sm:$0xff] }
 0x213   : > { %v1332_v44 = vadd.f32 %v1328_v23, %v1299_v41  ;;  %v1333_v31 = vadd.f32 %v1329_v52, %v1300_v61  ;;  %v1334_v22 = vadd.f32 %v1330_v24, %v1301_v50  ;;  %v1335_v17 = vadd.f32 %v1331_v6, %v1302_v11  ;;  %v1361_v35 = vpop.permute.xlu1 %1360 }
 0x214   : > { %v1362_v54 = vsel %vm420_vm7, %v2534_v39, %v1359_v28  ;;  %v1363_v38 = vsel %vm420_vm7, %v1359_v28, %v1361_v35  ;;  %2003 = vrot.lane.b32.xlu0 %v3630_v3, %s2821_s23  ;;  %v2540_v39 = vunpack.i.h.bf16 %v3729_v60  ;;  %v1428_v28 = vld [vmem:[#allocation9 + $0xa8] sm:$0xff] }
 0x215   : > { %v1366_v2 = vmul.f32 %v1362_v54, %v1349_v37  ;;  %v1368_v40 = vmul.f32 %v1362_v54, %v1351_v8  ;;  %v1367_v13 = vmul.f32 %v1363_v38, %v1350_v5  ;;  %v1369_v59 = vmul.f32 %v1363_v38, %v1352_v42  ;;  %2005 = vrot.lane.b32.xlu1 %v3633_v26, %s2821_s23  ;;  %v1427_v37 = vld [vmem:[#allocation9 + $0xa0] sm:$0xff]  ;;  %v1429_v5 = vld [vmem:[#allocation9 + $0xb0] sm:$0xff]  ;;  %v1430_v42 = vld [vmem:[#allocation9 + $0xb8] sm:$0xff] }
 0x216   : > { %v1388_v21 = vpop.permute.xlu0 %1387 }
 0x217   : > { %v1370_v18 = vadd.f32 %v1366_v2, %v1332_v44  ;;  %v1372_v29 = vadd.f32 %v1368_v40, %v1334_v22  ;;  %v1371_v9 = vadd.f32 %v1367_v13, %v1333_v31  ;;  %v1373_v34 = vadd.f32 %v1369_v59, %v1335_v17  ;;  %v1390_v14 = vpop.permute.xlu1 %1389  ;;  %v1450_v13 = vld [vmem:[#allocation9 + $0xc0] sm:$0xff] }
 0x218   : > { %v1391_v32 = vsel %vm420_vm7, %v2535_v20, %v1388_v21  ;;  %v1392_v0 = vsel %vm420_vm7, %v1388_v21, %v1390_v14  ;;  %2026 = vrot.lane.b32.xlu0 %v3603_v56, %s2822_s27  ;;  %v2544_v59 = vunpack.i.l.bf16 %v3731_v12  ;;  %v1453_v21 = vld [vmem:[#allocation9 + $0xd8] sm:$0xff] }
 0x219   : > { %v1395_v62 = vmul.f32 %v1391_v32, %v1378_v45  ;;  %v1397_v15 = vmul.f32 %v1391_v32, %v1380_v48  ;;  %v1396_v16 = vmul.f32 %v1392_v0, %v1379_v10  ;;  %v1398_v58 = vmul.f32 %v1392_v0, %v1381_v53  ;;  %2028 = vrot.lane.b32.xlu1 %v3600_v1, %s2822_s27  ;;  %v1452_v45 = vld [vmem:[#allocation9 + $0xd0] sm:$0xff]  ;;  %v1451_v48 = vld [vmem:[#allocation9 + $0xc8] sm:$0xff] }
 0x21a   : > { %v1413_v30 = vpop.permute.xlu0 %1412 }
 0x21b   : > { %v1399_v41 = vadd.f32 %v1395_v62, %v1370_v18  ;;  %v1401_v61 = vadd.f32 %v1397_v15, %v1372_v29  ;;  %v1400_v47 = vadd.f32 %v1396_v16, %v1371_v9  ;;  %v1402_v50 = vadd.f32 %v1398_v58, %v1373_v34  ;;  %v1411_v11 = vpop.permute.xlu1 %1410  ;;  %v4137_v16 = vld [vmem:[#allocation17_spill] sm:$0xff] }
 0x21c   : > { %v1414_v43 = vsel %vm540_vm8, %v2539_v63, %v1411_v11  ;;  %v1415_v36 = vsel %vm540_vm8, %v1411_v11, %v1413_v30  ;;  %2597 = vrot.lane.b32.xlu0 %v4136_v19, %s2822_s27  ;;  %v1473_v58 = vld [vmem:[#allocation9 + $0xe0] sm:$0xff]  ;;  %v1475_v63 = vld [vmem:[#allocation9 + $0xf0] sm:$0xff] }
 0x21d   : > { %v1418_v23 = vmul.f32 %v1414_v43, %v1404_v27  ;;  %v1419_v52 = vmul.f32 %v1415_v36, %v1405_v7  ;;  %v1420_v24 = vmul.f32 %v1414_v43, %v1406_v55  ;;  %v1421_v6 = vmul.f32 %v1415_v36, %v1407_v51  ;;  %2049 = vrot.lane.b32.xlu1 %v3613_v33, %s2822_s27  ;;  %v1474_v7 = vld [vmem:[#allocation9 + $0xe8] sm:$0xff]  ;;  %v1476_v55 = vld [vmem:[#allocation9 + $0xf8] sm:$0xff] }
 0x21e   : > { %v1436_v8 = vpop.permute.xlu0 %1435  ;;  %v2545_v27 = vunpack.i.h.bf16 %v3731_v12 }
 0x21f   : > { %v1422_v44 = vadd.f32 %v1418_v23, %v1399_v41  ;;  %v1423_v31 = vadd.f32 %v1419_v52, %v1400_v47  ;;  %v1424_v22 = vadd.f32 %v1420_v24, %v1401_v61  ;;  %v1425_v17 = vadd.f32 %v1421_v6, %v1402_v50  ;;  %v1434_v35 = vpop.permute.xlu1 %1433 }
 0x220   : > { %v1437_v19 = vsel %vm540_vm8, %v2540_v39, %v1434_v35  ;;  %v1438_v54 = vsel %vm540_vm8, %v1434_v35, %v1436_v8  ;;  %2051 = vrot.lane.b32.xlu0 %v3610_v49, %s2822_s27 }
 0x221   : > { %v1441_v38 = vmul.f32 %v1437_v19, %v1427_v37  ;;  %v1442_v2 = vmul.f32 %v1438_v54, %v1428_v28  ;;  %v1443_v40 = vmul.f32 %v1437_v19, %v1429_v5  ;;  %v1444_v60 = vmul.f32 %v1438_v54, %v1430_v42  ;;  %2072 = vrot.lane.b32.xlu1 %v3620_v57, %s2822_s27  ;;  %v4138_v5 = vld [vmem:[#allocation18_spill] sm:$0xff] }
 0x222   : > { %v1457_v20 = vpop.permute.xlu0 %1456 }
 0x223   : > { %v1445_v10 = vadd.f32 %v1441_v38, %v1422_v44  ;;  %v1446_v53 = vadd.f32 %v1442_v2, %v1423_v31  ;;  %v1447_v18 = vadd.f32 %v1443_v40, %v1424_v22  ;;  %v1448_v29 = vadd.f32 %v1444_v60, %v1425_v17  ;;  %v1459_v9 = vpop.permute.xlu1 %1458 }
 0x224   : > { %v1460_v34 = vsel %vm540_vm8, %v2544_v59, %v1457_v20  ;;  %v1461_v14 = vsel %vm540_vm8, %v1457_v20, %v1459_v9  ;;  %2074 = vrot.lane.b32.xlu0 %v3623_v25, %s2822_s27  ;;  %v2550_v59 = vunpack.i.h.bf16 %v3739_v46  ;;  %v1497_v20 = vld [vmem:[#allocation9 + $0x108] sm:$0xff]  ;;  %v1499_v9 = vld [vmem:[#allocation9 + $0x118] sm:$0xff] }
 0x225   : > { %v1464_v32 = vmul.f32 %v1460_v34, %v1450_v13  ;;  %v1466_v0 = vmul.f32 %v1460_v34, %v1452_v45  ;;  %v1465_v62 = vmul.f32 %v1461_v14, %v1451_v48  ;;  %v1467_v15 = vmul.f32 %v1461_v14, %v1453_v21  ;;  %2076 = vrot.lane.b32.xlu1 %v4137_v16, %s2822_s27  ;;  %v1496_v45 = vld [vmem:[#allocation9 + $0x100] sm:$0xff]  ;;  %v1520_v14 = vld [vmem:[#allocation9 + $0x128] sm:$0xff] }
 0x226   : > { %v1480_v30 = vpop.permute.xlu0 %1479  ;;  %v2549_v13 = vunpack.i.l.bf16 %v3739_v46  ;;  %v1519_v34 = vld [vmem:[#allocation9 + $0x120] sm:$0xff]  ;;  %v2555_v16 = vunpack.i.h.bf16 %v3743_v4 }
 0x227   : > { %v1468_v51 = vadd.f32 %v1464_v32, %v1445_v10  ;;  %v1470_v41 = vadd.f32 %v1466_v0, %v1447_v18  ;;  %v1469_v61 = vadd.f32 %v1465_v62, %v1446_v53  ;;  %v1471_v47 = vadd.f32 %v1467_v15, %v1448_v29  ;;  %v1482_v50 = vpop.permute.xlu1 %1481  ;;  %v1498_v53 = vld [vmem:[#allocation9 + $0x110] sm:$0xff] }
 0x228   : > { %v1483_v11 = vsel %vm540_vm8, %v2545_v27, %v1480_v30  ;;  %v1484_v43 = vsel %vm540_vm8, %v1480_v30, %v1482_v50  ;;  %2095 = vrot.lane.b32.xlu0 %v3630_v3, %s2822_s27  ;;  %v2554_v29 = vunpack.i.l.bf16 %v3743_v4  ;;  %v1521_v15 = vld [vmem:[#allocation9 + $0x130] sm:$0xff]  ;;  %v1542_v27 = vld [vmem:[#allocation9 + $0x140] sm:$0xff] }
 0x229   : > { %v1487_v36 = vmul.f32 %v1483_v11, %v1473_v58  ;;  %v1489_v23 = vmul.f32 %v1483_v11, %v1475_v63  ;;  %v1488_v52 = vmul.f32 %v1484_v43, %v1474_v7  ;;  %v1490_v12 = vmul.f32 %v1484_v43, %v1476_v55  ;;  %2097 = vrot.lane.b32.xlu1 %v3633_v26, %s2822_s27  ;;  %v1565_v43 = vld [vmem:[#allocation9 + $0x160] sm:$0xff] }
 0x22a   : > { %v1505_v24 = vpop.permute.xlu0 %1504 }
 0x22b   : > { %v1491_v6 = vadd.f32 %v1487_v36, %v1468_v51  ;;  %v1493_v37 = vadd.f32 %v1489_v23, %v1470_v41  ;;  %v1492_v39 = vadd.f32 %v1488_v52, %v1469_v61  ;;  %v1494_v8 = vadd.f32 %v1490_v12, %v1471_v47  ;;  %v1503_v28 = vpop.permute.xlu1 %1502  ;;  %v1522_v51 = vld [vmem:[#allocation9 + $0x138] sm:$0xff]  ;;  %v1544_v47 = vld [vmem:[#allocation9 + $0x150] sm:$0xff]  ;;  %v1543_v12 = vld [vmem:[#allocation9 + $0x148] sm:$0xff] }
 0x22c   : > { %2099 = vrot.lane.b32.xlu0 %v4138_v5, %s2822_s27  ;;  %v1506_v48 = vsel %vm633_vm9, %v2549_v13, %v1503_v28  ;;  %v1507_v21 = vsel %vm633_vm9, %v1503_v28, %v1505_v24  ;;  %v1545_v24 = vld [vmem:[#allocation9 + $0x158] sm:$0xff]  ;;  %v1567_v13 = vld [vmem:[#allocation9 + $0x170] sm:$0xff] }
 0x22d   : > { %v1510_v0 = vmul.f32 %v1506_v48, %v1496_v45  ;;  %v1511_v62 = vmul.f32 %v1507_v21, %v1497_v20  ;;  %v1512_v58 = vmul.f32 %v1506_v48, %v1498_v53  ;;  %v1513_v55 = vmul.f32 %v1507_v21, %v1499_v9 }
 0x22e   : > { %v1528_v42 = vpop.permute.xlu0 %1527 }
 0x22f   : > { %v1526_v44 = vpop.permute.xlu1 %1525  ;;  %v1514_v36 = vadd.f32 %v1510_v0, %v1491_v6  ;;  %v1515_v23 = vadd.f32 %v1511_v62, %v1492_v39  ;;  %v1516_v5 = vadd.f32 %v1512_v58, %v1493_v37  ;;  %v1517_v48 = vadd.f32 %v1513_v55, %v1494_v8  ;;  %v1568_v37 = vld [vmem:[#allocation9 + $0x178] sm:$0xff]  ;;  %v1590_v0 = vld [vmem:[#allocation9 + $0x190] sm:$0xff] }
 0x230   : > { %v1529_v32 = vsel %vm633_vm9, %v2550_v59, %v1526_v44  ;;  %v1530_v46 = vsel %vm633_vm9, %v1526_v44, %v1528_v42  ;;  %v1588_v59 = vld [vmem:[#allocation9 + $0x180] sm:$0xff]  ;;  %v1591_v58 = vld [vmem:[#allocation9 + $0x198] sm:$0xff] }
 0x231   : > { %v1533_v41 = vmul.f32 %v1529_v32, %v1519_v34  ;;  %v1534_v61 = vmul.f32 %v1530_v46, %v1520_v14  ;;  %v1535_v11 = vmul.f32 %v1529_v32, %v1521_v15  ;;  %v1536_v42 = vmul.f32 %v1530_v46, %v1522_v51  ;;  %v1611_v51 = vld [vmem:[#allocation9 + $0x1a0] sm:$0xff] }
 0x232   : > { %v1549_v31 = vpop.permute.xlu0 %1548 }
 0x233   : > { %v1551_v22 = vpop.permute.xlu1 %1550  ;;  %v1552_v63 = vsel %vm633_vm9, %v2554_v29, %v1549_v31  ;;  %v1537_v21 = vadd.f32 %v1533_v41, %v1514_v36  ;;  %v1538_v53 = vadd.f32 %v1534_v61, %v1515_v23  ;;  %v1539_v29 = vadd.f32 %v1535_v11, %v1516_v5  ;;  %v1634_v5 = vld [vmem:[#allocation9 + $0x1c0] sm:$0xff] }
 0x234   : > { %v1556_v52 = vmul.f32 %v1552_v63, %v1542_v27  ;;  %v1553_v28 = vsel %vm633_vm9, %v1549_v31, %v1551_v22  ;;  %v1558_v44 = vmul.f32 %v1552_v63, %v1544_v47  ;;  %v1566_v31 = vld [vmem:[#allocation9 + $0x168] sm:$0xff]  ;;  %v1540_v62 = vadd.f32 %v1536_v42, %v1517_v48  ;;  %v1637_v48 = vld [vmem:[#allocation9 + $0x1d8] sm:$0xff] }
 0x235   : > { %v1557_v9 = vmul.f32 %v1553_v28, %v1543_v12  ;;  %v1559_v34 = vmul.f32 %v1553_v28, %v1545_v24  ;;  %v1613_v12 = vld [vmem:[#allocation9 + $0x1b0] sm:$0xff] }
 0x236   : > { %v3805_v17 = vpop.permute.xlu0 %1571  ;;  %v1560_v14 = vadd.f32 %v1556_v52, %v1537_v21  ;;  %v1562_v15 = vadd.f32 %v1558_v44, %v1539_v29  ;;  %v1614_v52 = vld [vmem:[#allocation9 + $0x1b8] sm:$0xff]  ;;  %v1635_v44 = vld [vmem:[#allocation9 + $0x1c8] sm:$0xff]  ;;  %v1657_v29 = vld [vmem:[#allocation9 + $0x1e0] sm:$0xff] }
 0x237   : > { %v3807_v35 = vpop.permute.xlu1 %1573  ;;  %v1575_v4 = vsel %vm633_vm9, %v2555_v16, %v3805_v17  ;;  %v1589_v16 = vld [vmem:[#allocation9 + $0x188] sm:$0xff]  ;;  %v1561_v61 = vadd.f32 %v1557_v9, %v1538_v53  ;;  %v1563_v47 = vadd.f32 %v1559_v34, %v1540_v62 }
 0x238   : > { %v1579_v6 = vmul.f32 %v1575_v4, %v1565_v43  ;;  %v1576_v22 = vsel %vm633_vm9, %v3805_v17, %v3807_v35  ;;  %v1581_v32 = vmul.f32 %v1575_v4, %v1567_v13  ;;  %v1612_v43 = vld [vmem:[#allocation9 + $0x1a8] sm:$0xff] }
 0x239   : > { %v1580_v17 = vmul.f32 %v1576_v22, %v1566_v31  ;;  %v1582_v35 = vmul.f32 %v1576_v22, %v1568_v37  ;;  %v1658_v34 = vld [vmem:[#allocation9 + $0x1e8] sm:$0xff] }
 0x23a   : > { %v3809_v19 = vpop.permute.xlu0 %2557  ;;  %v1583_v55 = vadd.f32 %v1579_v6, %v1560_v14  ;;  %v1660_v14 = vld [vmem:[#allocation9 + $0x1f8] sm:$0xff] }
 0x23b   : > { %v3811_v54 = vpop.permute.xlu1 %1594  ;;  %v2559_v30 = vunpack.i.l.bf16 %v3809_v19  ;;  %v2560_v46 = vunpack.i.h.bf16 %v3809_v19 }
 0x23d   : > { %v1598_v45 = vsel %vm726_vm10, %v2559_v30, %v3811_v54 }
 0x23e   : > { %v3813_v38 = vpop.permute.xlu0 %1596  ;;  %v1602_v8 = vmul.f32 %v1598_v45, %v1588_v59  ;;  %v1604_v11 = vmul.f32 %v1598_v45, %v1590_v0 }
 0x23f   : > { %v3815_v2 = vpop.permute.xlu1 %1617  ;;  %v1599_v27 = vsel %vm726_vm10, %v3811_v54, %v3813_v38  ;;  %v1585_v38 = vadd.f32 %v1581_v32, %v1562_v15 }
 0x240   : > { %v1621_v19 = vsel %vm726_vm10, %v2560_v46, %v3815_v2  ;;  %v1606_v4 = vadd.f32 %v1602_v8, %v1583_v55  ;;  %v1603_v36 = vmul.f32 %v1599_v27, %v1589_v16  ;;  %v1605_v23 = vmul.f32 %v1599_v27, %v1591_v58  ;;  %v1659_v8 = vld [vmem:[#allocation9 + $0x1f0] sm:$0xff] }
 0x241   : > { %v1625_v24 = vmul.f32 %v1621_v19, %v1611_v51  ;;  %v1608_v53 = vadd.f32 %v1604_v11, %v1585_v38  ;;  %v1627_v31 = vmul.f32 %v1621_v19, %v1613_v12  ;;  %v1683_v38 = vld [vmem:[#allocation9 + $0x218] sm:$0xff] }
 0x242   : > { %v3817_v40 = vpop.permute.xlu0 %1619 }
 0x243   : > { %v3819_v60 = vpop.permute.xlu1 %2562  ;;  %v1622_v54 = vsel %vm726_vm10, %v3815_v2, %v3817_v40  ;;  %v1584_v2 = vadd.f32 %v1580_v17, %v1561_v61  ;;  %v1586_v40 = vadd.f32 %v1582_v35, %v1563_v47  ;;  %v1629_v46 = vadd.f32 %v1625_v24, %v1606_v4  ;;  %v1680_v61 = vld [vmem:[#allocation9 + $0x200] sm:$0xff]  ;;  %v1681_v47 = vld [vmem:[#allocation9 + $0x208] sm:$0xff] }
 0x244   : > { %v2564_v63 = vunpack.i.l.bf16 %v3819_v60  ;;  %v2565_v28 = vunpack.i.h.bf16 %v3819_v60  ;;  %v1626_v45 = vmul.f32 %v1622_v54, %v1612_v43  ;;  %v1628_v6 = vmul.f32 %v1622_v54, %v1614_v52  ;;  %v1636_v60 = vld [vmem:[#allocation9 + $0x1d0] sm:$0xff] }
 0x245   : > { %v1609_v32 = vadd.f32 %v1605_v23, %v1586_v40  ;;  %v1682_v23 = vld [vmem:[#allocation9 + $0x210] sm:$0xff]  ;;  %v1684_v24 = vmul.f32 %v1680_v61, %v3603_v56  ;;  %v1737_v61 = vld [vmem:[#allocation9 + $0x288] sm:$0xff] }
 0x246   : > { %v3825_v10 = vpop.permute.xlu0 %1640 }
 0x247   : > { %v3827_v18 = vpop.permute.xlu1 %1642  ;;  %v1644_v42 = vsel %vm726_vm10, %v2564_v63, %v3825_v10  ;;  %v1632_v55 = vadd.f32 %v1628_v6, %v1609_v32  ;;  %v1695_v6 = vld [vmem:[#allocation9 + $0x230] sm:$0xff] }
 0x248   : > { %v1645_v13 = vsel %vm726_vm10, %v3825_v10, %v3827_v18  ;;  %v1607_v18 = vadd.f32 %v1603_v36, %v1584_v2  ;;  %v1648_v37 = vmul.f32 %v1644_v42, %v1634_v5  ;;  %v1650_v16 = vmul.f32 %v1644_v42, %v1636_v60  ;;  %v1693_v5 = vld [vmem:[#allocation9 + $0x220] sm:$0xff] }
 0x249   : > { %v1649_v22 = vmul.f32 %v1645_v13, %v1635_v44  ;;  %v1651_v0 = vmul.f32 %v1645_v13, %v1637_v48  ;;  %v1687_v42 = vmul.f32 %v1683_v38, %v3600_v1  ;;  %v1694_v44 = vld [vmem:[#allocation9 + $0x228] sm:$0xff]  ;;  %v1686_v2 = vmul.f32 %v1682_v23, %v3603_v56  ;;  %v1736_v23 = vld [vmem:[#allocation9 + $0x280] sm:$0xff] }
 0x24a   : > { %v3835_v7 = vpop.permute.xlu0 %1663  ;;  %v1630_v15 = vadd.f32 %v1626_v45, %v1607_v18  ;;  %v1696_v45 = vld [vmem:[#allocation9 + $0x238] sm:$0xff]  ;;  %v1707_v18 = vld [vmem:[#allocation9 + $0x248] sm:$0xff]  ;;  %v1699_v56 = vmul.f32 %v1695_v6, %v3613_v33 }
 0x24b   : > { %v3837_v50 = vpop.permute.xlu1 %1665  ;;  %v1667_v9 = vsel %vm726_vm10, %v2565_v28, %v3835_v7  ;;  %v1655_v19 = vadd.f32 %v1651_v0, %v1632_v55  ;;  %v1685_v28 = vmul.f32 %v1681_v47, %v3600_v1  ;;  %v1706_v1 = vld [vmem:[#allocation9 + $0x240] sm:$0xff]  ;;  %v1708_v0 = vld [vmem:[#allocation9 + $0x250] sm:$0xff]  ;;  %v1720_v55 = vld [vmem:[#allocation9 + $0x268] sm:$0xff] }
 0x24c   : > { %v1668_v10 = vsel %vm726_vm10, %v3835_v7, %v3837_v50  ;;  %v1671_v58 = vmul.f32 %v1667_v9, %v1657_v29  ;;  %v1631_v7 = vadd.f32 %v1627_v31, %v1608_v53  ;;  %v1652_v50 = vadd.f32 %v1648_v37, %v1629_v46  ;;  %v1762_v6 = vld [vmem:[#allocation9 + $0x2a8] sm:$0xff] }
 0x24d   : > { %v1672_v27 = vmul.f32 %v1668_v10, %v1658_v34  ;;  %v1674_v17 = vmul.f32 %v1668_v10, %v1660_v14  ;;  %v1653_v35 = vadd.f32 %v1649_v22, %v1630_v15  ;;  %v1673_v51 = vmul.f32 %v1667_v9, %v1659_v8  ;;  %v1709_v14 = vld [vmem:[#allocation9 + $0x258] sm:$0xff] }
 0x24e   : > { %v3844_v20 = vpop.permute.xlu0 %1741  ;;  %v1654_v43 = vadd.f32 %v1650_v16, %v1631_v7  ;;  %v1675_v54 = vadd.f32 %v1671_v58, %v1652_v50  ;;  %v1697_v9 = vmul.f32 %v1693_v5, %v3613_v33  ;;  %v1698_v34 = vmul.f32 %v1694_v44, %v3610_v49  ;;  %v1719_v58 = vld [vmem:[#allocation9 + $0x260] sm:$0xff]  ;;  %v1722_v50 = vld [vmem:[#allocation9 + $0x278] sm:$0xff] }
 0x24f   : > { %v3846_v39 = vpop.permute.xlu1 %1743  ;;  %v1676_v4 = vadd.f32 %v1672_v27, %v1653_v35  ;;  %v1678_v52 = vadd.f32 %v1674_v17, %v1655_v19  ;;  %v1700_v10 = vmul.f32 %v1696_v45, %v3610_v49  ;;  %v1710_v16 = vmul.f32 %v1706_v1, %v3620_v57  ;;  %v1721_v19 = vld [vmem:[#allocation9 + $0x270] sm:$0xff] }
 0x250   : > { %v1677_v12 = vadd.f32 %v1673_v51, %v1654_v43  ;;  %v1688_v40 = vadd.f32 %v1684_v24, %v1675_v54  ;;  %v1711_v49 = vmul.f32 %v1707_v18, %v3623_v25  ;;  %v1713_v27 = vmul.f32 %v1709_v14, %v3623_v25  ;;  %v1739_v25 = vld [vmem:[#allocation9 + $0x298] sm:$0xff] }
 0x251   : > { %v1689_v48 = vadd.f32 %v1685_v28, %v1676_v4  ;;  %v1691_v60 = vadd.f32 %v1687_v42, %v1678_v52  ;;  %v1712_v33 = vmul.f32 %v1708_v0, %v3620_v57  ;;  %v1723_v54 = vmul.f32 %v1719_v58, %v3630_v3  ;;  %v1738_v42 = vld [vmem:[#allocation9 + $0x290] sm:$0xff]  ;;  %v1792_v14 = vld [vmem:[#allocation9 + $0x2d8] sm:$0xff] }
 0x252   : > { %v3856_v30 = vpop.permute.xlu0 %2567  ;;  %v1690_v29 = vadd.f32 %v1686_v2, %v1677_v12  ;;  %v1701_v37 = vadd.f32 %v1697_v9, %v1688_v40  ;;  %v1724_v4 = vmul.f32 %v1720_v55, %v3633_v26  ;;  %v1747_v57 = vsel %vm876_vm11, %v3844_v20, %v3846_v39 }
 0x253   : > { %v3860_v41 = vpop.permute.xlu1 %1766  ;;  %v1702_v22 = vadd.f32 %v1698_v34, %v1689_v48  ;;  %v1704_v46 = vadd.f32 %v1700_v10, %v1691_v60  ;;  %v2569_v8 = vunpack.i.l.bf16 %v3856_v30  ;;  %v2570_v52 = vunpack.i.h.bf16 %v3856_v30  ;;  %v1761_v30 = vld [vmem:[#allocation9 + $0x2a0] sm:$0xff]  ;;  %v1763_v34 = vld [vmem:[#allocation9 + $0x2b0] sm:$0xff]  ;;  %v1790_v10 = vld [vmem:[#allocation9 + $0x2c8] sm:$0xff] }
 0x254   : > { %v1703_v15 = vadd.f32 %v1699_v56, %v1690_v29  ;;  %v1714_v7 = vadd.f32 %v1710_v16, %v1701_v37  ;;  %v1726_v12 = vmul.f32 %v1722_v50, %v3633_v26  ;;  %v1725_v5 = vmul.f32 %v1721_v19, %v3630_v3  ;;  %v1764_v29 = vld [vmem:[#allocation9 + $0x2b8] sm:$0xff]  ;;  %v1814_v50 = vld [vmem:[#allocation9 + $0x2e0] sm:$0xff] }
 0x255   : > { %v1715_v35 = vadd.f32 %v1711_v49, %v1702_v22  ;;  %v1748_v47 = vsel %vm876_vm11, %v3846_v39, %v2569_v8  ;;  %v1717_v43 = vadd.f32 %v1713_v27, %v1704_v46  ;;  %v1751_v26 = vmul.f32 %v1747_v57, %v1736_v23  ;;  %v1791_v27 = vld [vmem:[#allocation9 + $0x2d0] sm:$0xff] }
 0x256   : > { %v3871_v59 = vpop.permute.xlu0 %1768  ;;  %v1716_v38 = vadd.f32 %v1712_v33, %v1703_v15  ;;  %v1727_v44 = vadd.f32 %v1723_v54, %v1714_v7  ;;  %v1752_v2 = vmul.f32 %v1748_v47, %v1737_v61  ;;  %v1754_v48 = vmul.f32 %v1748_v47, %v1739_v25  ;;  %v1815_v47 = vld [vmem:[#allocation9 + $0x2e8] sm:$0xff]  ;;  %v1817_v54 = vld [vmem:[#allocation9 + $0x2f8] sm:$0xff] }
 0x257   : > { %v3873_v21 = vpop.permute.xlu1 %1794  ;;  %v1728_v40 = vadd.f32 %v1724_v4, %v1715_v35  ;;  %v1730_v60 = vadd.f32 %v1726_v12, %v1717_v43  ;;  %v1773_v20 = vsel %vm876_vm11, %v3871_v59, %v2570_v52  ;;  %v1772_v3 = vsel %vm876_vm11, %v3860_v41, %v3871_v59  ;;  %v1789_v41 = vld [vmem:[#allocation9 + $0x2c0] sm:$0xff]  ;;  %v1816_v43 = vld [vmem:[#allocation9 + $0x2f0] sm:$0xff]  ;;  %v1839_v12 = vld [vmem:[#allocation9 + $0x308] sm:$0xff] }
 0x258   : > { %v1729_v39 = vadd.f32 %v1725_v5, %v1716_v38  ;;  %v1753_v9 = vmul.f32 %v1747_v57, %v1738_v42  ;;  %v1755_v56 = vadd.f32 %v1751_v26, %v1727_v44  ;;  %v1777_v22 = vmul.f32 %v1773_v20, %v1762_v6  ;;  %v1840_v26 = vld [vmem:[#allocation9 + $0x310] sm:$0xff] }
 0x259   : > { %v1756_v37 = vadd.f32 %v1752_v2, %v1728_v40  ;;  %v1758_v8 = vadd.f32 %v1754_v48, %v1730_v60  ;;  %v1776_v15 = vmul.f32 %v1772_v3, %v1761_v30  ;;  %v1779_v16 = vmul.f32 %v1773_v20, %v1764_v29 }
 0x25a   : > { %v3880_v62 = vpop.permute.xlu0 %1796  ;;  %v1757_v49 = vadd.f32 %v1753_v9, %v1729_v39  ;;  %v1778_v58 = vmul.f32 %v1772_v3, %v1763_v34  ;;  %v1838_v39 = vld [vmem:[#allocation9 + $0x300] sm:$0xff]  ;;  %v1862_v34 = vld [vmem:[#allocation9 + $0x328] sm:$0xff] }
 0x25b   : > { %v3882_v63 = vpop.permute.xlu1 %2572  ;;  %v1800_v59 = vsel %vm876_vm11, %v3873_v21, %v3880_v62  ;;  %v1781_v19 = vadd.f32 %v1777_v22, %v1756_v37  ;;  %v1780_v38 = vadd.f32 %v1776_v15, %v1755_v56  ;;  %v1783_v25 = vadd.f32 %v1779_v16, %v1758_v8  ;;  %v1861_v22 = vld [vmem:[#allocation9 + $0x320] sm:$0xff]  ;;  %v1887_v16 = vld [vmem:[#allocation9 + $0x358] sm:$0xff] }
 0x25c   : > { %v2574_v24 = vunpack.i.l.bf16 %v3882_v63  ;;  %v2575_v46 = vunpack.i.h.bf16 %v3882_v63  ;;  %v1804_v61 = vmul.f32 %v1800_v59, %v1789_v41  ;;  %v1806_v4 = vmul.f32 %v1800_v59, %v1791_v27 }
 0x25d   : > { %v1782_v23 = vadd.f32 %v1778_v58, %v1757_v49 }
 0x25e   : > { %v3884_v11 = vpop.permute.xlu0 %1819  ;;  %v1801_v1 = vsel %vm876_vm11, %v3880_v62, %v2574_v24 }
 0x25f   : > { %v3886_v36 = vpop.permute.xlu1 %1821  ;;  %v1805_v55 = vmul.f32 %v1801_v1, %v1790_v10  ;;  %v1807_v7 = vmul.f32 %v1801_v1, %v1792_v14  ;;  %v1810_v20 = vadd.f32 %v1806_v4, %v1782_v23  ;;  %v1864_v10 = vld [vmem:[#allocation9 + $0x338] sm:$0xff]  ;;  %v1863_v14 = vld [vmem:[#allocation9 + $0x330] sm:$0xff] }
 0x260   : > { %v1825_v63 = vsel %vm876_vm11, %v3884_v11, %v3886_v36  ;;  %v1826_v21 = vsel %vm876_vm11, %v3886_v36, %v2575_v46  ;;  %v1841_v11 = vld [vmem:[#allocation9 + $0x318] sm:$0xff]  ;;  %v1808_v36 = vadd.f32 %v1804_v61, %v1780_v38  ;;  %v1908_v38 = vld [vmem:[#allocation9 + $0x368] sm:$0xff] }
 0x261   : > { %v1809_v57 = vadd.f32 %v1805_v55, %v1781_v19  ;;  %v1829_v52 = vmul.f32 %v1825_v63, %v1814_v50  ;;  %v1811_v5 = vadd.f32 %v1807_v7, %v1783_v25  ;;  %v1830_v42 = vmul.f32 %v1826_v21, %v1815_v47  ;;  %v1886_v19 = vld [vmem:[#allocation9 + $0x350] sm:$0xff] }
 0x262   : > { %v3891_v13 = vpop.permute.xlu0 %1842  ;;  %v1831_v44 = vmul.f32 %v1825_v63, %v1816_v43  ;;  %v1832_v2 = vmul.f32 %v1826_v21, %v1817_v54  ;;  %v1884_v63 = vld [vmem:[#allocation9 + $0x340] sm:$0xff] }
 0x263   : > { %v3894_v53 = vpop.permute.xlu1 %1844  ;;  %v1833_v9 = vadd.f32 %v1829_v52, %v1808_v36  ;;  %v1907_v21 = vld [vmem:[#allocation9 + $0x360] sm:$0xff]  ;;  %v1909_v52 = vld [vmem:[#allocation9 + $0x370] sm:$0xff] }
 0x264   : > { %v1848_v30 = vsel %vm978_vm12, %v3891_v13, %v3894_v53  ;;  %v1835_v56 = vadd.f32 %v1831_v44, %v1810_v20  ;;  %v1836_v37 = vadd.f32 %v1832_v2, %v1811_v5 }
 0x265   : > { %v1852_v15 = vmul.f32 %v1848_v30, %v1838_v39  ;;  %v1854_v13 = vmul.f32 %v1848_v30, %v1840_v26  ;;  %v1930_v26 = vld [vmem:[#allocation9 + $0x380] sm:$0xff]  ;;  %v1932_v30 = vld [vmem:[#allocation9 + $0x390] sm:$0xff] }
 0x266   : > { %v3899_v31 = vpop.permute.xlu0 %2577 }
 0x267   : > { %v3902_v32 = vpop.permute.xlu1 %1865  ;;  %v2579_v33 = vunpack.i.l.bf16 %v3899_v31  ;;  %v2580_v48 = vunpack.i.h.bf16 %v3899_v31  ;;  %v1834_v31 = vadd.f32 %v1830_v42, %v1809_v57  ;;  %v1856_v43 = vadd.f32 %v1852_v15, %v1833_v9  ;;  %v1931_v42 = vld [vmem:[#allocation9 + $0x388] sm:$0xff] }
 0x268   : > { %v1858_v54 = vadd.f32 %v1854_v13, %v1835_v56 }
 0x269   : > { %v1849_v24 = vsel %vm978_vm12, %v3894_v53, %v2579_v33  ;;  %v1885_v53 = vld [vmem:[#allocation9 + $0x348] sm:$0xff] }
 0x26a   : > { %v3908_v17 = vpop.permute.xlu0 %1867  ;;  %v1853_v29 = vmul.f32 %v1849_v24, %v1839_v12  ;;  %v1855_v3 = vmul.f32 %v1849_v24, %v1841_v11  ;;  %v1910_v12 = vld [vmem:[#allocation9 + $0x378] sm:$0xff] }
 0x26b   : > { %v3911_v51 = vpop.permute.xlu1 %1888  ;;  %v1872_v1 = vsel %vm978_vm12, %v3908_v17, %v2580_v48  ;;  %v1871_v46 = vsel %vm978_vm12, %v3902_v32, %v3908_v17 }
 0x26c   : > { %v1857_v58 = vadd.f32 %v1853_v29, %v1834_v31  ;;  %v1859_v27 = vadd.f32 %v1855_v3, %v1836_v37  ;;  %v1876_v55 = vmul.f32 %v1872_v1, %v1862_v34  ;;  %v1878_v33 = vmul.f32 %v1872_v1, %v1864_v10  ;;  %v1953_v37 = vld [vmem:[#allocation9 + $0x3a0] sm:$0xff] }
 0x26d   : > { %v1875_v7 = vmul.f32 %v1871_v46, %v1861_v22  ;;  %v1877_v50 = vmul.f32 %v1871_v46, %v1863_v14  ;;  %v1954_v22 = vld [vmem:[#allocation9 + $0x3a8] sm:$0xff] }
 0x26e   : > { %v3923_v28 = vpop.permute.xlu0 %1890 }
 0x26f   : > { %v3926_v45 = vpop.permute.xlu1 %2582  ;;  %v1894_v32 = vsel %vm978_vm12, %v3911_v51, %v3923_v28  ;;  %v1880_v51 = vadd.f32 %v1876_v55, %v1857_v58  ;;  %v1879_v11 = vadd.f32 %v1875_v7, %v1856_v43  ;;  %v1881_v24 = vadd.f32 %v1877_v50, %v1858_v54  ;;  %v1976_v58 = vld [vmem:[#allocation9 + $0x3c0] sm:$0xff] }
 0x270   : > { %v2584_v6 = vunpack.i.l.bf16 %v3926_v45  ;;  %v2585_v41 = vunpack.i.h.bf16 %v3926_v45  ;;  %v1898_v57 = vmul.f32 %v1894_v32, %v1884_v63  ;;  %v1900_v5 = vmul.f32 %v1894_v32, %v1886_v19  ;;  %v1977_v63 = vld [vmem:[#allocation9 + $0x3c8] sm:$0xff] }
 0x272   : > { %v3935_v18 = vpop.permute.xlu0 %1911  ;;  %v1895_v59 = vsel %vm978_vm12, %v3923_v28, %v2584_v6  ;;  %v1882_v28 = vadd.f32 %v1878_v33, %v1859_v27  ;;  %v1933_v6 = vld [vmem:[#allocation9 + $0x398] sm:$0xff]  ;;  %v1902_v34 = vadd.f32 %v1898_v57, %v1879_v11  ;;  %v1904_v31 = vadd.f32 %v1900_v5, %v1881_v24  ;;  %v1978_v27 = vld [vmem:[#allocation9 + $0x3d0] sm:$0xff] }
 0x273   : > { %v3938_v0 = vpop.permute.xlu1 %1913  ;;  %v1899_v45 = vmul.f32 %v1895_v59, %v1885_v53  ;;  %v1901_v61 = vmul.f32 %v1895_v59, %v1887_v16 }
 0x274   : > { %v1917_v25 = vsel %vm978_vm12, %v3935_v18, %v3938_v0  ;;  %v1918_v4 = vsel %vm978_vm12, %v3938_v0, %v2585_v41 }
 0x275   : > { %v1903_v2 = vadd.f32 %v1899_v45, %v1880_v51  ;;  %v1905_v36 = vadd.f32 %v1901_v61, %v1882_v28  ;;  %v1921_v18 = vmul.f32 %v1917_v25, %v1907_v21  ;;  %v1922_v48 = vmul.f32 %v1918_v4, %v1908_v38  ;;  %v1999_v51 = vld [vmem:[#allocation9 + $0x3e0] sm:$0xff]  ;;  %v2001_v28 = vld [vmem:[#allocation9 + $0x3f0] sm:$0xff] }
 0x276   : > { %v3947_v35 = vpop.permute.xlu0 %1934  ;;  %v1923_v20 = vmul.f32 %v1917_v25, %v1909_v52  ;;  %v1924_v39 = vmul.f32 %v1918_v4, %v1910_v12 }
 0x277   : > { %v3951_v62 = vpop.permute.xlu1 %1936  ;;  %v1926_v15 = vadd.f32 %v1922_v48, %v1903_v2  ;;  %v1925_v16 = vadd.f32 %v1921_v18, %v1902_v34  ;;  %v2022_v2 = vld [vmem:[#allocation9 + $0x400] sm:$0xff] }
 0x278   : > { %v1940_v29 = vsel %vm1071_vm13, %v3947_v35, %v3951_v62  ;;  %v1955_v35 = vld [vmem:[#allocation9 + $0x3b0] sm:$0xff]  ;;  %v1927_v41 = vadd.f32 %v1923_v20, %v1904_v31  ;;  %v1928_v59 = vadd.f32 %v1924_v39, %v1905_v36 }
 0x279   : > { %v1944_v13 = vmul.f32 %v1940_v29, %v1930_v26  ;;  %v1946_v53 = vmul.f32 %v1940_v29, %v1932_v30  ;;  %v2024_v20 = vld [vmem:[#allocation9 + $0x410] sm:$0xff]  ;;  %v2023_v29 = vld [vmem:[#allocation9 + $0x408] sm:$0xff] }
 0x27a   : > { %v3955_v40 = vpop.permute.xlu0 %2587 }
 0x27b   : > { %v3959_v60 = vpop.permute.xlu1 %1957  ;;  %v2589_v17 = vunpack.i.l.bf16 %v3955_v40  ;;  %v2590_v3 = vunpack.i.h.bf16 %v3955_v40  ;;  %v1948_v43 = vadd.f32 %v1944_v13, %v1925_v16  ;;  %v1950_v54 = vadd.f32 %v1946_v53, %v1927_v41  ;;  %v2046_v41 = vld [vmem:[#allocation9 + $0x428] sm:$0xff] }
 0x27d   : > { %v1941_v44 = vsel %vm1071_vm13, %v3951_v62, %v2589_v17  ;;  %v1956_v62 = vld [vmem:[#allocation9 + $0x3b8] sm:$0xff] }
 0x27e   : > { %v1960_v8 = vpop.permute.xlu0 %1959  ;;  %v1945_v10 = vmul.f32 %v1941_v44, %v1931_v42  ;;  %v1947_v56 = vmul.f32 %v1941_v44, %v1933_v6  ;;  %v2000_v42 = vld [vmem:[#allocation9 + $0x3e8] sm:$0xff]  ;;  %v2002_v44 = vld [vmem:[#allocation9 + $0x3f8] sm:$0xff] }
 0x27f   : > { %v3972_v49 = vpop.permute.xlu1 %1980  ;;  %v1963_v14 = vsel %vm1071_vm13, %v3959_v60, %v1960_v8  ;;  %v1964_v46 = vsel %vm1071_vm13, %v1960_v8, %v2590_v3  ;;  %v1979_v8 = vld [vmem:[#allocation9 + $0x3d8] sm:$0xff] }
 0x280   : > { %v1949_v7 = vadd.f32 %v1945_v10, %v1926_v15  ;;  %v1967_v50 = vmul.f32 %v1963_v14, %v1953_v37  ;;  %v1968_v60 = vmul.f32 %v1964_v46, %v1954_v22  ;;  %v1951_v17 = vadd.f32 %v1947_v56, %v1928_v59  ;;  %v2025_v3 = vld [vmem:[#allocation9 + $0x418] sm:$0xff]  ;;  %v2047_v37 = vld [vmem:[#allocation9 + $0x430] sm:$0xff] }
 0x281   : > { %v1969_v19 = vmul.f32 %v1963_v14, %v1955_v35  ;;  %v1970_v45 = vmul.f32 %v1964_v46, %v1956_v62  ;;  %v2068_v62 = vld [vmem:[#allocation9 + $0x440] sm:$0xff]  ;;  %v2048_v59 = vld [vmem:[#allocation9 + $0x438] sm:$0xff] }
 0x282   : > { %v1983_v47 = vpop.permute.xlu0 %1982  ;;  %v1971_v11 = vadd.f32 %v1967_v50, %v1948_v43 }
 0x283   : > { %v3983_v23 = vpop.permute.xlu1 %2592  ;;  %v1986_v55 = vsel %vm1071_vm13, %v3972_v49, %v1983_v47  ;;  %v1973_v24 = vadd.f32 %v1969_v19, %v1950_v54  ;;  %v1974_v5 = vadd.f32 %v1970_v45, %v1951_v17  ;;  %v2069_v19 = vld [vmem:[#allocation9 + $0x448] sm:$0xff]  ;;  %v2071_v45 = vld [vmem:[#allocation9 + $0x458] sm:$0xff] }
 0x284   : > { %v2594_v1 = vunpack.i.l.bf16 %v3983_v23  ;;  %v2595_v61 = vunpack.i.h.bf16 %v3983_v23  ;;  %v1990_v21 = vmul.f32 %v1986_v55, %v1976_v58  ;;  %v1992_v38 = vmul.f32 %v1986_v55, %v1978_v27 }
 0x286   : > { %v2004_v0 = vpop.permute.xlu0 %2003  ;;  %v1987_v32 = vsel %vm1071_vm13, %v1983_v47, %v2594_v1  ;;  %v1972_v47 = vadd.f32 %v1968_v60, %v1949_v7  ;;  %v1994_v18 = vadd.f32 %v1990_v21, %v1971_v11  ;;  %v1996_v26 = vadd.f32 %v1992_v38, %v1973_v24 }
 0x287   : > { %v2006_v9 = vpop.permute.xlu1 %2005  ;;  %v1991_v4 = vmul.f32 %v1987_v32, %v1977_v63  ;;  %v1993_v49 = vmul.f32 %v1987_v32, %v1979_v8 }
 0x288   : > { %v2009_v57 = vsel %vm1071_vm13, %v2004_v0, %v2006_v9  ;;  %v2010_v23 = vsel %vm1071_vm13, %v2006_v9, %v2595_v61  ;;  %v2045_v9 = vld [vmem:[#allocation9 + $0x420] sm:$0xff] }
 0x289   : > { %v2013_v48 = vmul.f32 %v2009_v57, %v1999_v51  ;;  %v2015_v6 = vmul.f32 %v2009_v57, %v2001_v28  ;;  %v1995_v0 = vadd.f32 %v1991_v4, %v1972_v47  ;;  %v1997_v30 = vadd.f32 %v1993_v49, %v1974_v5  ;;  %v2091_v4 = vld [vmem:[#allocation9 + $0x460] sm:$0xff]  ;;  %v2093_v49 = vld [vmem:[#allocation9 + $0x470] sm:$0xff] }
 0x28a   : > { %v2027_v40 = vpop.permute.xlu0 %2026  ;;  %v2014_v1 = vmul.f32 %v2010_v23, %v2000_v42  ;;  %v2016_v31 = vmul.f32 %v2010_v23, %v2002_v44  ;;  %v2092_v44 = vld [vmem:[#allocation9 + $0x468] sm:$0xff]  ;;  %v2094_v23 = vld [vmem:[#allocation9 + $0x478] sm:$0xff] }
 0x28b   : > { %v2029_v33 = vpop.permute.xlu1 %2028  ;;  %v2017_v15 = vadd.f32 %v2013_v48, %v1994_v18  ;;  %v2019_v13 = vadd.f32 %v2015_v6, %v1996_v26  ;;  %v2113_v18 = vld [vmem:[#allocation11] sm:$0xff]  ;;  %v2115_v48 = vld [vmem:[#allocation11 + $0x10] sm:$0xff] }
 0x28c   : > { %v2032_v36 = vsel %vm1164_vm14, %v2027_v40, %v2029_v33  ;;  %v2070_v40 = vld [vmem:[#allocation9 + $0x450] sm:$0xff]  ;;  %v2018_v50 = vadd.f32 %v2014_v1, %v1995_v0  ;;  %v2020_v60 = vadd.f32 %v2016_v31, %v1997_v30  ;;  %v2114_v1 = vld [vmem:[#allocation11 + $0x8] sm:$0xff]  ;;  %v2116_v31 = vld [vmem:[#allocation11 + $0x18] sm:$0xff] }
 0x28d   : > { %v2036_v56 = vmul.f32 %v2032_v36, %v2022_v2  ;;  %v2038_v14 = vmul.f32 %v2032_v36, %v2024_v20 }
 0x28e   : > { %v2598_v25 = vpop.permute.xlu0 %2597 }
 0x28f   : > { %v2599_v52 = vunpack.i.l.bf16 %v2598_v25  ;;  %v2050_v12 = vpop.permute.xlu1 %2049  ;;  %v2600_v46 = vunpack.i.h.bf16 %v2598_v25  ;;  %v2040_v63 = vadd.f32 %v2036_v56, %v2017_v15  ;;  %v2042_v8 = vadd.f32 %v2038_v14, %v2019_v13  ;;  %v4140_v14 = vld [vmem:[#allocation23_spill] sm:$0xff] }
 0x291   : > { %v2033_v34 = vsel %vm1164_vm14, %v2029_v33, %v2599_v52 }
 0x292   : > { %v2052_v39 = vpop.permute.xlu0 %2051  ;;  %v2037_v53 = vmul.f32 %v2033_v34, %v2023_v29  ;;  %v2039_v35 = vmul.f32 %v2033_v34, %v2025_v3 }
 0x293   : > { %v2073_v10 = vpop.permute.xlu1 %2072  ;;  %v2055_v22 = vsel %vm1164_vm14, %v2050_v12, %v2052_v39  ;;  %v2056_v58 = vsel %vm1164_vm14, %v2052_v39, %v2600_v46 }
 0x294   : > { %v2059_v27 = vmul.f32 %v2055_v22, %v2045_v9  ;;  %v2061_v55 = vmul.f32 %v2055_v22, %v2047_v37  ;;  %v2041_v43 = vadd.f32 %v2037_v53, %v2018_v50  ;;  %v2043_v54 = vadd.f32 %v2039_v35, %v2020_v60  ;;  %v4139_v37 = vld [vmem:[#allocation21_spill] sm:$0xff] }
 0x295   : > { %v2060_v21 = vmul.f32 %v2056_v58, %v2046_v41  ;;  %v2062_v38 = vmul.f32 %v2056_v58, %v2048_v59  ;;  %v4141_v59 = vld [vmem:[#allocation20_spill] sm:$0xff] }
 0x296   : > { %v2075_v16 = vpop.permute.xlu0 %2074  ;;  %v2063_v51 = vadd.f32 %v2059_v27, %v2040_v63  ;;  %v2065_v28 = vadd.f32 %v2061_v55, %v2042_v8  ;;  %v4142_v27 = vld [vmem:[#allocation22_spill] sm:$0xff] }
 0x297   : > { %v2078_v33 = vsel %vm1164_vm14, %v2073_v10, %v2075_v16  ;;  %v2077_v7 = vpop.permute.xlu1 %2076  ;;  %v2064_v2 = vadd.f32 %v2060_v21, %v2041_v43  ;;  %v2066_v36 = vadd.f32 %v2062_v38, %v2043_v54 }
 0x298   : > { %v2082_v32 = vmul.f32 %v2078_v33, %v2068_v62  ;;  %v2084_v17 = vmul.f32 %v2078_v33, %v2070_v40  ;;  %v2079_v61 = vsel %vm1164_vm14, %v2075_v16, %v2077_v7 }
 0x299   : > { %v2083_v52 = vmul.f32 %v2079_v61, %v2069_v19  ;;  %v2085_v12 = vmul.f32 %v2079_v61, %v2071_v45 }
 0x29a   : > { %v2096_v25 = vpop.permute.xlu0 %2095  ;;  %v2086_v47 = vadd.f32 %v2082_v32, %v2063_v51  ;;  %v2088_v24 = vadd.f32 %v2084_v17, %v2065_v28 }
 0x29b   : > { %v2098_v57 = vpop.permute.xlu1 %2097  ;;  %v2087_v0 = vadd.f32 %v2083_v52, %v2064_v2  ;;  %v2089_v30 = vadd.f32 %v2085_v12, %v2066_v36 }
 0x29c   : > { %v2101_v11 = vsel %vm1164_vm14, %v2096_v25, %v2098_v57 }
 0x29d   : > { %v2105_v5 = vmul.f32 %v2101_v11, %v2091_v4  ;;  %v2107_v42 = vmul.f32 %v2101_v11, %v2093_v49 }
 0x29e   : > { %v2100_v6 = vpop.permute.xlu0 %2099 }
 0x29f   : > { %v2109_v20 = vadd.f32 %v2105_v5, %v2086_v47  ;;  %v2111_v39 = vadd.f32 %v2107_v42, %v2088_v24  ;;  %v2102_v26 = vsel %vm1164_vm14, %v2098_v57, %v2100_v6 }
 0x2a0   : > { %v2106_v29 = vmul.f32 %v2102_v26, %v2092_v44  ;;  %v2108_v3 = vmul.f32 %v2102_v26, %v2094_v23 }
 0x2a1   : > { %v2117_v34 = vadd.f32 %v2113_v18, %v2109_v20  ;;  %v2119_v10 = vadd.f32 %v2115_v48, %v2111_v39 }
 0x2a2   : > { %v2110_v56 = vadd.f32 %v2106_v29, %v2087_v0  ;;  %v2112_v9 = vadd.f32 %v2108_v3, %v2089_v30 }
 0x2a3   : > { %v2121_v22 = vadd.f32 %v2117_v34, %v4139_v37  ;;  %v2123_v46 = vadd.f32 %v2119_v10, %v4140_v14 }
 0x2a4   : > { %v2118_v15 = vadd.f32 %v2114_v1, %v2110_v56  ;;  %v2120_v13 = vadd.f32 %v2116_v31, %v2112_v9 }
 0x2a5   : > { %v2127_v53 = vrot.slane %v2121_v22, 3  ;;  %v2133_v35 = vrot.slane %v2123_v46, 6  ;;  %v2141_v62 = vrot.slane %v2121_v22, 5  ;;  %v2149_v40 = vrot.slane %v2121_v22, 2 }
 0x2a6   : > { %v2137_v16 = vrot.slane %v2123_v46, 1  ;;  %v2122_v58 = vadd.f32 %v2118_v15, %v4141_v59  ;;  %v2124_v55 = vadd.f32 %v2120_v13, %v4142_v27  ;;  %v2145_v33 = vrot.slane %v2123_v46, 3 }
 0x2a7   : > { %v2161_v41 = vsel %vm348_vm1, %v2121_v22, %v2127_v53  ;;  %v2153_v7 = vrot.slane %v2121_v22, 7  ;;  %v2175_v60 = vsel %vm348_vm1, %v2149_v40, %v2141_v62  ;;  %v2157_v43 = vrot.slane %v2123_v46, 5 }
 0x2a8   : > { %v2163_v50 = vsel %vm351_vm2, %v2161_v41, %v2133_v35  ;;  %v2177_v8 = vsel %vm351_vm2, %v2175_v60, %v2123_v46  ;;  %v2128_v32 = vrot.slane %v2122_v58, 3  ;;  %v2134_v17 = vrot.slane %v2124_v55, 6 }
 0x2a9   : > { %v2165_v63 = vsel %vm354_vm3, %v2163_v50, %v2137_v16  ;;  %v2179_v45 = vsel %vm354_vm3, %v2177_v8, %v2145_v33  ;;  %v2142_v61 = vrot.slane %v2122_v58, 5  ;;  %v2150_v38 = vrot.slane %v2122_v58, 2 }
 0x2aa   : > { %v2167_v19 = vsel %vm357_vm0, %v2165_v63, %v2141_v62  ;;  %v2181_v21 = vsel %vm357_vm0, %v2179_v45, %v2153_v7  ;;  %v2138_v25 = vrot.slane %v2124_v55, 1  ;;  %v2146_v4 = vrot.slane %v2124_v55, 3 }
 0x2ab   : > { %v2169_v54 = vsel %vm360_vm4, %v2167_v19, %v2121_v22  ;;  %v2162_v49 = vsel %vm348_vm1, %v2122_v58, %v2128_v32  ;;  %v2176_v57 = vsel %vm348_vm1, %v2150_v38, %v2142_v61  ;;  %v2183_v12 = vsel %vm360_vm4, %v2181_v21, %v2149_v40 }
 0x2ac   : > { %v2171_v51 = vsel %vm363_vm5, %v2169_v54, %v2145_v33  ;;  %v2164_v28 = vsel %vm351_vm2, %v2162_v49, %v2134_v17  ;;  %v2154_v11 = vrot.slane %v2122_v58, 7  ;;  %v2178_v24 = vsel %vm351_vm2, %v2176_v57, %v2124_v55 }
 0x2ad   : > { %v2173_v52 = vsel %vm366_vm6, %v2171_v51, %v2133_v35  ;;  %v2166_v47 = vsel %vm354_vm3, %v2164_v28, %v2138_v25  ;;  %v2185_v5 = vsel %vm363_vm5, %v2183_v12, %v2157_v43  ;;  %v2180_v44 = vsel %vm354_vm3, %v2178_v24, %v2146_v4 }
 0x2ae   : > { %2189 = vst [vmem:[%s301_s15] sm:$0xff] %v2173_v52  ;;  %v2168_v42 = vsel %vm357_vm0, %v2166_v47, %v2142_v61  ;;  %v2187_v23 = vsel %vm366_vm6, %v2185_v5, %v2123_v46  ;;  %v2158_v2 = vrot.slane %v2124_v55, 5  ;;  %v2182_v18 = vsel %vm357_vm0, %v2180_v44, %v2154_v11 }
 0x2af   : > { %v2170_v36 = vsel %vm360_vm4, %v2168_v42, %v2122_v58  ;;  %2191 = vst [vmem:[%s301_s15 + $0x10] sm:$0xff] %v2187_v23  ;;  %v2184_v6 = vsel %vm360_vm4, %v2182_v18, %v2150_v38 }
 0x2b0   : > { %v2172_v48 = vsel %vm363_vm5, %v2170_v36, %v2146_v4  ;;  %v2186_v39 = vsel %vm363_vm5, %v2184_v6, %v2158_v2 }
 0x2b1   : > { %v2174_v20 = vsel %vm366_vm6, %v2172_v48, %v2134_v17  ;;  %v2188_v26 = vsel %vm366_vm6, %v2186_v39, %v2124_v55 }
 0x2b2   : > { %2190 = vst [vmem:[%s301_s15 + $0x8] sm:$0xff] %v2174_v20  ;;  %2192 = vst [vmem:[%s301_s15 + $0x18] sm:$0xff] %v2188_v26 }
 0x2b3   : > { %2746 = shalt.err (!%p2743_p5)
}
 0x2b4   : > { %s2747_s6 = scalar_lea.hbm %s4044_s10, 512  ;;  %s2751_s27 = scalar_lea.hbm %s4098_s5, 1024 }
 0x2b5   : > { %p2748_p6 = scmp.ne.s32.totalorder %s4044_s10, %s2747_s6  ;;  %p2752_p9 = scmp.lt.s32.totalorder %s4044_s10, %s4098_s5 }
 0x2b6   : > { %p2753_p2 = scmp.lt.s32.totalorder %s2751_s27, %s2747_s6 }
 0x2b7   : > { %p2749_p4 = pnand %p2748_p6, %p4143_p12 }
 0x2b8   : > { %p2754_p3 = por %p2753_p2, %p2752_p9 }
 0x2b9   : > { %p2750_p8 = pneg %p2749_p4 }
 0x2bb   : > { %p2755_p10 = pnand %p2754_p3, %p2750_p8 }
 0x2bd   : > { %2758 = shalt.err (!%p2755_p10)
}
 0x2be   : > { %s2824_s22 = smov 256  }
 0x2bf   : > { %2365 = dma.vmem_to_hbm [thread:$0]  (%p4143_p12), %s4048_s12, 512, %s4044_s10, %s2194_s16, %s2824_s22, %s2824_s22, %s2816_s26  }
 0x2c0 PF: > { %s2223_s29 = sand.u32 1, %s2793_s18   ;;  %p4144_p7 = scmp.ne.s32.totalorder %s4115_s25, 0 }
 0x2c1   : > { %p4145_p1 = scmp.ge.s32.totalorder %s2805_s21, 2  ;;  %s2224_s7 = scalar_lea.sflag [#allocation5], %s2223_s29 }
 0x2c3   : > { %p2385_p13 = pnand %p4145_p1, %p4144_p7 }
 0x2c5   : > { %p2386_p0 = pneg %p2385_p13 }
 0x2c7   : > { %2788 = dma.done.wait (%p2386_p0), %s2224_s7, 512  }
 0x2c8   : > { %2790 = vsyncadd (%p2386_p0), %s2224_s7, 4294966784  ;;  %p20_p11 = scmp.ge.s32.totalorder %s2955_s9, 4   ;;  %s4146_s18 = smov %s2797_s19 }
 0x2c9   : > { %s4147_s19 = smov %s2801_s20  ;;  %s4148_s20 = smov %s2971_s14 }
 0x2ca   : > { %s4149_s21 = smov %s2955_s9  ;;  %22 = sbr.rel (!%p20_p11) target bundleno = 7 (0x7), region = 171 }
 0x2cf   :  { %2229 = vsyncpa [#allocation4], 1 }
 0x2d0   :  { %2231 = vsyncpa [#allocation4 + $0x1], 1 }
 0x2d1   :  { %2232 = vsyncpa [#allocation7], 1 }
 0x2d2   :  { %2233 = vsyncpa [#allocation10], 1 }
 0x2d3   :  { %2234 = vsyncpa [#allocation5], 1 }
 0x2d4   :  { %2236 = vsyncpa [#allocation5 + $0x1], 1 }

</bundles_post_ra>
